<compile_context>
chip_gen: v6e
topology: v6e:2x2x1
jax: 0.10.0
libtpu: 0.0.40
codegen_flags: <defaults>
</compile_context>

<pallas_src>
import functools
import math

import jax
import jax.numpy as jnp
from jax import lax
from jax.experimental import pallas as pl
from jax.experimental.pallas import tpu as pltpu

IN_FEATURES = 2048
HIDDEN = 512
NUM_CLASSES = 10
OUT_PAD = 128                      # lane-dense padded class dim
INV_SQRT2 = 1.0 / math.sqrt(2.0)


def _cdiv(a, b):
    return -(-a // b)


def _round_up(n, m):
    return _cdiv(n, m) * m


def _gelu_exact(x):
    # Matches torch.nn.functional.gelu default (erf formulation).
    return 0.5 * x * (1.0 + lax.erf(x * INV_SQRT2))


# ---------------------------------------------------------------------------
# Kernel
# ---------------------------------------------------------------------------
def classifier_head_kernel(x_ref, w1_ref, b1_ref, w2_ref, b2_ref, out_ref):
    # x tile streams in as f32; cast to bf16 here (no extra HBM pass upstream).
    x_bf = x_ref[...].astype(jnp.bfloat16)
    # (TB, 2048) x (2048, 512) on the MXU, f32 accumulation.
    h = jnp.dot(x_bf, w1_ref[...], preferred_element_type=jnp.float32)
    h = _gelu_exact(h + b1_ref[...])                       # (TB, 512) f32
    # Second (tiny) matmul in bf16 (bf16 h, resident bf16 w2), f32 accumulation.
    y = jnp.dot(h.astype(jnp.bfloat16), w2_ref[...],
                preferred_element_type=jnp.float32)        # (TB, 128) f32
    out_ref[...] = _gelu_exact(y + b2_ref[...]).astype(out_ref.dtype)


# ---------------------------------------------------------------------------
# One-time parameter preparation (hoisted out of the per-call path)
# ---------------------------------------------------------------------------
def prepare_params(w1, b1, w2, b2):
    """Cast/pad parameters once; reuse the result for every forward call."""
    w1_bf = jnp.asarray(w1, jnp.bfloat16)                              # (2048, 512)
    b1_f = jnp.asarray(b1, jnp.float32).reshape(1, HIDDEN)             # (1, 512)
    w2_bf = jnp.asarray(w2, jnp.bfloat16)
    w2_p = jnp.pad(w2_bf, ((0, 0), (0, OUT_PAD - w2_bf.shape[1])))     # (512, 128)
    b2_f = jnp.asarray(b2, jnp.float32).reshape(1, -1)
    b2_p = jnp.pad(b2_f, ((0, 0), (0, OUT_PAD - b2_f.shape[1])))       # (1, 128)
    return w1_bf, b1_f, w2_p, b2_p


@functools.lru_cache(maxsize=None)
def _device_config():
    """Per-generation batch-tile / scoped-VMEM defaults."""
    kind = jax.devices()[0].device_kind.lower()
    if "v7" in kind:
        # 2 TensorCores, 64 MiB VMEM: keep >=2 grid steps, modest tiles.
        return {"block_b": 1024, "vmem_limit": 48 << 20, "min_steps": 2}
    if "v4" in kind or "v5" in kind or "v6" in kind:
        # 128 MiB VMEM: big batch tiles amortize the ~0.35us/step overhead.
        return {"block_b": 2048, "vmem_limit": 88 << 20, "min_steps": 1}
    # Unknown generation: conservative.
    return {"block_b": 1024, "vmem_limit": 48 << 20, "min_steps": 1}


def _pick_batch_tiling(B, block_b, min_steps):
    steps = max(_cdiv(B, block_b), 1)
    if min_steps > 1 and B > 16:
        steps = max(steps, min_steps)           # use both TCs on v7x
    tb = _round_up(_cdiv(B, steps), 16)         # bf16-friendly sublane packing
    return tb, steps * tb                       # padding bounded to <16 rows/step


def _make_call(tb, bp, vmem_limit, single_buffer_weights):
    # Constant-index resident operands: single-buffer them (DMA'd once anyway).
    resident = {"pipeline_mode": pl.Buffered(1)} if single_buffer_weights else {}
    grid = (bp // tb,)
    flops = 2 * bp * (IN_FEATURES * HIDDEN + HIDDEN * OUT_PAD)
    bytes_accessed = (
        bp * IN_FEATURES * 4          # x (f32, streamed)
        + IN_FEATURES * HIDDEN * 2    # w1 (bf16, resident)
        + HIDDEN * 4                  # b1
        + HIDDEN * OUT_PAD * 2        # w2 (bf16, padded, resident)
        + OUT_PAD * 4                 # b2
        + bp * OUT_PAD * 4            # out (lane-dense f32)
    )
    return pl.pallas_call(
        classifier_head_kernel,
        out_shape=jax.ShapeDtypeStruct((bp, OUT_PAD), jnp.float32),
        grid_spec=pltpu.PrefetchScalarGridSpec(
            num_scalar_prefetch=0,
            grid=grid,
            in_specs=[
                pl.BlockSpec((tb, IN_FEATURES), lambda i: (i, 0)),            # x tile
                pl.BlockSpec((IN_FEATURES, HIDDEN), lambda i: (0, 0), **resident),
                pl.BlockSpec((1, HIDDEN), lambda i: (0, 0), **resident),
                pl.BlockSpec((HIDDEN, OUT_PAD), lambda i: (0, 0), **resident),
                pl.BlockSpec((1, OUT_PAD), lambda i: (0, 0), **resident),
            ],
            out_specs=pl.BlockSpec((tb, OUT_PAD), lambda i: (i, 0)),
        ),
        compiler_params=pltpu.CompilerParams(
            dimension_semantics=("parallel",),
            vmem_limit_bytes=vmem_limit,
        ),
        cost_estimate=pl.CostEstimate(
            flops=flops,
            transcendentals=bp * (HIDDEN + OUT_PAD),
            bytes_accessed=bytes_accessed,
        ),
    )


_SINGLE_BUFFER_OK = True  # flipped once if this Pallas build rejects Buffered(1)


def classifier_head(x, params, *, block_b=None):
    """x: (B, 2048) f32 encoder features. params: output of prepare_params()."""
    global _SINGLE_BUFFER_OK
    w1_bf, b1_f, w2_p, b2_p = params
    B = x.shape[0]
    cfg = _device_config()
    tb, bp = _pick_batch_tiling(B, block_b or cfg["block_b"], cfg["min_steps"])

    x_f = jnp.asarray(x, jnp.float32)
    if bp != B:  # bounded (<16 rows/step) zero padding; skipped when B divides
        x_f = jnp.pad(x_f, ((0, bp - B), (0, 0)))

    attempts = (True, False) if _SINGLE_BUFFER_OK else (False,)
    last_err = None
    for single_buf in attempts:
        try:
            call = _make_call(tb, bp, cfg["vmem_limit"], single_buf)
            out = call(x_f, w1_bf, b1_f, w2_p, b2_p)
            _SINGLE_BUFFER_OK = single_buf
            return out[:B, :NUM_CLASSES]
        except Exception as e:  # portability fallback to default double-buffering
            last_err = e
    raise last_err


# ---------------------------------------------------------------------------
# Init + references
# ---------------------------------------------------------------------------
def init_params(key):
    """Deterministic init mimicking torch.nn.Linear (U(-1/sqrt(fan_in), +))."""
    k1, k2, k3, k4 = jax.random.split(key, 4)
    bound1 = 1.0 / math.sqrt(IN_FEATURES)
    bound2 = 1.0 / math.sqrt(HIDDEN)
    w1 = jax.random.uniform(k1, (IN_FEATURES, HIDDEN), jnp.float32, -bound1, bound1)
    b1 = jax.random.uniform(k2, (1, HIDDEN), jnp.float32, -bound1, bound1)
    w2 = jax.random.uniform(k3, (HIDDEN, NUM_CLASSES), jnp.float32, -bound2, bound2)
    b2 = jax.random.uniform(k4, (1, NUM_CLASSES), jnp.float32, -bound2, bound2)
    return w1, b1, w2, b2


def reference_f32(x, w1, b1, w2, b2):
    # True f32 semantics of the PyTorch module (exact-erf GELU).
    h = jax.nn.gelu(jnp.dot(x, w1, precision=lax.Precision.HIGHEST) + b1,
                    approximate=False)
    y = jnp.dot(h, w2, precision=lax.Precision.HIGHEST) + b2
    return jax.nn.gelu(y, approximate=False)


def reference_mixed(x, w1, b1, w2, b2):
    # Mirrors the kernel's storage dtypes (bf16 x/w1/h/w2, f32 accumulation and
    # f32 erf-GELU); the remaining delta vs the kernel is accumulation order.
    xb = x.astype(jnp.bfloat16).astype(jnp.float32)
    w1b = w1.astype(jnp.bfloat16).astype(jnp.float32)
    h = jax.nn.gelu(xb @ w1b + b1, approximate=False)
    hb = h.astype(jnp.bfloat16).astype(jnp.float32)
    w2b = w2.astype(jnp.bfloat16).astype(jnp.float32)
    return jax.nn.gelu(hb @ w2b + b2, approximate=False)


if __name__ == "__main__":
    key = jax.random.PRNGKey(0)
    kx, kp = jax.random.split(key)

    B = 8  # small batch; x plays the role of the (frozen) encoder output.
    x = jax.random.normal(kx, (B, IN_FEATURES), jnp.float32)
    w1, b1, w2, b2 = init_params(kp)

    params = prepare_params(w1, b1, w2, b2)   # one-time prep, hoisted out of fwd
    params = jax.block_until_ready(params)

    out = classifier_head(x, params)
    out = jax.block_until_ready(out)
    assert out.shape == (B, NUM_CLASSES), out.shape

    # Tight check vs a reference that mirrors the kernel's mixed precision...
    ref_mixed = reference_mixed(x, w1, b1, w2, b2)
    assert jnp.allclose(out, ref_mixed, atol=2e-3, rtol=2e-3), \
        float(jnp.max(jnp.abs(out - ref_mixed)))
    # ...and vs the true f32 PyTorch semantics within a mixed-precision bound.
    ref_f32 = reference_f32(x, w1, b1, w2, b2)
    assert jnp.allclose(out, ref_f32, atol=1e-2, rtol=1e-2), \
        float(jnp.max(jnp.abs(out - ref_f32)))

    print("KERNEL_OK")
</pallas_src>

<mosaic_0001>
module attributes {stable_mosaic.version = 11 : i64} {
  func.func @classifier_head_kernel(%arg0: i32, %arg1: memref<16x2048xf32, #tpu.memory_space<vmem>>, %arg2: memref<2048x512xbf16, #tpu.memory_space<vmem>>, %arg3: memref<1x512xf32, #tpu.memory_space<vmem>>, %arg4: memref<512x128xbf16, #tpu.memory_space<vmem>>, %arg5: memref<1x128xf32, #tpu.memory_space<vmem>>, %arg6: memref<16x128xf32, #tpu.memory_space<vmem>>) attributes {dimension_semantics = [#tpu.dimension_semantics<parallel>], iteration_bounds = array<i64: 1>, scalar_prefetch = 0 : i64, scratch_operands = 0 : i64, tpu.core_type = #tpu.core_type<tc>, window_params = [{transform_indices = @transform_0, window_bounds = array<i64: 16, 2048>}, {pipeline_mode = #tpu.pipeline_mode<synchronous>, transform_indices = @transform_1, window_bounds = array<i64: 2048, 512>}, {pipeline_mode = #tpu.pipeline_mode<synchronous>, transform_indices = @transform_2, window_bounds = array<i64: 1, 512>}, {pipeline_mode = #tpu.pipeline_mode<synchronous>, transform_indices = @transform_3, window_bounds = array<i64: 512, 128>}, {pipeline_mode = #tpu.pipeline_mode<synchronous>, transform_indices = @transform_4, window_bounds = array<i64: 1, 128>}, {transform_indices = @transform_5, window_bounds = array<i64: 16, 128>}]} {
    %c0 = arith.constant 0 : index
    %c0_0 = arith.constant 0 : index
    %0 = vector.load %arg1[%c0, %c0_0] : memref<16x2048xf32, #tpu.memory_space<vmem>>, vector<16x2048xf32>
    %1 = arith.truncf %0 : vector<16x2048xf32> to vector<16x2048xbf16>
    %c0_1 = arith.constant 0 : index
    %c0_2 = arith.constant 0 : index
    %2 = vector.load %arg2[%c0_1, %c0_2] : memref<2048x512xbf16, #tpu.memory_space<vmem>>, vector<2048x512xbf16>
    %cst = arith.constant dense<0.000000e+00> : vector<16x512xf32>
    %3 = tpu.matmul %1, %2, %cst {dimension_numbers = #tpu.dot_dimension_numbers<[1], [0], [0], [1], [0, 0, 1, 1], [], []>} : vector<16x2048xbf16>, vector<2048x512xbf16>, vector<16x512xf32> -> vector<16x512xf32>
    %c0_3 = arith.constant 0 : index
    %c0_4 = arith.constant 0 : index
    %4 = vector.load %arg3[%c0_3, %c0_4] : memref<1x512xf32, #tpu.memory_space<vmem>>, vector<1x512xf32>
    %5 = vector.broadcast %4 : vector<1x512xf32> to vector<16x512xf32>
    %6 = arith.addf %3, %5 : vector<16x512xf32>
    %cst_5 = arith.constant 5.000000e-01 : f32
    %7 = vector.broadcast %cst_5 : f32 to vector<16x512xf32>
    %8 = arith.mulf %7, %6 : vector<16x512xf32>
    %cst_6 = arith.constant 0.707106769 : f32
    %9 = vector.broadcast %cst_6 : f32 to vector<16x512xf32>
    %10 = arith.mulf %6, %9 : vector<16x512xf32>
    %11 = math.erf %10 : vector<16x512xf32>
    %cst_7 = arith.constant 1.000000e+00 : f32
    %12 = vector.broadcast %cst_7 : f32 to vector<16x512xf32>
    %13 = arith.addf %12, %11 : vector<16x512xf32>
    %14 = arith.mulf %8, %13 : vector<16x512xf32>
    %15 = arith.truncf %14 : vector<16x512xf32> to vector<16x512xbf16>
    %c0_8 = arith.constant 0 : index
    %c0_9 = arith.constant 0 : index
    %16 = vector.load %arg4[%c0_8, %c0_9] : memref<512x128xbf16, #tpu.memory_space<vmem>>, vector<512x128xbf16>
    %cst_10 = arith.constant dense<0.000000e+00> : vector<16x128xf32>
    %17 = tpu.matmul %15, %16, %cst_10 {dimension_numbers = #tpu.dot_dimension_numbers<[1], [0], [0], [1], [0, 0, 1, 1], [], []>} : vector<16x512xbf16>, vector<512x128xbf16>, vector<16x128xf32> -> vector<16x128xf32>
    %c0_11 = arith.constant 0 : index
    %c0_12 = arith.constant 0 : index
    %18 = vector.load %arg5[%c0_11, %c0_12] : memref<1x128xf32, #tpu.memory_space<vmem>>, vector<1x128xf32>
    %19 = vector.broadcast %18 : vector<1x128xf32> to vector<16x128xf32>
    %20 = arith.addf %17, %19 : vector<16x128xf32>
    %cst_13 = arith.constant 5.000000e-01 : f32
    %21 = vector.broadcast %cst_13 : f32 to vector<16x128xf32>
    %22 = arith.mulf %21, %20 : vector<16x128xf32>
    %cst_14 = arith.constant 0.707106769 : f32
    %23 = vector.broadcast %cst_14 : f32 to vector<16x128xf32>
    %24 = arith.mulf %20, %23 : vector<16x128xf32>
    %25 = math.erf %24 : vector<16x128xf32>
    %cst_15 = arith.constant 1.000000e+00 : f32
    %26 = vector.broadcast %cst_15 : f32 to vector<16x128xf32>
    %27 = arith.addf %26, %25 : vector<16x128xf32>
    %28 = arith.mulf %22, %27 : vector<16x128xf32>
    %c0_16 = arith.constant 0 : index
    %c0_17 = arith.constant 0 : index
    %29 = vector.load %arg6[%c0_16, %c0_17] : memref<16x128xf32, #tpu.memory_space<vmem>>, vector<16x128xf32>
    tpu.vector_store %arg6[%c0_16, %c0_17], %28 {strides = array<i32>} : memref<16x128xf32, #tpu.memory_space<vmem>>, vector<16x128xf32>,
    return
  }
  func.func @transform_0(%arg0: i32) -> (i32, i32) {
    %c0_i32 = arith.constant 0 : i32
    %c0_i32_0 = arith.constant 0 : i32
    return %arg0, %c0_i32 : i32, i32
  }
  func.func @transform_1(%arg0: i32) -> (i32, i32) {
    %c0_i32 = arith.constant 0 : i32
    %c0_i32_0 = arith.constant 0 : i32
    %c0_i32_1 = arith.constant 0 : i32
    return %c0_i32, %c0_i32_0 : i32, i32
  }
  func.func @transform_2(%arg0: i32) -> (i32, i32) {
    %c0_i32 = arith.constant 0 : i32
    %c0_i32_0 = arith.constant 0 : i32
    %c0_i32_1 = arith.constant 0 : i32
    return %c0_i32, %c0_i32_0 : i32, i32
  }
  func.func @transform_3(%arg0: i32) -> (i32, i32) {
    %c0_i32 = arith.constant 0 : i32
    %c0_i32_0 = arith.constant 0 : i32
    %c0_i32_1 = arith.constant 0 : i32
    return %c0_i32, %c0_i32_0 : i32, i32
  }
  func.func @transform_4(%arg0: i32) -> (i32, i32) {
    %c0_i32 = arith.constant 0 : i32
    %c0_i32_0 = arith.constant 0 : i32
    %c0_i32_1 = arith.constant 0 : i32
    return %c0_i32, %c0_i32_0 : i32, i32
  }
  func.func @transform_5(%arg0: i32) -> (i32, i32) {
    %c0_i32 = arith.constant 0 : i32
    %c0_i32_0 = arith.constant 0 : i32
    return %arg0, %c0_i32 : i32, i32
  }
}

module attributes {stable_mosaic.version = 11 : i64} {
  func.func @classifier_head_kernel(%arg0: i32, %arg1: memref<16x2048xf32, #tpu.memory_space<vmem>>, %arg2: memref<2048x512xbf16, #tpu.memory_space<vmem>>, %arg3: memref<1x512xf32, #tpu.memory_space<vmem>>, %arg4: memref<512x128xbf16, #tpu.memory_space<vmem>>, %arg5: memref<1x128xf32, #tpu.memory_space<vmem>>, %arg6: memref<16x128xf32, #tpu.memory_space<vmem>>) attributes {dimension_semantics = [#tpu.dimension_semantics<parallel>], iteration_bounds = array<i64: 1>, scalar_prefetch = 0 : i64, scratch_operands = 0 : i64, tpu.core_type = #tpu.core_type<tc>, window_params = [{transform_indices = @transform_0, window_bounds = array<i64: 16, 2048>}, {pipeline_mode = #tpu.pipeline_mode<synchronous>, transform_indices = @transform_1, window_bounds = array<i64: 2048, 512>}, {pipeline_mode = #tpu.pipeline_mode<synchronous>, transform_indices = @transform_2, window_bounds = array<i64: 1, 512>}, {pipeline_mode = #tpu.pipeline_mode<synchronous>, transform_indices = @transform_3, window_bounds = array<i64: 512, 128>}, {pipeline_mode = #tpu.pipeline_mode<synchronous>, transform_indices = @transform_4, window_bounds = array<i64: 1, 128>}, {transform_indices = @transform_5, window_bounds = array<i64: 16, 128>}]} {
    %c0 = arith.constant 0 : index
    %c0_0 = arith.constant 0 : index
    %0 = vector.load %arg1[%c0, %c0_0] : memref<16x2048xf32, #tpu.memory_space<vmem>>, vector<16x2048xf32>
    %1 = arith.truncf %0 : vector<16x2048xf32> to vector<16x2048xbf16>
    %c0_1 = arith.constant 0 : index
    %c0_2 = arith.constant 0 : index
    %2 = vector.load %arg2[%c0_1, %c0_2] : memref<2048x512xbf16, #tpu.memory_space<vmem>>, vector<2048x512xbf16>
    %cst = arith.constant dense<0.000000e+00> : vector<16x512xf32>
    %3 = tpu.matmul %1, %2, %cst {dimension_numbers = #tpu.dot_dimension_numbers<[1], [0], [0], [1], [0, 0, 1, 1], [], []>} : vector<16x2048xbf16>, vector<2048x512xbf16>, vector<16x512xf32> -> vector<16x512xf32>
    %c0_3 = arith.constant 0 : index
    %c0_4 = arith.constant 0 : index
    %4 = vector.load %arg3[%c0_3, %c0_4] : memref<1x512xf32, #tpu.memory_space<vmem>>, vector<1x512xf32>
    %5 = vector.broadcast %4 : vector<1x512xf32> to vector<16x512xf32>
    %6 = arith.addf %3, %5 : vector<16x512xf32>
    %cst_5 = arith.constant 5.000000e-01 : f32
    %7 = vector.broadcast %cst_5 : f32 to vector<16x512xf32>
    %8 = arith.mulf %7, %6 : vector<16x512xf32>
    %cst_6 = arith.constant 0.707106769 : f32
    %9 = vector.broadcast %cst_6 : f32 to vector<16x512xf32>
    %10 = arith.mulf %6, %9 : vector<16x512xf32>
    %11 = math.erf %10 : vector<16x512xf32>
    %cst_7 = arith.constant 1.000000e+00 : f32
    %12 = vector.broadcast %cst_7 : f32 to vector<16x512xf32>
    %13 = arith.addf %12, %11 : vector<16x512xf32>
    %14 = arith.mulf %8, %13 : vector<16x512xf32>
    %15 = arith.truncf %14 : vector<16x512xf32> to vector<16x512xbf16>
    %c0_8 = arith.constant 0 : index
    %c0_9 = arith.constant 0 : index
    %16 = vector.load %arg4[%c0_8, %c0_9] : memref<512x128xbf16, #tpu.memory_space<vmem>>, vector<512x128xbf16>
    %cst_10 = arith.constant dense<0.000000e+00> : vector<16x128xf32>
    %17 = tpu.matmul %15, %16, %cst_10 {dimension_numbers = #tpu.dot_dimension_numbers<[1], [0], [0], [1], [0, 0, 1, 1], [], []>} : vector<16x512xbf16>, vector<512x128xbf16>, vector<16x128xf32> -> vector<16x128xf32>
    %c0_11 = arith.constant 0 : index
    %c0_12 = arith.constant 0 : index
    %18 = vector.load %arg5[%c0_11, %c0_12] : memref<1x128xf32, #tpu.memory_space<vmem>>, vector<1x128xf32>
    %19 = vector.broadcast %18 : vector<1x128xf32> to vector<16x128xf32>
    %20 = arith.addf %17, %19 : vector<16x128xf32>
    %cst_13 = arith.constant 5.000000e-01 : f32
    %21 = vector.broadcast %cst_13 : f32 to vector<16x128xf32>
    %22 = arith.mulf %21, %20 : vector<16x128xf32>
    %cst_14 = arith.constant 0.707106769 : f32
    %23 = vector.broadcast %cst_14 : f32 to vector<16x128xf32>
    %24 = arith.mulf %20, %23 : vector<16x128xf32>
    %25 = math.erf %24 : vector<16x128xf32>
    %cst_15 = arith.constant 1.000000e+00 : f32
    %26 = vector.broadcast %cst_15 : f32 to vector<16x128xf32>
    %27 = arith.addf %26, %25 : vector<16x128xf32>
    %28 = arith.mulf %22, %27 : vector<16x128xf32>
    %c0_16 = arith.constant 0 : index
    %c0_17 = arith.constant 0 : index
    %29 = vector.load %arg6[%c0_16, %c0_17] : memref<16x128xf32, #tpu.memory_space<vmem>>, vector<16x128xf32>
    tpu.vector_store %arg6[%c0_16, %c0_17], %28 {strides = array<i32>} : memref<16x128xf32, #tpu.memory_space<vmem>>, vector<16x128xf32>,
    return
  }
  func.func @transform_0(%arg0: i32) -> (i32, i32) {
    %c0_i32 = arith.constant 0 : i32
    %c0_i32_0 = arith.constant 0 : i32
    return %arg0, %c0_i32 : i32, i32
  }
  func.func @transform_1(%arg0: i32) -> (i32, i32) {
    %c0_i32 = arith.constant 0 : i32
    %c0_i32_0 = arith.constant 0 : i32
    %c0_i32_1 = arith.constant 0 : i32
    return %c0_i32, %c0_i32_0 : i32, i32
  }
  func.func @transform_2(%arg0: i32) -> (i32, i32) {
    %c0_i32 = arith.constant 0 : i32
    %c0_i32_0 = arith.constant 0 : i32
    %c0_i32_1 = arith.constant 0 : i32
    return %c0_i32, %c0_i32_0 : i32, i32
  }
  func.func @transform_3(%arg0: i32) -> (i32, i32) {
    %c0_i32 = arith.constant 0 : i32
    %c0_i32_0 = arith.constant 0 : i32
    %c0_i32_1 = arith.constant 0 : i32
    return %c0_i32, %c0_i32_0 : i32, i32
  }
  func.func @transform_4(%arg0: i32) -> (i32, i32) {
    %c0_i32 = arith.constant 0 : i32
    %c0_i32_0 = arith.constant 0 : i32
    %c0_i32_1 = arith.constant 0 : i32
    return %c0_i32, %c0_i32_0 : i32, i32
  }
  func.func @transform_5(%arg0: i32) -> (i32, i32) {
    %c0_i32 = arith.constant 0 : i32
    %c0_i32_0 = arith.constant 0 : i32
    return %arg0, %c0_i32 : i32, i32
  }
}

</mosaic_0001>

<bundles_post_ra>
// kernel: tpu_custom_call.1
= control target key start
LH: loop header
LB: loop body
LE: loop exit
PB: predicated region body
PF: predicated region fallthrough
CT: control target
= control target key end

     0   :  { %10 = vsyncpa [#allocation3], 0  ;;  %s6106_s0 = inlined_call_operand.hbm [shape: f32[16,2048], index: 0, kind: input, shape index: {}]   ;;  %s6107_s1 = inlined_call_operand.hbm [shape: bf16[2048,512], index: 1, kind: input, shape index: {}]   ;;  %s6108_s2 = inlined_call_operand.hbm [shape: f32[1,512], index: 2, kind: input, shape index: {}]   ;;  %s6109_s3 = inlined_call_operand.hbm [shape: bf16[512,128], index: 3, kind: input, shape index: {}]   ;;  %s6110_s4 = inlined_call_operand.hbm [shape: f32[1,128], index: 4, kind: input, shape index: {}]   ;;  %s6111_s5 = inlined_call_operand.hbm [shape: f32[16,128], index: 5, kind: output, shape index: {}]  }
   0x1   :  { %11 = vsyncpa [#allocation6], 0 }
   0x2   :  { %12 = vsyncpa [#allocation9], 0 }
   0x3   :  { %13 = vsyncpa [#allocation4], 0  ;;  %s5886_s18 = smov [#allocation5]  }
   0x4   :  { %s31_s19 = sshll.u32 %s5886_s18, 4  ;;  %s32_s19 = int_to_ptr.vmem [resolvable:$true] %s31_s19 }
   0x5   :  { %s5766_s20 = scalar_lea.vmem %s32_s19, 65536  ;;  %p5771_p1 = scmp.lt.s32.totalorder %s32_s19, %s32_s19 }
   0x6   :  { %p5767_p0 = scmp.ne.s32.totalorder %s32_s19, %s5766_s20  ;;  %p5772_p2 = scmp.lt.s32.totalorder %s5766_s20, %s5766_s20 }
   0x8   :  { %p5773_p3 = por %p5772_p2, %p5771_p1 }
   0xa   :  { %p5774_p4 = pnand %p5773_p3, %p5767_p0 }
   0xc   :  { %5777 = shalt.err (!%p5774_p4)
}
   0xd   :  { %s5887_s21 = smov 256   ;;  %s5888_s22 = smov 16  }
   0xe   :  { %37 = dma.hbm_to_vmem [thread:$0]  %s6107_s1, 65536, %s32_s19, [#allocation6], %s5887_s21, %s5887_s21, %s5888_s22  }
   0xf   :  { %s5889_s25 = smov [#allocation8]  }
  0x10   :  { %s53_s26 = sshll.u32 %s5889_s25, 4  ;;  %s54_s26 = int_to_ptr.vmem [resolvable:$true] %s53_s26 }
  0x11   :  { %s5786_s27 = scalar_lea.vmem %s54_s26, 4096  ;;  %p5791_p6 = scmp.lt.s32.totalorder %s54_s26, %s54_s26 }
  0x12   :  { %p5787_p5 = scmp.ne.s32.totalorder %s54_s26, %s5786_s27  ;;  %p5792_p7 = scmp.lt.s32.totalorder %s5786_s27, %s5786_s27 }
  0x14   :  { %p5793_p8 = por %p5792_p7, %p5791_p6 }
  0x16   :  { %p5794_p9 = pnand %p5793_p8, %p5787_p5 }
  0x18   :  { %5797 = shalt.err (!%p5794_p9)
}
  0x19   :  { %s5890_s28 = smov 64   ;;  %s5891_s29 = smov 4  }
  0x1a   :  { %59 = dma.hbm_to_vmem [thread:$0]  %s6109_s3, 4096, %s54_s26, [#allocation9], %s5890_s28, %s5890_s28, %s5891_s29  }
  0x1b   :  { %s5892_s7 = smov [#allocation2]  }
  0x1c   :  { %s19_s8 = sshll.u32 %s5892_s7, 4  ;;  %s20_s8 = int_to_ptr.vmem [resolvable:$true] %s19_s8 }
  0x1d   :  { %s5806_s1 = scalar_lea.vmem %s20_s8, 4096  ;;  %p5811_p11 = scmp.lt.s32.totalorder %s20_s8, %s20_s8 }
  0x1e   :  { %p5807_p10 = scmp.ne.s32.totalorder %s20_s8, %s5806_s1  ;;  %p5812_p12 = scmp.lt.s32.totalorder %s5806_s1, %s5806_s1 }
  0x20   :  { %p5813_p13 = por %p5812_p12, %p5811_p11 }
  0x22   :  { %p5814_p0 = pnand %p5813_p13, %p5807_p10 }
  0x24   :  { %5817 = shalt.err (!%p5814_p0)
}
  0x25   :  { %s5893_s9 = smov 2048   ;;  %s5894_s10 = smov 128  }
  0x26   :  { %25 = dma.hbm_to_vmem [thread:$0]  %s6106_s0, 4096, %s20_s8, [#allocation3], %s5893_s9, %s5893_s9, %s5894_s10  }
  0x27   :  { %s5895_s13 = smov [#allocation7]   ;;  %s5896_s3 = smov [#allocation10]  }
  0x28   :  { %s44_s14 = sshll.u32 %s5895_s13, 4  ;;  %s66_s15 = sshll.u32 %s5896_s3, 4  ;;  %s45_s14 = int_to_ptr.vmem [resolvable:$true] %s44_s14  ;;  %s67_s15 = int_to_ptr.vmem [resolvable:$true] %s66_s15 }
  0x29   :  { %s5826_s16 = scalar_lea.vmem %s45_s14, 64  ;;  %p5831_p2 = scmp.lt.s32.totalorder %s45_s14, %s45_s14 }
  0x2a   :  { %p5827_p1 = scmp.ne.s32.totalorder %s45_s14, %s5826_s16  ;;  %p5832_p3 = scmp.lt.s32.totalorder %s5826_s16, %s5826_s16 }
  0x2c   :  { %p5833_p4 = por %p5832_p3, %p5831_p2 }
  0x2e   :  { %p5834_p5 = pnand %p5833_p4, %p5827_p1 }
  0x30   :  { %5837 = shalt.err (!%p5834_p5)
}
  0x31   :  { %47 = dma.hbm_to_vmem [thread:$0]  %s6108_s2, 64, %s45_s14, [#allocation6]  }
  0x32   :  { %s5846_s19 = scalar_lea.vmem %s67_s15, 16  ;;  %s5850_s0 = scalar_lea.vmem %s67_s15, 32 }
  0x33   :  { %p5847_p6 = scmp.ne.s32.totalorder %s67_s15, %s5846_s19  ;;  %p5851_p7 = scmp.lt.s32.totalorder %s67_s15, %s67_s15 }
  0x34   :  { %p5852_p8 = scmp.lt.s32.totalorder %s5850_s0, %s5846_s19 }
  0x36   :  { %p5853_p9 = por %p5852_p8, %p5851_p7 }
  0x38   :  { %p5854_p10 = pnand %p5853_p9, %p5847_p6 }
  0x3a   :  { %5857 = shalt.err (!%p5854_p10)
}
  0x3b   :  { %69 = dma.hbm_to_vmem [thread:$0]  %s6110_s4, 16, %s67_s15, [#allocation9]  }
  0x3c   :  { %5878 = dma.done.wait [#allocation3], 4096  }
  0x3d   :  { %5879 = vsyncadd [#allocation3], 4294963200 }
  0x3e   :  { %5880 = dma.done.wait [#allocation6], 65600  }
  0x3f   :  { %5881 = vsyncadd [#allocation6], 4294901696 }
  0x40   :  { %5882 = dma.done.wait [#allocation9], 4112  }
  0x41   :  { %5883 = vsyncadd [#allocation9], 4294963184  ;;  %v4938_v0 = vld [vmem:[#allocation5 + $0xe4] ss:$16 sps:$4 sm:$0xff]   ;;  %v4942_v2 = vld [vmem:[#allocation5 + $0xe0] ss:$16 sps:$4 sm:$0xff]  }
  0x42   :  { %v4940_v1 = vld [vmem:[#allocation5 + $0x2e4] ss:$16 sps:$4 sm:$0xff]   ;;  %3228 = vmatprep.subr.bf16.mxu0 %v4938_v0  ;;  %v4943_v3 = vld [vmem:[#allocation5 + $0x2e0] ss:$16 sps:$4 sm:$0xff]   ;;  %v87_v46 = vld [vmem:[#allocation2 + $0x8] sm:$0xff]  ;;  %s5897_s2 = smov [#allocation11]  }
  0x43   :  { %3271 = vmatprep.subr.bf16.mxu1 %v4940_v1  ;;  %v4944_v4 = vld [vmem:[#allocation5 + $0xc4] ss:$16 sps:$4 sm:$0xff]   ;;  %3229 = vmatpush1.bf16.msra.mxu0 %v4942_v2  ;;  %v4948_v6 = vld [vmem:[#allocation5 + $0xc0] ss:$16 sps:$4 sm:$0xff]   ;;  %v103_v47 = vld [vmem:[#allocation2 + $0x88] sm:$0xff]  ;;  %s4322_s4 = sshll.u32 %s5897_s2, 4  ;;  %s4323_s4 = int_to_ptr.vmem [resolvable:$true] %s4322_s4 }
  0x44   :  { %3272 = vmatpush1.bf16.msra.mxu1 %v4943_v3  ;;  %v4946_v5 = vld [vmem:[#allocation5 + $0x2c4] ss:$16 sps:$4 sm:$0xff]   ;;  %3230 = vmatprep.subr.bf16.mxu0 %v4944_v4  ;;  %v4949_v7 = vld [vmem:[#allocation5 + $0x2c0] ss:$16 sps:$4 sm:$0xff]   ;;  %v89_v48 = vld [vmem:[#allocation2 + $0x18] sm:$0xff]  ;;  %v5945_v53 = vpack.c.bf16 %v103_v47, %v87_v46  ;;  %s5858_s22 = scalar_lea.vmem %s4323_s4, 256  ;;  %p5863_p12 = scmp.lt.s32.totalorder %s4323_s4, %s4323_s4 }
  0x45   :  { %3273 = vmatprep.subr.bf16.mxu1 %v4946_v5  ;;  %v4950_v8 = vld [vmem:[#allocation5 + $0xa4] ss:$16 sps:$4 sm:$0xff]   ;;  %v4954_v10 = vld [vmem:[#allocation5 + $0xa0] ss:$16 sps:$4 sm:$0xff]   ;;  %v105_v49 = vld [vmem:[#allocation2 + $0x98] sm:$0xff]  ;;  %p5859_p11 = scmp.ne.s32.totalorder %s4323_s4, %s5858_s22  ;;  %p5864_p13 = scmp.lt.s32.totalorder %s5858_s22, %s5858_s22 }
  0x46   :  { %v4952_v9 = vld [vmem:[#allocation5 + $0x2a4] ss:$16 sps:$4 sm:$0xff]   ;;  %v4955_v11 = vld [vmem:[#allocation5 + $0x2a0] ss:$16 sps:$4 sm:$0xff]   ;;  %v5947_v54 = vpack.c.bf16 %v105_v49, %v89_v48  ;;  %3260 = vmatprep.mubr.bf16.mxu0 %v5945_v53  ;;  %v109_v46 = vld [vmem:[#allocation2 + $0xb8] sm:$0xff] }
  0x47   :  { %3231 = vmatpush1.bf16.msra.mxu0 %v4948_v6  ;;  %v4956_v12 = vld [vmem:[#allocation5 + $0x84] ss:$16 sps:$4 sm:$0xff]   ;;  %v4960_v14 = vld [vmem:[#allocation5 + $0x80] ss:$16 sps:$4 sm:$0xff]   ;;  %p5865_p0 = por %p5864_p13, %p5863_p12 }
  0x48   :  { %3274 = vmatpush1.bf16.msra.mxu1 %v4949_v7  ;;  %3232 = vmatprep.subr.bf16.mxu0 %v4950_v8  ;;  %v4958_v13 = vld [vmem:[#allocation5 + $0x284] ss:$16 sps:$4 sm:$0xff]   ;;  %v4961_v15 = vld [vmem:[#allocation5 + $0x280] ss:$16 sps:$4 sm:$0xff]  }
  0x49   :  { %3275 = vmatprep.subr.bf16.mxu1 %v4952_v9  ;;  %v4962_v16 = vld [vmem:[#allocation5 + $0x64] ss:$16 sps:$4 sm:$0xff]   ;;  %v4966_v18 = vld [vmem:[#allocation5 + $0x60] ss:$16 sps:$4 sm:$0xff]   ;;  %3303 = vmatprep.mubr.bf16.mxu1 %v5947_v54  ;;  %p5866_p1 = pnand %p5865_p0, %p5859_p11 }
  0x4a   :  { %v4964_v17 = vld [vmem:[#allocation5 + $0x264] ss:$16 sps:$4 sm:$0xff]   ;;  %v4967_v19 = vld [vmem:[#allocation5 + $0x260] ss:$16 sps:$4 sm:$0xff]  }
  0x4b   :  { %3233 = vmatpush1.bf16.msra.mxu0 %v4954_v10  ;;  %v4968_v20 = vld [vmem:[#allocation5 + $0x44] ss:$16 sps:$4 sm:$0xff]   ;;  %v4972_v22 = vld [vmem:[#allocation5 + $0x40] ss:$16 sps:$4 sm:$0xff]  }
  0x4c   :  { %3276 = vmatpush1.bf16.msra.mxu1 %v4955_v11  ;;  %3234 = vmatprep.subr.bf16.mxu0 %v4956_v12  ;;  %v4970_v21 = vld [vmem:[#allocation5 + $0x244] ss:$16 sps:$4 sm:$0xff]   ;;  %v4973_v23 = vld [vmem:[#allocation5 + $0x240] ss:$16 sps:$4 sm:$0xff]  }
  0x4d   :  { %3277 = vmatprep.subr.bf16.mxu1 %v4958_v13  ;;  %v4974_v24 = vld [vmem:[#allocation5 + $0x24] ss:$16 sps:$4 sm:$0xff]   ;;  %v4978_v26 = vld [vmem:[#allocation5 + $0x20] ss:$16 sps:$4 sm:$0xff]  }
  0x4e   :  { %v4976_v25 = vld [vmem:[#allocation5 + $0x224] ss:$16 sps:$4 sm:$0xff]   ;;  %v4979_v27 = vld [vmem:[#allocation5 + $0x220] ss:$16 sps:$4 sm:$0xff]  }
  0x4f   :  { %3235 = vmatpush1.bf16.msra.mxu0 %v4960_v14  ;;  %v4980_v28 = vld [vmem:[#allocation5 + $0x4] ss:$16 sps:$4 sm:$0xff]   ;;  %v4984_v30 = vld [vmem:[#allocation5] ss:$16 sps:$4 sm:$0xff]  }
  0x50   :  { %3278 = vmatpush1.bf16.msra.mxu1 %v4961_v15  ;;  %3236 = vmatprep.subr.bf16.mxu0 %v4962_v16  ;;  %v4982_v29 = vld [vmem:[#allocation5 + $0x204] ss:$16 sps:$4 sm:$0xff]   ;;  %v4985_v31 = vld [vmem:[#allocation5 + $0x200] ss:$16 sps:$4 sm:$0xff]  }
  0x51   :  { %3279 = vmatprep.subr.bf16.mxu1 %v4964_v17  ;;  %v4986_v32 = vld [vmem:[#allocation5 + $0x1e4] ss:$16 sps:$4 sm:$0xff]   ;;  %v4990_v34 = vld [vmem:[#allocation5 + $0x1e0] ss:$16 sps:$4 sm:$0xff]  }
  0x52   :  { %v4988_v33 = vld [vmem:[#allocation5 + $0x3e4] ss:$16 sps:$4 sm:$0xff]   ;;  %v4991_v35 = vld [vmem:[#allocation5 + $0x3e0] ss:$16 sps:$4 sm:$0xff]  }
  0x53   :  { %3237 = vmatpush1.bf16.msra.mxu0 %v4966_v18  ;;  %v4992_v36 = vld [vmem:[#allocation5 + $0x1c4] ss:$16 sps:$4 sm:$0xff]   ;;  %v4996_v38 = vld [vmem:[#allocation5 + $0x1c0] ss:$16 sps:$4 sm:$0xff]  }
  0x54   :  { %3280 = vmatpush1.bf16.msra.mxu1 %v4967_v19  ;;  %3238 = vmatprep.subr.bf16.mxu0 %v4968_v20  ;;  %v4994_v37 = vld [vmem:[#allocation5 + $0x3c4] ss:$16 sps:$4 sm:$0xff]   ;;  %v4997_v39 = vld [vmem:[#allocation5 + $0x3c0] ss:$16 sps:$4 sm:$0xff]  }
  0x55   :  { %3281 = vmatprep.subr.bf16.mxu1 %v4970_v21  ;;  %v4998_v40 = vld [vmem:[#allocation5 + $0x1a4] ss:$16 sps:$4 sm:$0xff]   ;;  %v5002_v42 = vld [vmem:[#allocation5 + $0x1a0] ss:$16 sps:$4 sm:$0xff]  }
  0x56   :  { %v5000_v41 = vld [vmem:[#allocation5 + $0x3a4] ss:$16 sps:$4 sm:$0xff]   ;;  %v5003_v43 = vld [vmem:[#allocation5 + $0x3a0] ss:$16 sps:$4 sm:$0xff]  }
  0x57   :  { %3239 = vmatpush1.bf16.msra.mxu0 %v4972_v22  ;;  %v5004_v44 = vld [vmem:[#allocation5 + $0x184] ss:$16 sps:$4 sm:$0xff]   ;;  %v5008_v50 = vld [vmem:[#allocation5 + $0x180] ss:$16 sps:$4 sm:$0xff]  }
  0x58   :  { %3282 = vmatpush1.bf16.msra.mxu1 %v4973_v23  ;;  %3240 = vmatprep.subr.bf16.mxu0 %v4974_v24  ;;  %v5006_v45 = vld [vmem:[#allocation5 + $0x384] ss:$16 sps:$4 sm:$0xff]   ;;  %v5009_v51 = vld [vmem:[#allocation5 + $0x380] ss:$16 sps:$4 sm:$0xff]  }
  0x59   :  { %3283 = vmatprep.subr.bf16.mxu1 %v4976_v25  ;;  %v5010_v52 = vld [vmem:[#allocation5 + $0x164] ss:$16 sps:$4 sm:$0xff]   ;;  %v5014_v56 = vld [vmem:[#allocation5 + $0x160] ss:$16 sps:$4 sm:$0xff]  }
  0x5a   :  { %v5012_v55 = vld [vmem:[#allocation5 + $0x364] ss:$16 sps:$4 sm:$0xff]   ;;  %v5015_v57 = vld [vmem:[#allocation5 + $0x360] ss:$16 sps:$4 sm:$0xff]  }
  0x5b   :  { %3241 = vmatpush1.bf16.msra.mxu0 %v4978_v26  ;;  %v5016_v58 = vld [vmem:[#allocation5 + $0x144] ss:$16 sps:$4 sm:$0xff]   ;;  %v5020_v60 = vld [vmem:[#allocation5 + $0x140] ss:$16 sps:$4 sm:$0xff]  }
  0x5c   :  { %3284 = vmatpush1.bf16.msra.mxu1 %v4979_v27  ;;  %3242 = vmatprep.subr.bf16.mxu0 %v4980_v28  ;;  %v5018_v59 = vld [vmem:[#allocation5 + $0x344] ss:$16 sps:$4 sm:$0xff]   ;;  %v5021_v61 = vld [vmem:[#allocation5 + $0x340] ss:$16 sps:$4 sm:$0xff]  }
  0x5d   :  { %3285 = vmatprep.subr.bf16.mxu1 %v4982_v29  ;;  %v5022_v62 = vld [vmem:[#allocation5 + $0x124] ss:$16 sps:$4 sm:$0xff]   ;;  %v5026_v0 = vld [vmem:[#allocation5 + $0x120] ss:$16 sps:$4 sm:$0xff]  }
  0x5e   :  { %v5024_v63 = vld [vmem:[#allocation5 + $0x324] ss:$16 sps:$4 sm:$0xff]   ;;  %v5027_v1 = vld [vmem:[#allocation5 + $0x320] ss:$16 sps:$4 sm:$0xff]  }
  0x5f   :  { %3243 = vmatpush1.bf16.msra.mxu0 %v4984_v30  ;;  %v5028_v2 = vld [vmem:[#allocation5 + $0x104] ss:$16 sps:$4 sm:$0xff]   ;;  %v5032_v4 = vld [vmem:[#allocation5 + $0x100] ss:$16 sps:$4 sm:$0xff]  }
  0x60   :  { %3286 = vmatpush1.bf16.msra.mxu1 %v4985_v31  ;;  %3244 = vmatprep.subr.bf16.mxu0 %v4986_v32  ;;  %v5030_v3 = vld [vmem:[#allocation5 + $0x304] ss:$16 sps:$4 sm:$0xff]   ;;  %v5033_v5 = vld [vmem:[#allocation5 + $0x300] ss:$16 sps:$4 sm:$0xff]  }
  0x61   :  { %3287 = vmatprep.subr.bf16.mxu1 %v4988_v33  ;;  %v86_v6 = vld [vmem:[#allocation2] sm:$0xff]  ;;  %v88_v8 = vld [vmem:[#allocation2 + $0x10] sm:$0xff] }
  0x62   :  { %v102_v7 = vld [vmem:[#allocation2 + $0x80] sm:$0xff]  ;;  %v104_v9 = vld [vmem:[#allocation2 + $0x90] sm:$0xff] }
  0x63   :  { %3245 = vmatpush2.bf16.msra.mxu0 %v4990_v34  ;;  %v5036_v10 = vld [vmem:[#allocation5 + $0x4e4] ss:$16 sps:$4 sm:$0xff]   ;;  %v5951_v12 = vpack.c.bf16 %v102_v7, %v86_v6  ;;  %v5953_v13 = vpack.c.bf16 %v104_v9, %v88_v8  ;;  %v5034_v14 = vld [vmem:[#allocation5 + $0x4e0] ss:$16 sps:$4 sm:$0xff]  }
  0x64   :  { %3288 = vmatpush2.bf16.msra.mxu1 %v4991_v35  ;;  %3246 = vmatprep.subr.bf16.mxu0 %v4992_v36  ;;  %v5039_v11 = vld [vmem:[#allocation5 + $0x6e4] ss:$16 sps:$4 sm:$0xff]   ;;  %v5037_v15 = vld [vmem:[#allocation5 + $0x6e0] ss:$16 sps:$4 sm:$0xff]  }
  0x65   :  { %3289 = vmatprep.subr.bf16.mxu1 %v4994_v37  ;;  %v5042_v16 = vld [vmem:[#allocation5 + $0x4c4] ss:$16 sps:$4 sm:$0xff]   ;;  %v5040_v18 = vld [vmem:[#allocation5 + $0x4c0] ss:$16 sps:$4 sm:$0xff]  }
  0x66   :  { %v5045_v17 = vld [vmem:[#allocation5 + $0x6c4] ss:$16 sps:$4 sm:$0xff]   ;;  %v5043_v19 = vld [vmem:[#allocation5 + $0x6c0] ss:$16 sps:$4 sm:$0xff]  }
  0x67   :  { %3247 = vmatpush2.bf16.msra.mxu0 %v4996_v38  ;;  %v5048_v20 = vld [vmem:[#allocation5 + $0x4a4] ss:$16 sps:$4 sm:$0xff]   ;;  %v5046_v22 = vld [vmem:[#allocation5 + $0x4a0] ss:$16 sps:$4 sm:$0xff]  }
  0x68   :  { %3290 = vmatpush2.bf16.msra.mxu1 %v4997_v39  ;;  %3248 = vmatprep.subr.bf16.mxu0 %v4998_v40  ;;  %v5051_v21 = vld [vmem:[#allocation5 + $0x6a4] ss:$16 sps:$4 sm:$0xff]   ;;  %v5049_v23 = vld [vmem:[#allocation5 + $0x6a0] ss:$16 sps:$4 sm:$0xff]   ;;  %v91_v40 = vld [vmem:[#allocation2 + $0x28] sm:$0xff] }
  0x69   :  { %3291 = vmatprep.subr.bf16.mxu1 %v5000_v41  ;;  %v5054_v24 = vld [vmem:[#allocation5 + $0x484] ss:$16 sps:$4 sm:$0xff]   ;;  %v5052_v26 = vld [vmem:[#allocation5 + $0x480] ss:$16 sps:$4 sm:$0xff]   ;;  %v107_v41 = vld [vmem:[#allocation2 + $0xa8] sm:$0xff] }
  0x6a   :  { %v5057_v25 = vld [vmem:[#allocation5 + $0x684] ss:$16 sps:$4 sm:$0xff]   ;;  %v5055_v27 = vld [vmem:[#allocation5 + $0x680] ss:$16 sps:$4 sm:$0xff]  }
  0x6b   :  { %3249 = vmatpush2.bf16.msra.mxu0 %v5002_v42  ;;  %v5060_v28 = vld [vmem:[#allocation5 + $0x464] ss:$16 sps:$4 sm:$0xff]   ;;  %v5058_v30 = vld [vmem:[#allocation5 + $0x460] ss:$16 sps:$4 sm:$0xff]   ;;  %v93_v42 = vld [vmem:[#allocation2 + $0x38] sm:$0xff] }
  0x6c   :  { %3292 = vmatpush2.bf16.msra.mxu1 %v5003_v43  ;;  %3250 = vmatprep.subr.bf16.mxu0 %v5004_v44  ;;  %v5063_v29 = vld [vmem:[#allocation5 + $0x664] ss:$16 sps:$4 sm:$0xff]   ;;  %v5061_v31 = vld [vmem:[#allocation5 + $0x660] ss:$16 sps:$4 sm:$0xff]   ;;  %v5959_v47 = vpack.c.bf16 %v109_v46, %v93_v42  ;;  %v113_v42 = vld [vmem:[#allocation2 + $0xd8] sm:$0xff] }
  0x6d   :  { %3293 = vmatprep.subr.bf16.mxu1 %v5006_v45  ;;  %v5066_v32 = vld [vmem:[#allocation5 + $0x444] ss:$16 sps:$4 sm:$0xff]   ;;  %v5064_v34 = vld [vmem:[#allocation5 + $0x440] ss:$16 sps:$4 sm:$0xff]   ;;  %v5957_v45 = vpack.c.bf16 %v107_v41, %v91_v40  ;;  %v97_v41 = vld [vmem:[#allocation2 + $0x58] sm:$0xff] }
  0x6e   :  { %v5069_v33 = vld [vmem:[#allocation5 + $0x644] ss:$16 sps:$4 sm:$0xff]   ;;  %v5067_v35 = vld [vmem:[#allocation5 + $0x640] ss:$16 sps:$4 sm:$0xff]   ;;  %v5971_v46 = vpack.c.bf16 %v113_v42, %v97_v41 }
  0x6f   :  { %3251 = vmatpush2.bf16.msra.mxu0 %v5008_v50  ;;  %v5072_v36 = vld [vmem:[#allocation5 + $0x424] ss:$16 sps:$4 sm:$0xff]   ;;  %v5070_v38 = vld [vmem:[#allocation5 + $0x420] ss:$16 sps:$4 sm:$0xff]  }
  0x70   :  { %3294 = vmatpush2.bf16.msra.mxu1 %v5009_v51  ;;  %3252 = vmatprep.subr.bf16.mxu0 %v5010_v52  ;;  %v5075_v37 = vld [vmem:[#allocation5 + $0x624] ss:$16 sps:$4 sm:$0xff]   ;;  %v5073_v39 = vld [vmem:[#allocation5 + $0x620] ss:$16 sps:$4 sm:$0xff]  }
  0x71   :  { %3295 = vmatprep.subr.bf16.mxu1 %v5012_v55  ;;  %v5078_v43 = vld [vmem:[#allocation5 + $0x404] ss:$16 sps:$4 sm:$0xff]   ;;  %v5076_v48 = vld [vmem:[#allocation5 + $0x400] ss:$16 sps:$4 sm:$0xff]  }
  0x72   :  { %v5081_v44 = vld [vmem:[#allocation5 + $0x604] ss:$16 sps:$4 sm:$0xff]   ;;  %v5079_v49 = vld [vmem:[#allocation5 + $0x600] ss:$16 sps:$4 sm:$0xff]  }
  0x73   :  { %3253 = vmatpush2.bf16.msra.mxu0 %v5014_v56  ;;  %v5084_v50 = vld [vmem:[#allocation5 + $0x5e4] ss:$16 sps:$4 sm:$0xff]   ;;  %v5082_v52 = vld [vmem:[#allocation5 + $0x5e0] ss:$16 sps:$4 sm:$0xff]  }
  0x74   :  { %3296 = vmatpush2.bf16.msra.mxu1 %v5015_v57  ;;  %3254 = vmatprep.subr.bf16.mxu0 %v5016_v58  ;;  %v5087_v51 = vld [vmem:[#allocation5 + $0x7e4] ss:$16 sps:$4 sm:$0xff]   ;;  %v5085_v55 = vld [vmem:[#allocation5 + $0x7e0] ss:$16 sps:$4 sm:$0xff]  }
  0x75   :  { %3297 = vmatprep.subr.bf16.mxu1 %v5018_v59  ;;  %v5090_v56 = vld [vmem:[#allocation5 + $0x5c4] ss:$16 sps:$4 sm:$0xff]   ;;  %v5088_v58 = vld [vmem:[#allocation5 + $0x5c0] ss:$16 sps:$4 sm:$0xff]  }
  0x76   :  { %v5093_v57 = vld [vmem:[#allocation5 + $0x7c4] ss:$16 sps:$4 sm:$0xff]   ;;  %v5091_v59 = vld [vmem:[#allocation5 + $0x7c0] ss:$16 sps:$4 sm:$0xff]  }
  0x77   :  { %3255 = vmatpush2.bf16.msra.mxu0 %v5020_v60  ;;  %v5096_v60 = vld [vmem:[#allocation5 + $0x5a4] ss:$16 sps:$4 sm:$0xff]   ;;  %v5106_v6 = vld [vmem:[#allocation5 + $0x560] ss:$16 sps:$4 sm:$0xff]  }
  0x78   :  { %3298 = vmatpush2.bf16.msra.mxu1 %v5021_v61  ;;  %3256 = vmatprep.subr.bf16.mxu0 %v5022_v62  ;;  %v5099_v61 = vld [vmem:[#allocation5 + $0x7a4] ss:$16 sps:$4 sm:$0xff]   ;;  %v5094_v62 = vld [vmem:[#allocation5 + $0x5a0] ss:$16 sps:$4 sm:$0xff]  }
  0x79   :  { %3299 = vmatprep.subr.bf16.mxu1 %v5024_v63  ;;  %v5097_v63 = vld [vmem:[#allocation5 + $0x7a0] ss:$16 sps:$4 sm:$0xff]   ;;  %v5114_v8 = vld [vmem:[#allocation5 + $0x544] ss:$16 sps:$4 sm:$0xff]  }
  0x7a   :  { %v5109_v7 = vld [vmem:[#allocation5 + $0x760] ss:$16 sps:$4 sm:$0xff]   ;;  %v5117_v9 = vld [vmem:[#allocation5 + $0x744] ss:$16 sps:$4 sm:$0xff]  }
  0x7b   :  { %3257 = vmatpush2.bf16.msra.mxu0 %v5026_v0  ;;  %v5102_v0 = vld [vmem:[#allocation5 + $0x584] ss:$16 sps:$4 sm:$0xff]   ;;  %v5220_v41 = vld [vmem:[#allocation5 + $0x900] ss:$16 sps:$4 sm:$0xff]  }
  0x7c   :  { %3300 = vmatpush2.bf16.msra.mxu1 %v5027_v1  ;;  %3258 = vmatprep.subr.bf16.mxu0 %v5028_v2  ;;  %v5105_v1 = vld [vmem:[#allocation5 + $0x784] ss:$16 sps:$4 sm:$0xff]   ;;  %v5100_v2 = vld [vmem:[#allocation5 + $0x580] ss:$16 sps:$4 sm:$0xff]  }
  0x7d   :  { %3301 = vmatprep.subr.bf16.mxu1 %v5030_v3  ;;  %v5103_v3 = vld [vmem:[#allocation5 + $0x780] ss:$16 sps:$4 sm:$0xff]  }
  0x7e   :  { %v5223_v42 = vld [vmem:[#allocation5 + $0xb00] ss:$16 sps:$4 sm:$0xff]  }
  0x7f   :  { %3259 = vmatpush2.bf16.msra.mxu0 %v5032_v4  ;;  %v5108_v4 = vld [vmem:[#allocation5 + $0x564] ss:$16 sps:$4 sm:$0xff]  }
  0x80   :  { %3302 = vmatpush2.bf16.msra.mxu1 %v5033_v5  ;;  %3314 = vmatprep.subr.bf16.mxu0 %v5036_v10  ;;  %v5111_v5 = vld [vmem:[#allocation5 + $0x764] ss:$16 sps:$4 sm:$0xff]   ;;  %v5112_v10 = vld [vmem:[#allocation5 + $0x540] ss:$16 sps:$4 sm:$0xff]  }
  0x81   :  { %3357 = vmatprep.subr.bf16.mxu1 %v5039_v11  ;;  %v5115_v11 = vld [vmem:[#allocation5 + $0x740] ss:$16 sps:$4 sm:$0xff]  }
  0x82   :  { %3261 = vmatmul.mubr.bf16.vlgmr.msra.gmra.mxu0 %v5951_v12 }
  0x83   :  { %3304 = vmatmul.mubr.bf16.vlgmr.msra.gmra.mxu1 %v5953_v13  ;;  %3315 = vmatpush1.bf16.msra.mxu0 %v5034_v14  ;;  %v5120_v14 = vld [vmem:[#allocation5 + $0x524] ss:$16 sps:$4 sm:$0xff]  }
  0x84   :  { %3358 = vmatpush1.bf16.msra.mxu1 %v5037_v15  ;;  %3316 = vmatprep.subr.bf16.mxu0 %v5042_v16  ;;  %v5123_v15 = vld [vmem:[#allocation5 + $0x724] ss:$16 sps:$4 sm:$0xff]   ;;  %v5118_v16 = vld [vmem:[#allocation5 + $0x520] ss:$16 sps:$4 sm:$0xff]  }
  0x85   :  { %3359 = vmatprep.subr.bf16.mxu1 %v5045_v17  ;;  %3346 = vmatprep.mubr.bf16.mxu0 %v5957_v45  ;;  %v5121_v17 = vld [vmem:[#allocation5 + $0x720] ss:$16 sps:$4 sm:$0xff]  }
  0x86   :  { %3389 = vmatprep.mubr.bf16.mxu1 %v5959_v47 }
  0x87   :  { %3317 = vmatpush1.bf16.msra.mxu0 %v5040_v18  ;;  %v5126_v18 = vld [vmem:[#allocation5 + $0x504] ss:$16 sps:$4 sm:$0xff]  }
  0x88   :  { %3360 = vmatpush1.bf16.msra.mxu1 %v5043_v19  ;;  %3318 = vmatprep.subr.bf16.mxu0 %v5048_v20  ;;  %v5129_v19 = vld [vmem:[#allocation5 + $0x704] ss:$16 sps:$4 sm:$0xff]   ;;  %v5124_v20 = vld [vmem:[#allocation5 + $0x500] ss:$16 sps:$4 sm:$0xff]  }
  0x89   :  { %3361 = vmatprep.subr.bf16.mxu1 %v5051_v21  ;;  %v5127_v21 = vld [vmem:[#allocation5 + $0x700] ss:$16 sps:$4 sm:$0xff]  }
  0x8b   :  { %3319 = vmatpush1.bf16.msra.mxu0 %v5046_v22  ;;  %v90_v22 = vld [vmem:[#allocation2 + $0x20] sm:$0xff] }
  0x8c   :  { %3362 = vmatpush1.bf16.msra.mxu1 %v5049_v23  ;;  %3320 = vmatprep.subr.bf16.mxu0 %v5054_v24  ;;  %v106_v23 = vld [vmem:[#allocation2 + $0xa0] sm:$0xff]  ;;  %v92_v24 = vld [vmem:[#allocation2 + $0x30] sm:$0xff] }
  0x8d   :  { %3363 = vmatprep.subr.bf16.mxu1 %v5057_v25  ;;  %v108_v25 = vld [vmem:[#allocation2 + $0xb0] sm:$0xff] }
  0x8f   :  { %3321 = vmatpush1.bf16.msra.mxu0 %v5052_v26  ;;  %v5132_v26 = vld [vmem:[#allocation5 + $0x8e4] ss:$16 sps:$4 sm:$0xff]  }
  0x90   :  { %3364 = vmatpush1.bf16.msra.mxu1 %v5055_v27  ;;  %3322 = vmatprep.subr.bf16.mxu0 %v5060_v28  ;;  %v5135_v27 = vld [vmem:[#allocation5 + $0xae4] ss:$16 sps:$4 sm:$0xff]   ;;  %v5963_v28 = vpack.c.bf16 %v106_v23, %v90_v22  ;;  %v5196_v22 = vld [vmem:[#allocation5 + $0x980] ss:$16 sps:$4 sm:$0xff]  }
  0x91   :  { %3365 = vmatprep.subr.bf16.mxu1 %v5063_v29  ;;  %v5965_v29 = vpack.c.bf16 %v108_v25, %v92_v24  ;;  %v5199_v23 = vld [vmem:[#allocation5 + $0xb80] ss:$16 sps:$4 sm:$0xff]   ;;  %v5204_v24 = vld [vmem:[#allocation5 + $0x964] ss:$16 sps:$4 sm:$0xff]  }
  0x92   :  { %v5207_v25 = vld [vmem:[#allocation5 + $0xb64] ss:$16 sps:$4 sm:$0xff]  }
  0x93   :  { %3323 = vmatpush1.bf16.msra.mxu0 %v5058_v30  ;;  %v5130_v30 = vld [vmem:[#allocation5 + $0x8e0] ss:$16 sps:$4 sm:$0xff]  }
  0x94   :  { %3366 = vmatpush1.bf16.msra.mxu1 %v5061_v31  ;;  %3324 = vmatprep.subr.bf16.mxu0 %v5066_v32  ;;  %v5133_v31 = vld [vmem:[#allocation5 + $0xae0] ss:$16 sps:$4 sm:$0xff]   ;;  %v5138_v32 = vld [vmem:[#allocation5 + $0x8c4] ss:$16 sps:$4 sm:$0xff]  }
  0x95   :  { %3367 = vmatprep.subr.bf16.mxu1 %v5069_v33  ;;  %v5141_v33 = vld [vmem:[#allocation5 + $0xac4] ss:$16 sps:$4 sm:$0xff]  }
  0x97   :  { %3325 = vmatpush1.bf16.msra.mxu0 %v5064_v34  ;;  %v5136_v34 = vld [vmem:[#allocation5 + $0x8c0] ss:$16 sps:$4 sm:$0xff]  }
  0x98   :  { %3368 = vmatpush1.bf16.msra.mxu1 %v5067_v35  ;;  %3326 = vmatprep.subr.bf16.mxu0 %v5072_v36  ;;  %v5139_v35 = vld [vmem:[#allocation5 + $0xac0] ss:$16 sps:$4 sm:$0xff]   ;;  %v5144_v36 = vld [vmem:[#allocation5 + $0x8a4] ss:$16 sps:$4 sm:$0xff]  }
  0x99   :  { %3369 = vmatprep.subr.bf16.mxu1 %v5075_v37  ;;  %v5147_v37 = vld [vmem:[#allocation5 + $0xaa4] ss:$16 sps:$4 sm:$0xff]  }
  0x9b   :  { %3327 = vmatpush1.bf16.msra.mxu0 %v5070_v38  ;;  %v95_v38 = vld [vmem:[#allocation2 + $0x48] sm:$0xff] }
  0x9c   :  { %3370 = vmatpush1.bf16.msra.mxu1 %v5073_v39  ;;  %3328 = vmatprep.subr.bf16.mxu0 %v5078_v43  ;;  %v111_v39 = vld [vmem:[#allocation2 + $0xc8] sm:$0xff]  ;;  %v5142_v43 = vld [vmem:[#allocation5 + $0x8a0] ss:$16 sps:$4 sm:$0xff]  }
  0x9d   :  { %3371 = vmatprep.subr.bf16.mxu1 %v5081_v44  ;;  %v5969_v40 = vpack.c.bf16 %v111_v39, %v95_v38  ;;  %v5145_v44 = vld [vmem:[#allocation5 + $0xaa0] ss:$16 sps:$4 sm:$0xff]   ;;  %v5222_v38 = vld [vmem:[#allocation5 + $0x904] ss:$16 sps:$4 sm:$0xff]  }
  0x9e   :  { %v5225_v39 = vld [vmem:[#allocation5 + $0xb04] ss:$16 sps:$4 sm:$0xff]  }
  0x9f   :  { %3329 = vmatpush1.bf16.msra.mxu0 %v5076_v48  ;;  %v5150_v48 = vld [vmem:[#allocation5 + $0x884] ss:$16 sps:$4 sm:$0xff]  }
  0xa0   :  { %3372 = vmatpush1.bf16.msra.mxu1 %v5079_v49  ;;  %3330 = vmatprep.subr.bf16.mxu0 %v5084_v50  ;;  %v5153_v49 = vld [vmem:[#allocation5 + $0xa84] ss:$16 sps:$4 sm:$0xff]   ;;  %v5148_v50 = vld [vmem:[#allocation5 + $0x880] ss:$16 sps:$4 sm:$0xff]  }
  0xa1   :  { %3373 = vmatprep.subr.bf16.mxu1 %v5087_v51  ;;  %v5151_v51 = vld [vmem:[#allocation5 + $0xa80] ss:$16 sps:$4 sm:$0xff]  }
  0xa3   :  { %3331 = vmatpush2.bf16.msra.mxu0 %v5082_v52  ;;  %v5156_v52 = vld [vmem:[#allocation5 + $0x864] ss:$16 sps:$4 sm:$0xff]  }
  0xa4   :  { %3374 = vmatpush2.bf16.msra.mxu1 %v5085_v55  ;;  %3332 = vmatprep.subr.bf16.mxu0 %v5090_v56  ;;  %v5159_v55 = vld [vmem:[#allocation5 + $0xa64] ss:$16 sps:$4 sm:$0xff]   ;;  %v5154_v56 = vld [vmem:[#allocation5 + $0x860] ss:$16 sps:$4 sm:$0xff]  }
  0xa5   :  { %3375 = vmatprep.subr.bf16.mxu1 %v5093_v57  ;;  %v5157_v57 = vld [vmem:[#allocation5 + $0xa60] ss:$16 sps:$4 sm:$0xff]  }
  0xa7   :  { %3333 = vmatpush2.bf16.msra.mxu0 %v5088_v58  ;;  %v5162_v58 = vld [vmem:[#allocation5 + $0x844] ss:$16 sps:$4 sm:$0xff]  }
  0xa8   :  { %3376 = vmatpush2.bf16.msra.mxu1 %v5091_v59  ;;  %3334 = vmatprep.subr.bf16.mxu0 %v5096_v60  ;;  %v5165_v59 = vld [vmem:[#allocation5 + $0xa44] ss:$16 sps:$4 sm:$0xff]   ;;  %v5160_v60 = vld [vmem:[#allocation5 + $0x840] ss:$16 sps:$4 sm:$0xff]  }
  0xa9   :  { %3377 = vmatprep.subr.bf16.mxu1 %v5099_v61  ;;  %v5163_v61 = vld [vmem:[#allocation5 + $0xa40] ss:$16 sps:$4 sm:$0xff]  }
  0xab   :  { %3335 = vmatpush2.bf16.msra.mxu0 %v5094_v62  ;;  %v5168_v62 = vld [vmem:[#allocation5 + $0x824] ss:$16 sps:$4 sm:$0xff]  }
  0xac   :  { %3378 = vmatpush2.bf16.msra.mxu1 %v5097_v63  ;;  %3336 = vmatprep.subr.bf16.mxu0 %v5102_v0  ;;  %v5171_v63 = vld [vmem:[#allocation5 + $0xa24] ss:$16 sps:$4 sm:$0xff]   ;;  %v5166_v0 = vld [vmem:[#allocation5 + $0x820] ss:$16 sps:$4 sm:$0xff]  }
  0xad   :  { %3379 = vmatprep.subr.bf16.mxu1 %v5105_v1  ;;  %v5169_v1 = vld [vmem:[#allocation5 + $0xa20] ss:$16 sps:$4 sm:$0xff]  }
  0xaf   :  { %3337 = vmatpush2.bf16.msra.mxu0 %v5100_v2  ;;  %v5174_v2 = vld [vmem:[#allocation5 + $0x804] ss:$16 sps:$4 sm:$0xff]  }
  0xb0   :  { %3380 = vmatpush2.bf16.msra.mxu1 %v5103_v3  ;;  %3338 = vmatprep.subr.bf16.mxu0 %v5108_v4  ;;  %v5177_v3 = vld [vmem:[#allocation5 + $0xa04] ss:$16 sps:$4 sm:$0xff]   ;;  %v5172_v4 = vld [vmem:[#allocation5 + $0x800] ss:$16 sps:$4 sm:$0xff]  }
  0xb1   :  { %3381 = vmatprep.subr.bf16.mxu1 %v5111_v5  ;;  %v5175_v5 = vld [vmem:[#allocation5 + $0xa00] ss:$16 sps:$4 sm:$0xff]  }
  0xb3   :  { %3339 = vmatpush2.bf16.msra.mxu0 %v5106_v6  ;;  %v5180_v6 = vld [vmem:[#allocation5 + $0x9e4] ss:$16 sps:$4 sm:$0xff]  }
  0xb4   :  { %3382 = vmatpush2.bf16.msra.mxu1 %v5109_v7  ;;  %3340 = vmatprep.subr.bf16.mxu0 %v5114_v8  ;;  %v5183_v7 = vld [vmem:[#allocation5 + $0xbe4] ss:$16 sps:$4 sm:$0xff]   ;;  %v5178_v8 = vld [vmem:[#allocation5 + $0x9e0] ss:$16 sps:$4 sm:$0xff]  }
  0xb5   :  { %3383 = vmatprep.subr.bf16.mxu1 %v5117_v9  ;;  %v5181_v9 = vld [vmem:[#allocation5 + $0xbe0] ss:$16 sps:$4 sm:$0xff]  }
  0xb7   :  { %3341 = vmatpush2.bf16.msra.mxu0 %v5112_v10  ;;  %v5186_v10 = vld [vmem:[#allocation5 + $0x9c4] ss:$16 sps:$4 sm:$0xff]  }
  0xb8   :  { %3384 = vmatpush2.bf16.msra.mxu1 %v5115_v11  ;;  %3342 = vmatprep.subr.bf16.mxu0 %v5120_v14  ;;  %v5189_v11 = vld [vmem:[#allocation5 + $0xbc4] ss:$16 sps:$4 sm:$0xff]   ;;  %v5184_v14 = vld [vmem:[#allocation5 + $0x9c0] ss:$16 sps:$4 sm:$0xff]  }
  0xb9   :  { %3385 = vmatprep.subr.bf16.mxu1 %v5123_v15  ;;  %v5187_v15 = vld [vmem:[#allocation5 + $0xbc0] ss:$16 sps:$4 sm:$0xff]  }
  0xbb   :  { %3343 = vmatpush2.bf16.msra.mxu0 %v5118_v16  ;;  %v5192_v16 = vld [vmem:[#allocation5 + $0x9a4] ss:$16 sps:$4 sm:$0xff]  }
  0xbc   :  { %3386 = vmatpush2.bf16.msra.mxu1 %v5121_v17  ;;  %3344 = vmatprep.subr.bf16.mxu0 %v5126_v18  ;;  %v5195_v17 = vld [vmem:[#allocation5 + $0xba4] ss:$16 sps:$4 sm:$0xff]   ;;  %v5190_v18 = vld [vmem:[#allocation5 + $0x9a0] ss:$16 sps:$4 sm:$0xff]  }
  0xbd   :  { %3387 = vmatprep.subr.bf16.mxu1 %v5129_v19  ;;  %v5193_v19 = vld [vmem:[#allocation5 + $0xba0] ss:$16 sps:$4 sm:$0xff]  }
  0xbf   :  { %3345 = vmatpush2.bf16.msra.mxu0 %v5124_v20  ;;  %v5198_v20 = vld [vmem:[#allocation5 + $0x984] ss:$16 sps:$4 sm:$0xff]  }
  0xc0   :  { %3388 = vmatpush2.bf16.msra.mxu1 %v5127_v21  ;;  %3400 = vmatprep.subr.bf16.mxu0 %v5132_v26  ;;  %v5201_v21 = vld [vmem:[#allocation5 + $0xb84] ss:$16 sps:$4 sm:$0xff]   ;;  %v5202_v26 = vld [vmem:[#allocation5 + $0x960] ss:$16 sps:$4 sm:$0xff]  }
  0xc1   :  { %3443 = vmatprep.subr.bf16.mxu1 %v5135_v27  ;;  %v5205_v27 = vld [vmem:[#allocation5 + $0xb60] ss:$16 sps:$4 sm:$0xff]  }
  0xc2   :  { %3347 = vmatmul.mubr.bf16.vlgmr.msra.gmra.mxu0 %v5963_v28 }
  0xc3   :  { %3390 = vmatmul.mubr.bf16.vlgmr.msra.gmra.mxu1 %v5965_v29  ;;  %3401 = vmatpush1.bf16.msra.mxu0 %v5130_v30  ;;  %v5210_v30 = vld [vmem:[#allocation5 + $0x944] ss:$16 sps:$4 sm:$0xff]  }
  0xc4   :  { %3444 = vmatpush1.bf16.msra.mxu1 %v5133_v31  ;;  %3402 = vmatprep.subr.bf16.mxu0 %v5138_v32  ;;  %v5213_v31 = vld [vmem:[#allocation5 + $0xb44] ss:$16 sps:$4 sm:$0xff]   ;;  %v5208_v32 = vld [vmem:[#allocation5 + $0x940] ss:$16 sps:$4 sm:$0xff]  }
  0xc5   :  { %3445 = vmatprep.subr.bf16.mxu1 %v5141_v33  ;;  %3432 = vmatprep.mubr.bf16.mxu0 %v5969_v40  ;;  %v5211_v33 = vld [vmem:[#allocation5 + $0xb40] ss:$16 sps:$4 sm:$0xff]  }
  0xc6   :  { %3475 = vmatprep.mubr.bf16.mxu1 %v5971_v46 }
  0xc7   :  { %3403 = vmatpush1.bf16.msra.mxu0 %v5136_v34  ;;  %v5216_v34 = vld [vmem:[#allocation5 + $0x924] ss:$16 sps:$4 sm:$0xff]  }
  0xc8   :  { %3446 = vmatpush1.bf16.msra.mxu1 %v5139_v35  ;;  %3404 = vmatprep.subr.bf16.mxu0 %v5144_v36  ;;  %v5219_v35 = vld [vmem:[#allocation5 + $0xb24] ss:$16 sps:$4 sm:$0xff]   ;;  %v5214_v36 = vld [vmem:[#allocation5 + $0x920] ss:$16 sps:$4 sm:$0xff]  }
  0xc9   :  { %3447 = vmatprep.subr.bf16.mxu1 %v5147_v37  ;;  %v5217_v37 = vld [vmem:[#allocation5 + $0xb20] ss:$16 sps:$4 sm:$0xff]  }
  0xcb   :  { %3405 = vmatpush1.bf16.msra.mxu0 %v5142_v43  ;;  %v94_v43 = vld [vmem:[#allocation2 + $0x40] sm:$0xff] }
  0xcc   :  { %3448 = vmatpush1.bf16.msra.mxu1 %v5145_v44  ;;  %3406 = vmatprep.subr.bf16.mxu0 %v5150_v48  ;;  %v110_v44 = vld [vmem:[#allocation2 + $0xc0] sm:$0xff]  ;;  %v96_v48 = vld [vmem:[#allocation2 + $0x50] sm:$0xff] }
  0xcd   :  { %3449 = vmatprep.subr.bf16.mxu1 %v5153_v49  ;;  %v112_v49 = vld [vmem:[#allocation2 + $0xd0] sm:$0xff] }
  0xcf   :  { %3407 = vmatpush1.bf16.msra.mxu0 %v5148_v50  ;;  %v5228_v50 = vld [vmem:[#allocation5 + $0xce4] ss:$16 sps:$4 sm:$0xff]  }
  0xd0   :  { %3450 = vmatpush1.bf16.msra.mxu1 %v5151_v51  ;;  %3408 = vmatprep.subr.bf16.mxu0 %v5156_v52  ;;  %v5231_v51 = vld [vmem:[#allocation5 + $0xee4] ss:$16 sps:$4 sm:$0xff]   ;;  %v99_v52 = vld [vmem:[#allocation2 + $0x68] sm:$0xff] }
  0xd1   :  { %3451 = vmatprep.subr.bf16.mxu1 %v5159_v55  ;;  %v5226_v55 = vld [vmem:[#allocation5 + $0xce0] ss:$16 sps:$4 sm:$0xff]  }
  0xd3   :  { %3409 = vmatpush1.bf16.msra.mxu0 %v5154_v56  ;;  %v115_v56 = vld [vmem:[#allocation2 + $0xe8] sm:$0xff] }
  0xd4   :  { %3452 = vmatpush1.bf16.msra.mxu1 %v5157_v57  ;;  %3410 = vmatprep.subr.bf16.mxu0 %v5162_v58  ;;  %v101_v57 = vld [vmem:[#allocation2 + $0x78] sm:$0xff]  ;;  %v5975_v58 = vpack.c.bf16 %v110_v44, %v94_v43  ;;  %v5286_v43 = vld [vmem:[#allocation5 + $0xda0] ss:$16 sps:$4 sm:$0xff]  }
  0xd5   :  { %3453 = vmatprep.subr.bf16.mxu1 %v5165_v59  ;;  %v5977_v59 = vpack.c.bf16 %v112_v49, %v96_v48  ;;  %v5289_v44 = vld [vmem:[#allocation5 + $0xfa0] ss:$16 sps:$4 sm:$0xff]   ;;  %v5294_v48 = vld [vmem:[#allocation5 + $0xd84] ss:$16 sps:$4 sm:$0xff]  }
  0xd6   :  { %v5297_v49 = vld [vmem:[#allocation5 + $0xf84] ss:$16 sps:$4 sm:$0xff]  }
  0xd7   :  { %3411 = vmatpush1.bf16.msra.mxu0 %v5160_v60  ;;  %v117_v60 = vld [vmem:[#allocation2 + $0xf8] sm:$0xff] }
  0xd8   :  { %3454 = vmatpush1.bf16.msra.mxu1 %v5163_v61  ;;  %3412 = vmatprep.subr.bf16.mxu0 %v5168_v62  ;;  %v5229_v61 = vld [vmem:[#allocation5 + $0xee0] ss:$16 sps:$4 sm:$0xff]   ;;  %v5234_v62 = vld [vmem:[#allocation5 + $0xcc4] ss:$16 sps:$4 sm:$0xff]  }
  0xd9   :  { %3455 = vmatprep.subr.bf16.mxu1 %v5171_v63  ;;  %v5237_v63 = vld [vmem:[#allocation5 + $0xec4] ss:$16 sps:$4 sm:$0xff]  }
  0xdb   :  { %3413 = vmatpush1.bf16.msra.mxu0 %v5166_v0  ;;  %v5979_v0 = vpack.c.bf16 %v115_v56, %v99_v52  ;;  %v5300_v52 = vld [vmem:[#allocation5 + $0xd64] ss:$16 sps:$4 sm:$0xff]   ;;  %v5298_v56 = vld [vmem:[#allocation5 + $0xd60] ss:$16 sps:$4 sm:$0xff]  }
  0xdc   :  { %3456 = vmatpush1.bf16.msra.mxu1 %v5169_v1  ;;  %3414 = vmatprep.subr.bf16.mxu0 %v5174_v2  ;;  %v5981_v1 = vpack.c.bf16 %v117_v60, %v101_v57  ;;  %v5232_v2 = vld [vmem:[#allocation5 + $0xcc0] ss:$16 sps:$4 sm:$0xff]   ;;  %v5306_v60 = vld [vmem:[#allocation5 + $0xd44] ss:$16 sps:$4 sm:$0xff]  }
  0xdd   :  { %3457 = vmatprep.subr.bf16.mxu1 %v5177_v3  ;;  %v5235_v3 = vld [vmem:[#allocation5 + $0xec0] ss:$16 sps:$4 sm:$0xff]  }
  0xde   :  { %v5301_v57 = vld [vmem:[#allocation5 + $0xf60] ss:$16 sps:$4 sm:$0xff]  }
  0xdf   :  { %3415 = vmatpush1.bf16.msra.mxu0 %v5172_v4  ;;  %v5240_v4 = vld [vmem:[#allocation5 + $0xca4] ss:$16 sps:$4 sm:$0xff]  }
  0xe0   :  { %3458 = vmatpush1.bf16.msra.mxu1 %v5175_v5  ;;  %3416 = vmatprep.subr.bf16.mxu0 %v5180_v6  ;;  %v5243_v5 = vld [vmem:[#allocation5 + $0xea4] ss:$16 sps:$4 sm:$0xff]   ;;  %v5238_v6 = vld [vmem:[#allocation5 + $0xca0] ss:$16 sps:$4 sm:$0xff]  }
  0xe1   :  { %3459 = vmatprep.subr.bf16.mxu1 %v5183_v7  ;;  %v5241_v7 = vld [vmem:[#allocation5 + $0xea0] ss:$16 sps:$4 sm:$0xff]  }
  0xe3   :  { %3417 = vmatpush2.bf16.msra.mxu0 %v5178_v8  ;;  %v5246_v8 = vld [vmem:[#allocation5 + $0xc84] ss:$16 sps:$4 sm:$0xff]  }
  0xe4   :  { %3460 = vmatpush2.bf16.msra.mxu1 %v5181_v9  ;;  %3418 = vmatprep.subr.bf16.mxu0 %v5186_v10  ;;  %v5249_v9 = vld [vmem:[#allocation5 + $0xe84] ss:$16 sps:$4 sm:$0xff]   ;;  %v5244_v10 = vld [vmem:[#allocation5 + $0xc80] ss:$16 sps:$4 sm:$0xff]  }
  0xe5   :  { %3461 = vmatprep.subr.bf16.mxu1 %v5189_v11  ;;  %v5247_v11 = vld [vmem:[#allocation5 + $0xe80] ss:$16 sps:$4 sm:$0xff]  }
  0xe7   :  { %3419 = vmatpush2.bf16.msra.mxu0 %v5184_v14  ;;  %v5252_v14 = vld [vmem:[#allocation5 + $0xc64] ss:$16 sps:$4 sm:$0xff]  }
  0xe8   :  { %3462 = vmatpush2.bf16.msra.mxu1 %v5187_v15  ;;  %3420 = vmatprep.subr.bf16.mxu0 %v5192_v16  ;;  %v5255_v15 = vld [vmem:[#allocation5 + $0xe64] ss:$16 sps:$4 sm:$0xff]   ;;  %v5250_v16 = vld [vmem:[#allocation5 + $0xc60] ss:$16 sps:$4 sm:$0xff]  }
  0xe9   :  { %3463 = vmatprep.subr.bf16.mxu1 %v5195_v17  ;;  %v5253_v17 = vld [vmem:[#allocation5 + $0xe60] ss:$16 sps:$4 sm:$0xff]  }
  0xeb   :  { %3421 = vmatpush2.bf16.msra.mxu0 %v5190_v18  ;;  %v5258_v18 = vld [vmem:[#allocation5 + $0xc44] ss:$16 sps:$4 sm:$0xff]  }
  0xec   :  { %3464 = vmatpush2.bf16.msra.mxu1 %v5193_v19  ;;  %3422 = vmatprep.subr.bf16.mxu0 %v5198_v20  ;;  %v5261_v19 = vld [vmem:[#allocation5 + $0xe44] ss:$16 sps:$4 sm:$0xff]   ;;  %v5256_v20 = vld [vmem:[#allocation5 + $0xc40] ss:$16 sps:$4 sm:$0xff]  }
  0xed   :  { %3465 = vmatprep.subr.bf16.mxu1 %v5201_v21  ;;  %v5259_v21 = vld [vmem:[#allocation5 + $0xe40] ss:$16 sps:$4 sm:$0xff]  }
  0xef   :  { %3423 = vmatpush2.bf16.msra.mxu0 %v5196_v22  ;;  %v5264_v22 = vld [vmem:[#allocation5 + $0xc24] ss:$16 sps:$4 sm:$0xff]  }
  0xf0   :  { %3466 = vmatpush2.bf16.msra.mxu1 %v5199_v23  ;;  %3424 = vmatprep.subr.bf16.mxu0 %v5204_v24  ;;  %v5267_v23 = vld [vmem:[#allocation5 + $0xe24] ss:$16 sps:$4 sm:$0xff]   ;;  %v5262_v24 = vld [vmem:[#allocation5 + $0xc20] ss:$16 sps:$4 sm:$0xff]  }
  0xf1   :  { %3467 = vmatprep.subr.bf16.mxu1 %v5207_v25  ;;  %v5265_v25 = vld [vmem:[#allocation5 + $0xe20] ss:$16 sps:$4 sm:$0xff]  }
  0xf3   :  { %3425 = vmatpush2.bf16.msra.mxu0 %v5202_v26  ;;  %v5270_v26 = vld [vmem:[#allocation5 + $0xc04] ss:$16 sps:$4 sm:$0xff]  }
  0xf4   :  { %3468 = vmatpush2.bf16.msra.mxu1 %v5205_v27  ;;  %3426 = vmatprep.subr.bf16.mxu0 %v5210_v30  ;;  %v5273_v27 = vld [vmem:[#allocation5 + $0xe04] ss:$16 sps:$4 sm:$0xff]   ;;  %v5268_v30 = vld [vmem:[#allocation5 + $0xc00] ss:$16 sps:$4 sm:$0xff]  }
  0xf5   :  { %3469 = vmatprep.subr.bf16.mxu1 %v5213_v31  ;;  %v5271_v31 = vld [vmem:[#allocation5 + $0xe00] ss:$16 sps:$4 sm:$0xff]  }
  0xf7   :  { %3427 = vmatpush2.bf16.msra.mxu0 %v5208_v32  ;;  %v5276_v32 = vld [vmem:[#allocation5 + $0xde4] ss:$16 sps:$4 sm:$0xff]  }
  0xf8   :  { %3470 = vmatpush2.bf16.msra.mxu1 %v5211_v33  ;;  %3428 = vmatprep.subr.bf16.mxu0 %v5216_v34  ;;  %v5279_v33 = vld [vmem:[#allocation5 + $0xfe4] ss:$16 sps:$4 sm:$0xff]   ;;  %v5274_v34 = vld [vmem:[#allocation5 + $0xde0] ss:$16 sps:$4 sm:$0xff]  }
  0xf9   :  { %3471 = vmatprep.subr.bf16.mxu1 %v5219_v35  ;;  %v5277_v35 = vld [vmem:[#allocation5 + $0xfe0] ss:$16 sps:$4 sm:$0xff]  }
  0xfb   :  { %3429 = vmatpush2.bf16.msra.mxu0 %v5214_v36  ;;  %v5282_v36 = vld [vmem:[#allocation5 + $0xdc4] ss:$16 sps:$4 sm:$0xff]  }
  0xfc   :  { %3472 = vmatpush2.bf16.msra.mxu1 %v5217_v37  ;;  %3430 = vmatprep.subr.bf16.mxu0 %v5222_v38  ;;  %v5285_v37 = vld [vmem:[#allocation5 + $0xfc4] ss:$16 sps:$4 sm:$0xff]   ;;  %v5280_v38 = vld [vmem:[#allocation5 + $0xdc0] ss:$16 sps:$4 sm:$0xff]  }
  0xfd   :  { %3473 = vmatprep.subr.bf16.mxu1 %v5225_v39  ;;  %v5283_v39 = vld [vmem:[#allocation5 + $0xfc0] ss:$16 sps:$4 sm:$0xff]  }
  0xff   :  { %3431 = vmatpush2.bf16.msra.mxu0 %v5220_v41  ;;  %v5288_v41 = vld [vmem:[#allocation5 + $0xda4] ss:$16 sps:$4 sm:$0xff]  }
 0x100   :  { %3474 = vmatpush2.bf16.msra.mxu1 %v5223_v42  ;;  %3486 = vmatprep.subr.bf16.mxu0 %v5228_v50  ;;  %v5291_v42 = vld [vmem:[#allocation5 + $0xfa4] ss:$16 sps:$4 sm:$0xff]   ;;  %v5292_v50 = vld [vmem:[#allocation5 + $0xd80] ss:$16 sps:$4 sm:$0xff]  }
 0x101   :  { %3529 = vmatprep.subr.bf16.mxu1 %v5231_v51  ;;  %v5295_v51 = vld [vmem:[#allocation5 + $0xf80] ss:$16 sps:$4 sm:$0xff]  }
 0x102   :  { %3433 = vmatmul.mubr.bf16.vlgmr.msra.gmra.mxu0 %v5975_v58 }
 0x103   :  { %3476 = vmatmul.mubr.bf16.vlgmr.msra.gmra.mxu1 %v5977_v59  ;;  %3487 = vmatpush1.bf16.msra.mxu0 %v5226_v55  ;;  %v5303_v55 = vld [vmem:[#allocation5 + $0xf64] ss:$16 sps:$4 sm:$0xff]  }
 0x104   :  { %3530 = vmatpush1.bf16.msra.mxu1 %v5229_v61  ;;  %3488 = vmatprep.subr.bf16.mxu0 %v5234_v62  ;;  %v5309_v61 = vld [vmem:[#allocation5 + $0xf44] ss:$16 sps:$4 sm:$0xff]   ;;  %v5304_v62 = vld [vmem:[#allocation5 + $0xd40] ss:$16 sps:$4 sm:$0xff]  }
 0x105   :  { %3531 = vmatprep.subr.bf16.mxu1 %v5237_v63  ;;  %3518 = vmatprep.mubr.bf16.mxu0 %v5979_v0  ;;  %v5307_v63 = vld [vmem:[#allocation5 + $0xf40] ss:$16 sps:$4 sm:$0xff]  }
 0x106   :  { %3561 = vmatprep.mubr.bf16.mxu1 %v5981_v1 }
 0x107   :  { %3489 = vmatpush1.bf16.msra.mxu0 %v5232_v2  ;;  %v5312_v2 = vld [vmem:[#allocation5 + $0xd24] ss:$16 sps:$4 sm:$0xff]  }
 0x108   :  { %3532 = vmatpush1.bf16.msra.mxu1 %v5235_v3  ;;  %3490 = vmatprep.subr.bf16.mxu0 %v5240_v4  ;;  %v5315_v3 = vld [vmem:[#allocation5 + $0xf24] ss:$16 sps:$4 sm:$0xff]   ;;  %v5310_v4 = vld [vmem:[#allocation5 + $0xd20] ss:$16 sps:$4 sm:$0xff]  }
 0x109   :  { %3533 = vmatprep.subr.bf16.mxu1 %v5243_v5  ;;  %v5313_v5 = vld [vmem:[#allocation5 + $0xf20] ss:$16 sps:$4 sm:$0xff]  }
 0x10b   :  { %3491 = vmatpush1.bf16.msra.mxu0 %v5238_v6  ;;  %v5318_v6 = vld [vmem:[#allocation5 + $0xd04] ss:$16 sps:$4 sm:$0xff]  }
 0x10c   :  { %3534 = vmatpush1.bf16.msra.mxu1 %v5241_v7  ;;  %3492 = vmatprep.subr.bf16.mxu0 %v5246_v8  ;;  %v5321_v7 = vld [vmem:[#allocation5 + $0xf04] ss:$16 sps:$4 sm:$0xff]   ;;  %v5316_v8 = vld [vmem:[#allocation5 + $0xd00] ss:$16 sps:$4 sm:$0xff]  }
 0x10d   :  { %3535 = vmatprep.subr.bf16.mxu1 %v5249_v9  ;;  %v5319_v9 = vld [vmem:[#allocation5 + $0xf00] ss:$16 sps:$4 sm:$0xff]  }
 0x10f   :  { %3493 = vmatpush1.bf16.msra.mxu0 %v5244_v10  ;;  %v98_v10 = vld [vmem:[#allocation2 + $0x60] sm:$0xff] }
 0x110   :  { %3536 = vmatpush1.bf16.msra.mxu1 %v5247_v11  ;;  %3494 = vmatprep.subr.bf16.mxu0 %v5252_v14  ;;  %v114_v11 = vld [vmem:[#allocation2 + $0xe0] sm:$0xff]  ;;  %v100_v14 = vld [vmem:[#allocation2 + $0x70] sm:$0xff] }
 0x111   :  { %3537 = vmatprep.subr.bf16.mxu1 %v5255_v15  ;;  %v116_v15 = vld [vmem:[#allocation2 + $0xf0] sm:$0xff] }
 0x113   :  { %3495 = vmatpush1.bf16.msra.mxu0 %v5250_v16  ;;  %v5324_v16 = vld [vmem:[#allocation5 + $0xec] ss:$16 sps:$4 sm:$0xff]  }
 0x114   :  { %3538 = vmatpush1.bf16.msra.mxu1 %v5253_v17  ;;  %3496 = vmatprep.subr.bf16.mxu0 %v5258_v18  ;;  %v5327_v17 = vld [vmem:[#allocation5 + $0x2ec] ss:$16 sps:$4 sm:$0xff]   ;;  %v5987_v18 = vpack.c.bf16 %v114_v11, %v98_v10  ;;  %v5388_v10 = vld [vmem:[#allocation5 + $0x188] ss:$16 sps:$4 sm:$0xff]  }
 0x115   :  { %3539 = vmatprep.subr.bf16.mxu1 %v5261_v19  ;;  %v5989_v19 = vpack.c.bf16 %v116_v15, %v100_v14  ;;  %v5391_v11 = vld [vmem:[#allocation5 + $0x388] ss:$16 sps:$4 sm:$0xff]   ;;  %v5396_v14 = vld [vmem:[#allocation5 + $0x16c] ss:$16 sps:$4 sm:$0xff]  }
 0x116   :  { %v5399_v15 = vld [vmem:[#allocation5 + $0x36c] ss:$16 sps:$4 sm:$0xff]  }
 0x117   :  { %3497 = vmatpush1.bf16.msra.mxu0 %v5256_v20  ;;  %v5322_v20 = vld [vmem:[#allocation5 + $0xe8] ss:$16 sps:$4 sm:$0xff]  }
 0x118   :  { %3540 = vmatpush1.bf16.msra.mxu1 %v5259_v21  ;;  %3498 = vmatprep.subr.bf16.mxu0 %v5264_v22  ;;  %v5325_v21 = vld [vmem:[#allocation5 + $0x2e8] ss:$16 sps:$4 sm:$0xff]   ;;  %v5330_v22 = vld [vmem:[#allocation5 + $0xcc] ss:$16 sps:$4 sm:$0xff]  }
 0x119   :  { %3541 = vmatprep.subr.bf16.mxu1 %v5267_v23  ;;  %v5333_v23 = vld [vmem:[#allocation5 + $0x2cc] ss:$16 sps:$4 sm:$0xff]  }
 0x11b   :  { %3499 = vmatpush1.bf16.msra.mxu0 %v5262_v24  ;;  %v5328_v24 = vld [vmem:[#allocation5 + $0xc8] ss:$16 sps:$4 sm:$0xff]  }
 0x11c   :  { %3542 = vmatpush1.bf16.msra.mxu1 %v5265_v25  ;;  %3500 = vmatprep.subr.bf16.mxu0 %v5270_v26  ;;  %v5331_v25 = vld [vmem:[#allocation5 + $0x2c8] ss:$16 sps:$4 sm:$0xff]   ;;  %v5336_v26 = vld [vmem:[#allocation5 + $0xac] ss:$16 sps:$4 sm:$0xff]  }
 0x11d   :  { %3543 = vmatprep.subr.bf16.mxu1 %v5273_v27  ;;  %v5339_v27 = vld [vmem:[#allocation5 + $0x2ac] ss:$16 sps:$4 sm:$0xff]  }
 0x11f   :  { %3501 = vmatpush1.bf16.msra.mxu0 %v5268_v30  ;;  %v5334_v30 = vld [vmem:[#allocation5 + $0xa8] ss:$16 sps:$4 sm:$0xff]  }
 0x120   :  { %3544 = vmatpush1.bf16.msra.mxu1 %v5271_v31  ;;  %3502 = vmatprep.subr.bf16.mxu0 %v5276_v32  ;;  %v5337_v31 = vld [vmem:[#allocation5 + $0x2a8] ss:$16 sps:$4 sm:$0xff]   ;;  %v5342_v32 = vld [vmem:[#allocation5 + $0x8c] ss:$16 sps:$4 sm:$0xff]  }
 0x121   :  { %3545 = vmatprep.subr.bf16.mxu1 %v5279_v33  ;;  %v5345_v33 = vld [vmem:[#allocation5 + $0x28c] ss:$16 sps:$4 sm:$0xff]  }
 0x123   :  { %3503 = vmatpush2.bf16.msra.mxu0 %v5274_v34  ;;  %v5340_v34 = vld [vmem:[#allocation5 + $0x88] ss:$16 sps:$4 sm:$0xff]  }
 0x124   :  { %3546 = vmatpush2.bf16.msra.mxu1 %v5277_v35  ;;  %3504 = vmatprep.subr.bf16.mxu0 %v5282_v36  ;;  %v5343_v35 = vld [vmem:[#allocation5 + $0x288] ss:$16 sps:$4 sm:$0xff]   ;;  %v5348_v36 = vld [vmem:[#allocation5 + $0x6c] ss:$16 sps:$4 sm:$0xff]  }
 0x125   :  { %3547 = vmatprep.subr.bf16.mxu1 %v5285_v37  ;;  %v5351_v37 = vld [vmem:[#allocation5 + $0x26c] ss:$16 sps:$4 sm:$0xff]  }
 0x127   :  { %3505 = vmatpush2.bf16.msra.mxu0 %v5280_v38  ;;  %v5346_v38 = vld [vmem:[#allocation5 + $0x68] ss:$16 sps:$4 sm:$0xff]  }
 0x128   :  { %3548 = vmatpush2.bf16.msra.mxu1 %v5283_v39  ;;  %3506 = vmatprep.subr.bf16.mxu0 %v5288_v41  ;;  %v5357_v39 = vld [vmem:[#allocation5 + $0x24c] ss:$16 sps:$4 sm:$0xff]   ;;  %v5352_v41 = vld [vmem:[#allocation5 + $0x48] ss:$16 sps:$4 sm:$0xff]  }
 0x129   :  { %3549 = vmatprep.subr.bf16.mxu1 %v5291_v42  ;;  %v5355_v42 = vld [vmem:[#allocation5 + $0x248] ss:$16 sps:$4 sm:$0xff]  }
 0x12b   :  { %3507 = vmatpush2.bf16.msra.mxu0 %v5286_v43  ;;  %v5360_v43 = vld [vmem:[#allocation5 + $0x2c] ss:$16 sps:$4 sm:$0xff]  }
 0x12c   :  { %3550 = vmatpush2.bf16.msra.mxu1 %v5289_v44  ;;  %3508 = vmatprep.subr.bf16.mxu0 %v5294_v48  ;;  %v5363_v44 = vld [vmem:[#allocation5 + $0x22c] ss:$16 sps:$4 sm:$0xff]   ;;  %v5358_v48 = vld [vmem:[#allocation5 + $0x28] ss:$16 sps:$4 sm:$0xff]  }
 0x12d   :  { %3551 = vmatprep.subr.bf16.mxu1 %v5297_v49  ;;  %v5361_v49 = vld [vmem:[#allocation5 + $0x228] ss:$16 sps:$4 sm:$0xff]  }
 0x12f   :  { %3509 = vmatpush2.bf16.msra.mxu0 %v5292_v50  ;;  %v5366_v50 = vld [vmem:[#allocation5 + $0xc] ss:$16 sps:$4 sm:$0xff]  }
 0x130   :  { %3552 = vmatpush2.bf16.msra.mxu1 %v5295_v51  ;;  %3510 = vmatprep.subr.bf16.mxu0 %v5300_v52  ;;  %v5369_v51 = vld [vmem:[#allocation5 + $0x20c] ss:$16 sps:$4 sm:$0xff]   ;;  %v5364_v52 = vld [vmem:[#allocation5 + $0x8] ss:$16 sps:$4 sm:$0xff]  }
 0x131   :  { %3553 = vmatprep.subr.bf16.mxu1 %v5303_v55  ;;  %v5367_v55 = vld [vmem:[#allocation5 + $0x208] ss:$16 sps:$4 sm:$0xff]  }
 0x133   :  { %3511 = vmatpush2.bf16.msra.mxu0 %v5298_v56  ;;  %v5372_v56 = vld [vmem:[#allocation5 + $0x1ec] ss:$16 sps:$4 sm:$0xff]  }
 0x134   :  { %3554 = vmatpush2.bf16.msra.mxu1 %v5301_v57  ;;  %3512 = vmatprep.subr.bf16.mxu0 %v5306_v60  ;;  %v5375_v57 = vld [vmem:[#allocation5 + $0x3ec] ss:$16 sps:$4 sm:$0xff]   ;;  %v5370_v60 = vld [vmem:[#allocation5 + $0x1e8] ss:$16 sps:$4 sm:$0xff]  }
 0x135   :  { %3555 = vmatprep.subr.bf16.mxu1 %v5309_v61  ;;  %v5373_v61 = vld [vmem:[#allocation5 + $0x3e8] ss:$16 sps:$4 sm:$0xff]  }
 0x137   :  { %3513 = vmatpush2.bf16.msra.mxu0 %v5304_v62  ;;  %v5378_v62 = vld [vmem:[#allocation5 + $0x1cc] ss:$16 sps:$4 sm:$0xff]  }
 0x138   :  { %3556 = vmatpush2.bf16.msra.mxu1 %v5307_v63  ;;  %3514 = vmatprep.subr.bf16.mxu0 %v5312_v2  ;;  %v5381_v63 = vld [vmem:[#allocation5 + $0x3cc] ss:$16 sps:$4 sm:$0xff]   ;;  %v5376_v2 = vld [vmem:[#allocation5 + $0x1c8] ss:$16 sps:$4 sm:$0xff]  }
 0x139   :  { %3557 = vmatprep.subr.bf16.mxu1 %v5315_v3  ;;  %v5379_v3 = vld [vmem:[#allocation5 + $0x3c8] ss:$16 sps:$4 sm:$0xff]  }
 0x13b   :  { %3515 = vmatpush2.bf16.msra.mxu0 %v5310_v4  ;;  %v5384_v4 = vld [vmem:[#allocation5 + $0x1ac] ss:$16 sps:$4 sm:$0xff]  }
 0x13c   :  { %3558 = vmatpush2.bf16.msra.mxu1 %v5313_v5  ;;  %3516 = vmatprep.subr.bf16.mxu0 %v5318_v6  ;;  %v5387_v5 = vld [vmem:[#allocation5 + $0x3ac] ss:$16 sps:$4 sm:$0xff]   ;;  %v5382_v6 = vld [vmem:[#allocation5 + $0x1a8] ss:$16 sps:$4 sm:$0xff]  }
 0x13d   :  { %3559 = vmatprep.subr.bf16.mxu1 %v5321_v7  ;;  %v5385_v7 = vld [vmem:[#allocation5 + $0x3a8] ss:$16 sps:$4 sm:$0xff]  }
 0x13f   :  { %3517 = vmatpush2.bf16.msra.mxu0 %v5316_v8  ;;  %v5390_v8 = vld [vmem:[#allocation5 + $0x18c] ss:$16 sps:$4 sm:$0xff]  }
 0x140   :  { %3560 = vmatpush2.bf16.msra.mxu1 %v5319_v9  ;;  %3572 = vmatprep.subr.bf16.mxu0 %v5324_v16  ;;  %v5393_v9 = vld [vmem:[#allocation5 + $0x38c] ss:$16 sps:$4 sm:$0xff]   ;;  %v5394_v16 = vld [vmem:[#allocation5 + $0x168] ss:$16 sps:$4 sm:$0xff]  }
 0x141   :  { %3615 = vmatprep.subr.bf16.mxu1 %v5327_v17  ;;  %v5397_v17 = vld [vmem:[#allocation5 + $0x368] ss:$16 sps:$4 sm:$0xff]  }
 0x142   :  { %3519 = vmatmul.mubr.bf16.vlgmr.msra.gmra.mxu0 %v5987_v18 }
 0x143   :  { %3562 = vmatmul.mubr.bf16.vlgmr.msra.gmra.mxu1 %v5989_v19  ;;  %3573 = vmatpush1.bf16.msra.mxu0 %v5322_v20  ;;  %v5402_v20 = vld [vmem:[#allocation5 + $0x14c] ss:$16 sps:$4 sm:$0xff]  }
 0x144   :  { %3616 = vmatpush1.bf16.msra.mxu1 %v5325_v21  ;;  %3574 = vmatprep.subr.bf16.mxu0 %v5330_v22  ;;  %v5405_v21 = vld [vmem:[#allocation5 + $0x34c] ss:$16 sps:$4 sm:$0xff]   ;;  %v5400_v22 = vld [vmem:[#allocation5 + $0x148] ss:$16 sps:$4 sm:$0xff]  }
 0x145   :  { %3617 = vmatprep.subr.bf16.mxu1 %v5333_v23  ;;  %3604 = vmatprep.mubr.bf16.mxu0 %v5945_v53  ;;  %v5349_v53 = vld [vmem:[#allocation5 + $0x268] ss:$16 sps:$4 sm:$0xff]  }
 0x146   :  { %3647 = vmatprep.mubr.bf16.mxu1 %v5947_v54  ;;  %v5354_v54 = vld [vmem:[#allocation5 + $0x4c] ss:$16 sps:$4 sm:$0xff]   ;;  %v5403_v23 = vld [vmem:[#allocation5 + $0x348] ss:$16 sps:$4 sm:$0xff]  }
 0x147   :  { %3575 = vmatpush1.bf16.msra.mxu0 %v5328_v24  ;;  %v5408_v24 = vld [vmem:[#allocation5 + $0x12c] ss:$16 sps:$4 sm:$0xff]  }
 0x148   :  { %3618 = vmatpush1.bf16.msra.mxu1 %v5331_v25  ;;  %3576 = vmatprep.subr.bf16.mxu0 %v5336_v26  ;;  %v5411_v25 = vld [vmem:[#allocation5 + $0x32c] ss:$16 sps:$4 sm:$0xff]   ;;  %v5406_v26 = vld [vmem:[#allocation5 + $0x128] ss:$16 sps:$4 sm:$0xff]  }
 0x149   :  { %3619 = vmatprep.subr.bf16.mxu1 %v5339_v27  ;;  %v5409_v27 = vld [vmem:[#allocation5 + $0x328] ss:$16 sps:$4 sm:$0xff]  }
 0x14b   :  { %3577 = vmatpush1.bf16.msra.mxu0 %v5334_v30  ;;  %v5414_v30 = vld [vmem:[#allocation5 + $0x10c] ss:$16 sps:$4 sm:$0xff]  }
 0x14c   :  { %3620 = vmatpush1.bf16.msra.mxu1 %v5337_v31  ;;  %3578 = vmatprep.subr.bf16.mxu0 %v5342_v32  ;;  %v5417_v31 = vld [vmem:[#allocation5 + $0x30c] ss:$16 sps:$4 sm:$0xff]   ;;  %v5412_v32 = vld [vmem:[#allocation5 + $0x108] ss:$16 sps:$4 sm:$0xff]  }
 0x14d   :  { %3621 = vmatprep.subr.bf16.mxu1 %v5345_v33  ;;  %v5415_v33 = vld [vmem:[#allocation5 + $0x308] ss:$16 sps:$4 sm:$0xff]  }
 0x14f   :  { %3579 = vmatpush1.bf16.msra.mxu0 %v5340_v34  ;;  %v5420_v34 = vld [vmem:[#allocation5 + $0x4ec] ss:$16 sps:$4 sm:$0xff]  }
 0x150   :  { %3622 = vmatpush1.bf16.msra.mxu1 %v5343_v35  ;;  %3580 = vmatprep.subr.bf16.mxu0 %v5348_v36  ;;  %v5423_v35 = vld [vmem:[#allocation5 + $0x6ec] ss:$16 sps:$4 sm:$0xff]   ;;  %v5418_v36 = vld [vmem:[#allocation5 + $0x4e8] ss:$16 sps:$4 sm:$0xff]  }
 0x151   :  { %3623 = vmatprep.subr.bf16.mxu1 %v5351_v37  ;;  %v5421_v37 = vld [vmem:[#allocation5 + $0x6e8] ss:$16 sps:$4 sm:$0xff]  }
 0x153   :  { %3581 = vmatpush1.bf16.msra.mxu0 %v5346_v38  ;;  %v5426_v38 = vld [vmem:[#allocation5 + $0x4cc] ss:$16 sps:$4 sm:$0xff]  }
 0x154   :  { %3624 = vmatpush1.bf16.msra.mxu1 %v5349_v53  ;;  %3582 = vmatprep.subr.bf16.mxu0 %v5354_v54  ;;  %v5429_v53 = vld [vmem:[#allocation5 + $0x6cc] ss:$16 sps:$4 sm:$0xff]   ;;  %v5424_v54 = vld [vmem:[#allocation5 + $0x4c8] ss:$16 sps:$4 sm:$0xff]  }
 0x155   :  { %3625 = vmatprep.subr.bf16.mxu1 %v5357_v39  ;;  %v5427_v39 = vld [vmem:[#allocation5 + $0x6c8] ss:$16 sps:$4 sm:$0xff]  }
 0x157   :  { %3583 = vmatpush1.bf16.msra.mxu0 %v5352_v41  ;;  %v5432_v41 = vld [vmem:[#allocation5 + $0x4ac] ss:$16 sps:$4 sm:$0xff]  }
 0x158   :  { %3626 = vmatpush1.bf16.msra.mxu1 %v5355_v42  ;;  %3584 = vmatprep.subr.bf16.mxu0 %v5360_v43  ;;  %v5435_v42 = vld [vmem:[#allocation5 + $0x6ac] ss:$16 sps:$4 sm:$0xff]   ;;  %v5430_v43 = vld [vmem:[#allocation5 + $0x4a8] ss:$16 sps:$4 sm:$0xff]  }
 0x159   :  { %3627 = vmatprep.subr.bf16.mxu1 %v5363_v44  ;;  %v5433_v44 = vld [vmem:[#allocation5 + $0x6a8] ss:$16 sps:$4 sm:$0xff]  }
 0x15b   :  { %3585 = vmatpush1.bf16.msra.mxu0 %v5358_v48  ;;  %v5438_v48 = vld [vmem:[#allocation5 + $0x48c] ss:$16 sps:$4 sm:$0xff]  }
 0x15c   :  { %3628 = vmatpush1.bf16.msra.mxu1 %v5361_v49  ;;  %3586 = vmatprep.subr.bf16.mxu0 %v5366_v50  ;;  %v5441_v49 = vld [vmem:[#allocation5 + $0x68c] ss:$16 sps:$4 sm:$0xff]  }
 0x15d   :  { %3629 = vmatprep.subr.bf16.mxu1 %v5369_v51  ;;  %v5444_v50 = vld [vmem:[#allocation5 + $0x46c] ss:$16 sps:$4 sm:$0xff]  }
 0x15e   :  { %v5447_v51 = vld [vmem:[#allocation5 + $0x66c] ss:$16 sps:$4 sm:$0xff]  }
 0x15f   :  { %3587 = vmatpush1.bf16.msra.mxu0 %v5364_v52  ;;  %v5442_v52 = vld [vmem:[#allocation5 + $0x468] ss:$16 sps:$4 sm:$0xff]  }
 0x160   :  { %3630 = vmatpush1.bf16.msra.mxu1 %v5367_v55  ;;  %3588 = vmatprep.subr.bf16.mxu0 %v5372_v56  ;;  %v5445_v55 = vld [vmem:[#allocation5 + $0x668] ss:$16 sps:$4 sm:$0xff]   ;;  %v5450_v56 = vld [vmem:[#allocation5 + $0x44c] ss:$16 sps:$4 sm:$0xff]  }
 0x161   :  { %3631 = vmatprep.subr.bf16.mxu1 %v5375_v57  ;;  %v5451_v57 = vld [vmem:[#allocation5 + $0x648] ss:$16 sps:$4 sm:$0xff]  }
 0x163   :  { %3589 = vmatpush2.bf16.msra.mxu0 %v5370_v60  ;;  %v5456_v60 = vld [vmem:[#allocation5 + $0x42c] ss:$16 sps:$4 sm:$0xff]  }
 0x164   :  { %3632 = vmatpush2.bf16.msra.mxu1 %v5373_v61  ;;  %3590 = vmatprep.subr.bf16.mxu0 %v5378_v62  ;;  %v5459_v61 = vld [vmem:[#allocation5 + $0x62c] ss:$16 sps:$4 sm:$0xff]   ;;  %v5454_v62 = vld [vmem:[#allocation5 + $0x428] ss:$16 sps:$4 sm:$0xff]  }
 0x165   :  { %3633 = vmatprep.subr.bf16.mxu1 %v5381_v63  ;;  %v5457_v63 = vld [vmem:[#allocation5 + $0x628] ss:$16 sps:$4 sm:$0xff]  }
 0x167   :  { %3591 = vmatpush2.bf16.msra.mxu0 %v5376_v2  ;;  %v5462_v2 = vld [vmem:[#allocation5 + $0x40c] ss:$16 sps:$4 sm:$0xff]  }
 0x168   :  { %3634 = vmatpush2.bf16.msra.mxu1 %v5379_v3  ;;  %3592 = vmatprep.subr.bf16.mxu0 %v5384_v4  ;;  %v5465_v3 = vld [vmem:[#allocation5 + $0x60c] ss:$16 sps:$4 sm:$0xff]   ;;  %v5460_v4 = vld [vmem:[#allocation5 + $0x408] ss:$16 sps:$4 sm:$0xff]  }
 0x169   :  { %3635 = vmatprep.subr.bf16.mxu1 %v5387_v5  ;;  %v5463_v5 = vld [vmem:[#allocation5 + $0x608] ss:$16 sps:$4 sm:$0xff]  }
 0x16b   :  { %3593 = vmatpush2.bf16.msra.mxu0 %v5382_v6  ;;  %v5468_v6 = vld [vmem:[#allocation5 + $0x5ec] ss:$16 sps:$4 sm:$0xff]  }
 0x16c   :  { %3636 = vmatpush2.bf16.msra.mxu1 %v5385_v7  ;;  %3594 = vmatprep.subr.bf16.mxu0 %v5390_v8  ;;  %v5471_v7 = vld [vmem:[#allocation5 + $0x7ec] ss:$16 sps:$4 sm:$0xff]   ;;  %v5466_v8 = vld [vmem:[#allocation5 + $0x5e8] ss:$16 sps:$4 sm:$0xff]  }
 0x16d   :  { %3637 = vmatprep.subr.bf16.mxu1 %v5393_v9  ;;  %v5469_v9 = vld [vmem:[#allocation5 + $0x7e8] ss:$16 sps:$4 sm:$0xff]  }
 0x16f   :  { %3595 = vmatpush2.bf16.msra.mxu0 %v5388_v10  ;;  %v5474_v10 = vld [vmem:[#allocation5 + $0x5cc] ss:$16 sps:$4 sm:$0xff]  }
 0x170   :  { %3638 = vmatpush2.bf16.msra.mxu1 %v5391_v11  ;;  %3596 = vmatprep.subr.bf16.mxu0 %v5396_v14  ;;  %v5477_v11 = vld [vmem:[#allocation5 + $0x7cc] ss:$16 sps:$4 sm:$0xff]   ;;  %v5472_v14 = vld [vmem:[#allocation5 + $0x5c8] ss:$16 sps:$4 sm:$0xff]  }
 0x171   :  { %3639 = vmatprep.subr.bf16.mxu1 %v5399_v15  ;;  %v5475_v15 = vld [vmem:[#allocation5 + $0x7c8] ss:$16 sps:$4 sm:$0xff]  }
 0x173   :  { %3597 = vmatpush2.bf16.msra.mxu0 %v5394_v16  ;;  %v5480_v16 = vld [vmem:[#allocation5 + $0x5ac] ss:$16 sps:$4 sm:$0xff]  }
 0x174   :  { %3640 = vmatpush2.bf16.msra.mxu1 %v5397_v17  ;;  %3598 = vmatprep.subr.bf16.mxu0 %v5402_v20  ;;  %v5483_v17 = vld [vmem:[#allocation5 + $0x7ac] ss:$16 sps:$4 sm:$0xff]   ;;  %v5478_v20 = vld [vmem:[#allocation5 + $0x5a8] ss:$16 sps:$4 sm:$0xff]  }
 0x175   :  { %3641 = vmatprep.subr.bf16.mxu1 %v5405_v21  ;;  %v5481_v21 = vld [vmem:[#allocation5 + $0x7a8] ss:$16 sps:$4 sm:$0xff]  }
 0x177   :  { %3599 = vmatpush2.bf16.msra.mxu0 %v5400_v22  ;;  %v5486_v22 = vld [vmem:[#allocation5 + $0x58c] ss:$16 sps:$4 sm:$0xff]  }
 0x178   :  { %3642 = vmatpush2.bf16.msra.mxu1 %v5403_v23  ;;  %3600 = vmatprep.subr.bf16.mxu0 %v5408_v24  ;;  %v5489_v23 = vld [vmem:[#allocation5 + $0x78c] ss:$16 sps:$4 sm:$0xff]   ;;  %v5484_v24 = vld [vmem:[#allocation5 + $0x588] ss:$16 sps:$4 sm:$0xff]  }
 0x179   :  { %3643 = vmatprep.subr.bf16.mxu1 %v5411_v25  ;;  %v5487_v25 = vld [vmem:[#allocation5 + $0x788] ss:$16 sps:$4 sm:$0xff]  }
 0x17b   :  { %3601 = vmatpush2.bf16.msra.mxu0 %v5406_v26  ;;  %v5492_v26 = vld [vmem:[#allocation5 + $0x56c] ss:$16 sps:$4 sm:$0xff]  }
 0x17c   :  { %3644 = vmatpush2.bf16.msra.mxu1 %v5409_v27  ;;  %3602 = vmatprep.subr.bf16.mxu0 %v5414_v30  ;;  %v5495_v27 = vld [vmem:[#allocation5 + $0x76c] ss:$16 sps:$4 sm:$0xff]   ;;  %v5490_v30 = vld [vmem:[#allocation5 + $0x568] ss:$16 sps:$4 sm:$0xff]  }
 0x17d   :  { %3645 = vmatprep.subr.bf16.mxu1 %v5417_v31  ;;  %v5493_v31 = vld [vmem:[#allocation5 + $0x768] ss:$16 sps:$4 sm:$0xff]  }
 0x17f   :  { %3603 = vmatpush2.bf16.msra.mxu0 %v5412_v32  ;;  %v5498_v32 = vld [vmem:[#allocation5 + $0x54c] ss:$16 sps:$4 sm:$0xff]  }
 0x180   :  { %3646 = vmatpush2.bf16.msra.mxu1 %v5415_v33  ;;  %3658 = vmatprep.subr.bf16.mxu0 %v5420_v34  ;;  %v5501_v33 = vld [vmem:[#allocation5 + $0x74c] ss:$16 sps:$4 sm:$0xff]   ;;  %v5496_v34 = vld [vmem:[#allocation5 + $0x548] ss:$16 sps:$4 sm:$0xff]  }
 0x181   :  { %3701 = vmatprep.subr.bf16.mxu1 %v5423_v35  ;;  %v5499_v35 = vld [vmem:[#allocation5 + $0x748] ss:$16 sps:$4 sm:$0xff]  }
 0x182   :  { %3605 = vmatmul.mubr.bf16.vlgmr.msra.gmra.mxu0 %v5951_v12  ;;  %v5436_v12 = vld [vmem:[#allocation5 + $0x488] ss:$16 sps:$4 sm:$0xff]  }
 0x183   :  { %3648 = vmatmul.mubr.bf16.vlgmr.msra.gmra.mxu1 %v5953_v13  ;;  %3659 = vmatpush1.bf16.msra.mxu0 %v5418_v36  ;;  %v5439_v13 = vld [vmem:[#allocation5 + $0x688] ss:$16 sps:$4 sm:$0xff]   ;;  %v5504_v36 = vld [vmem:[#allocation5 + $0x52c] ss:$16 sps:$4 sm:$0xff]  }
 0x184   :  { %3702 = vmatpush1.bf16.msra.mxu1 %v5421_v37  ;;  %3660 = vmatprep.subr.bf16.mxu0 %v5426_v38  ;;  %v5507_v37 = vld [vmem:[#allocation5 + $0x72c] ss:$16 sps:$4 sm:$0xff]   ;;  %v5502_v38 = vld [vmem:[#allocation5 + $0x528] ss:$16 sps:$4 sm:$0xff]  }
 0x185   :  { %3703 = vmatprep.subr.bf16.mxu1 %v5429_v53  ;;  %3690 = vmatprep.mubr.bf16.mxu0 %v5957_v45  ;;  %v5453_v45 = vld [vmem:[#allocation5 + $0x64c] ss:$16 sps:$4 sm:$0xff]   ;;  %v5505_v53 = vld [vmem:[#allocation5 + $0x728] ss:$16 sps:$4 sm:$0xff]  }
 0x186   :  { %3733 = vmatprep.mubr.bf16.mxu1 %v5959_v47  ;;  %v5448_v47 = vld [vmem:[#allocation5 + $0x448] ss:$16 sps:$4 sm:$0xff]  }
 0x187   :  { %3661 = vmatpush1.bf16.msra.mxu0 %v5424_v54  ;;  %v5510_v54 = vld [vmem:[#allocation5 + $0x50c] ss:$16 sps:$4 sm:$0xff]  }
 0x188   :  { %3704 = vmatpush1.bf16.msra.mxu1 %v5427_v39  ;;  %3662 = vmatprep.subr.bf16.mxu0 %v5432_v41  ;;  %v5513_v39 = vld [vmem:[#allocation5 + $0x70c] ss:$16 sps:$4 sm:$0xff]   ;;  %v5508_v41 = vld [vmem:[#allocation5 + $0x508] ss:$16 sps:$4 sm:$0xff]  }
 0x189   :  { %3705 = vmatprep.subr.bf16.mxu1 %v5435_v42  ;;  %v5511_v42 = vld [vmem:[#allocation5 + $0x708] ss:$16 sps:$4 sm:$0xff]  }
 0x18b   :  { %3663 = vmatpush1.bf16.msra.mxu0 %v5430_v43  ;;  %v5516_v43 = vld [vmem:[#allocation5 + $0x8ec] ss:$16 sps:$4 sm:$0xff]  }
 0x18c   :  { %3706 = vmatpush1.bf16.msra.mxu1 %v5433_v44  ;;  %3664 = vmatprep.subr.bf16.mxu0 %v5438_v48  ;;  %v5519_v44 = vld [vmem:[#allocation5 + $0xaec] ss:$16 sps:$4 sm:$0xff]   ;;  %v5514_v48 = vld [vmem:[#allocation5 + $0x8e8] ss:$16 sps:$4 sm:$0xff]  }
 0x18d   :  { %3707 = vmatprep.subr.bf16.mxu1 %v5441_v49  ;;  %v5517_v49 = vld [vmem:[#allocation5 + $0xae8] ss:$16 sps:$4 sm:$0xff]  }
 0x18f   :  { %3665 = vmatpush1.bf16.msra.mxu0 %v5436_v12  ;;  %v5522_v12 = vld [vmem:[#allocation5 + $0x8cc] ss:$16 sps:$4 sm:$0xff]  }
 0x190   :  { %3708 = vmatpush1.bf16.msra.mxu1 %v5439_v13  ;;  %3666 = vmatprep.subr.bf16.mxu0 %v5444_v50  ;;  %v5525_v13 = vld [vmem:[#allocation5 + $0xacc] ss:$16 sps:$4 sm:$0xff]   ;;  %v5520_v50 = vld [vmem:[#allocation5 + $0x8c8] ss:$16 sps:$4 sm:$0xff]  }
 0x191   :  { %3709 = vmatprep.subr.bf16.mxu1 %v5447_v51  ;;  %v5523_v51 = vld [vmem:[#allocation5 + $0xac8] ss:$16 sps:$4 sm:$0xff]  }
 0x193   :  { %3667 = vmatpush1.bf16.msra.mxu0 %v5442_v52  ;;  %v5528_v52 = vld [vmem:[#allocation5 + $0x8ac] ss:$16 sps:$4 sm:$0xff]  }
 0x194   :  { %3710 = vmatpush1.bf16.msra.mxu1 %v5445_v55  ;;  %3668 = vmatprep.subr.bf16.mxu0 %v5450_v56  ;;  %v5531_v55 = vld [vmem:[#allocation5 + $0xaac] ss:$16 sps:$4 sm:$0xff]   ;;  %v5526_v56 = vld [vmem:[#allocation5 + $0x8a8] ss:$16 sps:$4 sm:$0xff]  }
 0x195   :  { %3711 = vmatprep.subr.bf16.mxu1 %v5453_v45  ;;  %v5529_v45 = vld [vmem:[#allocation5 + $0xaa8] ss:$16 sps:$4 sm:$0xff]  }
 0x197   :  { %3669 = vmatpush1.bf16.msra.mxu0 %v5448_v47  ;;  %v5532_v47 = vld [vmem:[#allocation5 + $0x888] ss:$16 sps:$4 sm:$0xff]  }
 0x198   :  { %3712 = vmatpush1.bf16.msra.mxu1 %v5451_v57  ;;  %3670 = vmatprep.subr.bf16.mxu0 %v5456_v60  ;;  %v5535_v57 = vld [vmem:[#allocation5 + $0xa88] ss:$16 sps:$4 sm:$0xff]   ;;  %v5540_v60 = vld [vmem:[#allocation5 + $0x86c] ss:$16 sps:$4 sm:$0xff]  }
 0x199   :  { %3713 = vmatprep.subr.bf16.mxu1 %v5459_v61  ;;  %v5543_v61 = vld [vmem:[#allocation5 + $0xa6c] ss:$16 sps:$4 sm:$0xff]  }
 0x19b   :  { %3671 = vmatpush1.bf16.msra.mxu0 %v5454_v62  ;;  %v5546_v62 = vld [vmem:[#allocation5 + $0x84c] ss:$16 sps:$4 sm:$0xff]  }
 0x19c   :  { %3714 = vmatpush1.bf16.msra.mxu1 %v5457_v63  ;;  %3672 = vmatprep.subr.bf16.mxu0 %v5462_v2  ;;  %v5549_v63 = vld [vmem:[#allocation5 + $0xa4c] ss:$16 sps:$4 sm:$0xff]   ;;  %v5544_v2 = vld [vmem:[#allocation5 + $0x848] ss:$16 sps:$4 sm:$0xff]  }
 0x19d   :  { %3715 = vmatprep.subr.bf16.mxu1 %v5465_v3  ;;  %v5547_v3 = vld [vmem:[#allocation5 + $0xa48] ss:$16 sps:$4 sm:$0xff]  }
 0x19f   :  { %3673 = vmatpush1.bf16.msra.mxu0 %v5460_v4  ;;  %v5552_v4 = vld [vmem:[#allocation5 + $0x82c] ss:$16 sps:$4 sm:$0xff]  }
 0x1a0   :  { %3716 = vmatpush1.bf16.msra.mxu1 %v5463_v5  ;;  %3674 = vmatprep.subr.bf16.mxu0 %v5468_v6  ;;  %v5555_v5 = vld [vmem:[#allocation5 + $0xa2c] ss:$16 sps:$4 sm:$0xff]   ;;  %v5550_v6 = vld [vmem:[#allocation5 + $0x828] ss:$16 sps:$4 sm:$0xff]  }
 0x1a1   :  { %3717 = vmatprep.subr.bf16.mxu1 %v5471_v7  ;;  %v5553_v7 = vld [vmem:[#allocation5 + $0xa28] ss:$16 sps:$4 sm:$0xff]  }
 0x1a3   :  { %3675 = vmatpush2.bf16.msra.mxu0 %v5466_v8  ;;  %v5558_v8 = vld [vmem:[#allocation5 + $0x80c] ss:$16 sps:$4 sm:$0xff]  }
 0x1a4   :  { %3718 = vmatpush2.bf16.msra.mxu1 %v5469_v9  ;;  %3676 = vmatprep.subr.bf16.mxu0 %v5474_v10  ;;  %v5561_v9 = vld [vmem:[#allocation5 + $0xa0c] ss:$16 sps:$4 sm:$0xff]   ;;  %v5556_v10 = vld [vmem:[#allocation5 + $0x808] ss:$16 sps:$4 sm:$0xff]  }
 0x1a5   :  { %3719 = vmatprep.subr.bf16.mxu1 %v5477_v11  ;;  %v5559_v11 = vld [vmem:[#allocation5 + $0xa08] ss:$16 sps:$4 sm:$0xff]  }
 0x1a7   :  { %3677 = vmatpush2.bf16.msra.mxu0 %v5472_v14  ;;  %v5564_v14 = vld [vmem:[#allocation5 + $0x9ec] ss:$16 sps:$4 sm:$0xff]  }
 0x1a8   :  { %3720 = vmatpush2.bf16.msra.mxu1 %v5475_v15  ;;  %3678 = vmatprep.subr.bf16.mxu0 %v5480_v16  ;;  %v5567_v15 = vld [vmem:[#allocation5 + $0xbec] ss:$16 sps:$4 sm:$0xff]   ;;  %v5562_v16 = vld [vmem:[#allocation5 + $0x9e8] ss:$16 sps:$4 sm:$0xff]  }
 0x1a9   :  { %3721 = vmatprep.subr.bf16.mxu1 %v5483_v17  ;;  %v5565_v17 = vld [vmem:[#allocation5 + $0xbe8] ss:$16 sps:$4 sm:$0xff]  }
 0x1ab   :  { %3679 = vmatpush2.bf16.msra.mxu0 %v5478_v20  ;;  %v5570_v20 = vld [vmem:[#allocation5 + $0x9cc] ss:$16 sps:$4 sm:$0xff]  }
 0x1ac   :  { %3722 = vmatpush2.bf16.msra.mxu1 %v5481_v21  ;;  %3680 = vmatprep.subr.bf16.mxu0 %v5486_v22  ;;  %v5573_v21 = vld [vmem:[#allocation5 + $0xbcc] ss:$16 sps:$4 sm:$0xff]   ;;  %v5568_v22 = vld [vmem:[#allocation5 + $0x9c8] ss:$16 sps:$4 sm:$0xff]  }
 0x1ad   :  { %3723 = vmatprep.subr.bf16.mxu1 %v5489_v23  ;;  %v5571_v23 = vld [vmem:[#allocation5 + $0xbc8] ss:$16 sps:$4 sm:$0xff]  }
 0x1af   :  { %3681 = vmatpush2.bf16.msra.mxu0 %v5484_v24  ;;  %v6003_v24 = vpop.f32.mrf.mxu0 }
 0x1b0   :  { %3724 = vmatpush2.bf16.msra.mxu1 %v5487_v25  ;;  %3682 = vmatprep.subr.bf16.mxu0 %v5492_v26  ;;  %v5576_v25 = vld [vmem:[#allocation5 + $0x9ac] ss:$16 sps:$4 sm:$0xff]  }
 0x1b1   :  { %3725 = vmatprep.subr.bf16.mxu1 %v5495_v27  ;;  %v5579_v26 = vld [vmem:[#allocation5 + $0xbac] ss:$16 sps:$4 sm:$0xff]   ;;  %v5574_v27 = vld [vmem:[#allocation5 + $0x9a8] ss:$16 sps:$4 sm:$0xff]  }
 0x1b3   :  { %3683 = vmatpush2.bf16.msra.mxu0 %v5490_v30  ;;  %v5577_v30 = vld [vmem:[#allocation5 + $0xba8] ss:$16 sps:$4 sm:$0xff]  }
 0x1b4   :  { %3726 = vmatpush2.bf16.msra.mxu1 %v5493_v31  ;;  %3684 = vmatprep.subr.bf16.mxu0 %v5498_v32  ;;  %v6005_v31 = vpop.f32.mrf.mxu0  ;;  %v5582_v32 = vld [vmem:[#allocation5 + $0x98c] ss:$16 sps:$4 sm:$0xff]  }
 0x1b5   :  { %3727 = vmatprep.subr.bf16.mxu1 %v5501_v33  ;;  %v5585_v33 = vld [vmem:[#allocation5 + $0xb8c] ss:$16 sps:$4 sm:$0xff]  }
 0x1b7   :  { %3685 = vmatpush2.bf16.msra.mxu0 %v5496_v34  ;;  %v6007_v34 = vpop.f32.mrf.mxu1 }
 0x1b8   :  { %3728 = vmatpush2.bf16.msra.mxu1 %v5499_v35  ;;  %3686 = vmatprep.subr.bf16.mxu0 %v5504_v36  ;;  %v5580_v35 = vld [vmem:[#allocation5 + $0x988] ss:$16 sps:$4 sm:$0xff]  }
 0x1b9   :  { %3729 = vmatprep.subr.bf16.mxu1 %v5507_v37  ;;  %v5583_v36 = vld [vmem:[#allocation5 + $0xb88] ss:$16 sps:$4 sm:$0xff]   ;;  %v6009_v37 = vpop.f32.mrf.mxu0 }
 0x1bb   :  { %3687 = vmatpush2.bf16.msra.mxu0 %v5502_v38  ;;  %v5588_v38 = vld [vmem:[#allocation5 + $0x96c] ss:$16 sps:$4 sm:$0xff]  }
 0x1bc   :  { %3730 = vmatpush2.bf16.msra.mxu1 %v5505_v53  ;;  %3688 = vmatprep.subr.bf16.mxu0 %v5510_v54  ;;  %v5591_v53 = vld [vmem:[#allocation5 + $0xb6c] ss:$16 sps:$4 sm:$0xff]   ;;  %v6011_v54 = vpop.f32.mrf.mxu1 }
 0x1bd   :  { %3731 = vmatprep.subr.bf16.mxu1 %v5513_v39  ;;  %v5586_v39 = vld [vmem:[#allocation5 + $0x968] ss:$16 sps:$4 sm:$0xff]  }
 0x1bf   :  { %3689 = vmatpush2.bf16.msra.mxu0 %v5508_v41  ;;  %v5589_v41 = vld [vmem:[#allocation5 + $0xb68] ss:$16 sps:$4 sm:$0xff]  }
 0x1c0   :  { %3732 = vmatpush2.bf16.msra.mxu1 %v5511_v42  ;;  %3744 = vmatprep.subr.bf16.mxu0 %v5516_v43  ;;  %v6013_v42 = vpop.f32.mrf.mxu0  ;;  %v5594_v43 = vld [vmem:[#allocation5 + $0x94c] ss:$16 sps:$4 sm:$0xff]  }
 0x1c1   :  { %3787 = vmatprep.subr.bf16.mxu1 %v5519_v44  ;;  %v5597_v44 = vld [vmem:[#allocation5 + $0xb4c] ss:$16 sps:$4 sm:$0xff]  }
 0x1c2   :  { %3691 = vmatmul.mubr.bf16.vlgmr.msra.gmra.mxu0 %v5963_v28  ;;  %v5534_v28 = vld [vmem:[#allocation5 + $0x88c] ss:$16 sps:$4 sm:$0xff]  }
 0x1c3   :  { %3734 = vmatmul.mubr.bf16.vlgmr.msra.gmra.mxu1 %v5965_v29  ;;  %3745 = vmatpush1.bf16.msra.mxu0 %v5514_v48  ;;  %v5537_v29 = vld [vmem:[#allocation5 + $0xa8c] ss:$16 sps:$4 sm:$0xff]   ;;  %v6015_v48 = vpop.f32.mrf.mxu1 }
 0x1c4   :  { %3788 = vmatpush1.bf16.msra.mxu1 %v5517_v49  ;;  %3746 = vmatprep.subr.bf16.mxu0 %v5522_v12  ;;  %v6017_v49 = vpop.f32.mrf.mxu0  ;;  %v5592_v12 = vld [vmem:[#allocation5 + $0x948] ss:$16 sps:$4 sm:$0xff]  }
 0x1c5   :  { %3789 = vmatprep.subr.bf16.mxu1 %v5525_v13  ;;  %3776 = vmatprep.mubr.bf16.mxu0 %v5969_v40  ;;  %v5538_v40 = vld [vmem:[#allocation5 + $0x868] ss:$16 sps:$4 sm:$0xff]  }
 0x1c6   :  { %3819 = vmatprep.mubr.bf16.mxu1 %v5971_v46  ;;  %v5541_v46 = vld [vmem:[#allocation5 + $0xa68] ss:$16 sps:$4 sm:$0xff]  }
 0x1c7   :  { %3747 = vmatpush1.bf16.msra.mxu0 %v5520_v50  ;;  %v5595_v13 = vld [vmem:[#allocation5 + $0xb48] ss:$16 sps:$4 sm:$0xff]   ;;  %v5600_v50 = vld [vmem:[#allocation5 + $0x92c] ss:$16 sps:$4 sm:$0xff]  }
 0x1c8   :  { %3790 = vmatpush1.bf16.msra.mxu1 %v5523_v51  ;;  %3748 = vmatprep.subr.bf16.mxu0 %v5528_v52  ;;  %v5603_v51 = vld [vmem:[#allocation5 + $0xb2c] ss:$16 sps:$4 sm:$0xff]   ;;  %v6019_v52 = vpop.f32.mrf.mxu1 }
 0x1c9   :  { %3791 = vmatprep.subr.bf16.mxu1 %v5531_v55  ;;  %v6021_v55 = vpop.f32.mrf.mxu0 }
 0x1cb   :  { %3749 = vmatpush1.bf16.msra.mxu0 %v5526_v56  ;;  %v5598_v56 = vld [vmem:[#allocation5 + $0x928] ss:$16 sps:$4 sm:$0xff]  }
 0x1cc   :  { %3792 = vmatpush1.bf16.msra.mxu1 %v5529_v45  ;;  %3750 = vmatprep.subr.bf16.mxu0 %v5534_v28  ;;  %v5601_v45 = vld [vmem:[#allocation5 + $0xb28] ss:$16 sps:$4 sm:$0xff]   ;;  %v6023_v28 = vpop.f32.mrf.mxu1 }
 0x1cd   :  { %3793 = vmatprep.subr.bf16.mxu1 %v5537_v29  ;;  %v5606_v29 = vld [vmem:[#allocation5 + $0x90c] ss:$16 sps:$4 sm:$0xff]  }
 0x1cf   :  { %3751 = vmatpush1.bf16.msra.mxu0 %v5532_v47  ;;  %v5609_v47 = vld [vmem:[#allocation5 + $0xb0c] ss:$16 sps:$4 sm:$0xff]  }
 0x1d0   :  { %3794 = vmatpush1.bf16.msra.mxu1 %v5535_v57  ;;  %3752 = vmatprep.subr.bf16.mxu0 %v5540_v60  ;;  %v6025_v57 = vpop.f32.mrf.mxu0  ;;  %v5604_v60 = vld [vmem:[#allocation5 + $0x908] ss:$16 sps:$4 sm:$0xff]  }
 0x1d1   :  { %3795 = vmatprep.subr.bf16.mxu1 %v5543_v61  ;;  %v5607_v61 = vld [vmem:[#allocation5 + $0xb08] ss:$16 sps:$4 sm:$0xff]  }
 0x1d3   :  { %3753 = vmatpush1.bf16.msra.mxu0 %v5538_v40  ;;  %v6027_v40 = vpop.f32.mrf.mxu1 }
 0x1d4   :  { %3796 = vmatpush1.bf16.msra.mxu1 %v5541_v46  ;;  %3754 = vmatprep.subr.bf16.mxu0 %v5546_v62  ;;  %v5612_v46 = vld [vmem:[#allocation5 + $0xcec] ss:$16 sps:$4 sm:$0xff]  }
 0x1d5   :  { %3797 = vmatprep.subr.bf16.mxu1 %v5549_v63  ;;  %v5615_v62 = vld [vmem:[#allocation5 + $0xeec] ss:$16 sps:$4 sm:$0xff]   ;;  %v648_v63 = vlaneseq }
 0x1d7   :  { %3755 = vmatpush1.bf16.msra.mxu0 %v5544_v2  ;;  %v6029_v2 = vpop.f32.mrf.mxu0 }
 0x1d8   :  { %3798 = vmatpush1.bf16.msra.mxu1 %v5547_v3  ;;  %3756 = vmatprep.subr.bf16.mxu0 %v5552_v4  ;;  %v5610_v3 = vld [vmem:[#allocation5 + $0xce8] ss:$16 sps:$4 sm:$0xff]  }
 0x1d9   :  { %3799 = vmatprep.subr.bf16.mxu1 %v5555_v5  ;;  %v5613_v4 = vld [vmem:[#allocation5 + $0xee8] ss:$16 sps:$4 sm:$0xff]   ;;  %v6031_v5 = vpop.f32.mrf.mxu1 }
 0x1db   :  { %3757 = vmatpush1.bf16.msra.mxu0 %v5550_v6  ;;  %v6033_v6 = vpop.f32.mrf.mxu0 }
 0x1dc   :  { %3800 = vmatpush1.bf16.msra.mxu1 %v5553_v7  ;;  %3758 = vmatprep.subr.bf16.mxu0 %v5558_v8  ;;  %v5618_v7 = vld [vmem:[#allocation5 + $0xccc] ss:$16 sps:$4 sm:$0xff]  }
 0x1dd   :  { %3801 = vmatprep.subr.bf16.mxu1 %v5561_v9  ;;  %v5621_v8 = vld [vmem:[#allocation5 + $0xecc] ss:$16 sps:$4 sm:$0xff]   ;;  %v6035_v9 = vshrl.u32 %v648_v63, 7  ;;  %v5646_v63 = vld [vmem:[#allocation5 + $0xc28] ss:$16 sps:$4 sm:$0xff]  }
 0x1df   :  { %3759 = vmatpush1.bf16.msra.mxu0 %v5556_v10  ;;  %v5616_v10 = vld [vmem:[#allocation5 + $0xcc8] ss:$16 sps:$4 sm:$0xff]  }
 0x1e0   :  { %3802 = vmatpush1.bf16.msra.mxu1 %v5559_v11  ;;  %3760 = vmatprep.subr.bf16.mxu0 %v5564_v14  ;;  %v5619_v11 = vld [vmem:[#allocation5 + $0xec8] ss:$16 sps:$4 sm:$0xff]   ;;  %v3397_v14 = vpop.f32.mrf.mxu1 }
 0x1e1   :  { %3803 = vmatprep.subr.bf16.mxu1 %v5567_v15  ;;  %v6039_v15 = vpop.f32.mrf.mxu0 }
 0x1e3   :  { %3761 = vmatpush2.bf16.msra.mxu0 %v5562_v16  ;;  %v5624_v16 = vld [vmem:[#allocation5 + $0xcac] ss:$16 sps:$4 sm:$0xff]  }
 0x1e4   :  { %3804 = vmatpush2.bf16.msra.mxu1 %v5565_v17  ;;  %3762 = vmatprep.subr.bf16.mxu0 %v5570_v20  ;;  %v5627_v17 = vld [vmem:[#allocation5 + $0xeac] ss:$16 sps:$4 sm:$0xff]   ;;  %v654_v20 = vsub.s32 1, %v6035_v9 }
 0x1e5   :  { %3805 = vmatprep.subr.bf16.mxu1 %v5573_v21  ;;  %v5622_v21 = vld [vmem:[#allocation5 + $0xca8] ss:$16 sps:$4 sm:$0xff]  }
 0x1e7   :  { %3763 = vmatpush2.bf16.msra.mxu0 %v5568_v22  ;;  %v5625_v22 = vld [vmem:[#allocation5 + $0xea8] ss:$16 sps:$4 sm:$0xff]  }
 0x1e8   :  { %3806 = vmatpush2.bf16.msra.mxu1 %v5571_v23  ;;  %3764 = vmatprep.subr.bf16.mxu0 %v5576_v25  ;;  %v6048_v23 = vpop.f32.mrf.mxu0  ;;  %v5630_v25 = vld [vmem:[#allocation5 + $0xc8c] ss:$16 sps:$4 sm:$0xff]  }
 0x1e9   :  { %3807 = vmatprep.subr.bf16.mxu1 %v5579_v26  ;;  %v5633_v26 = vld [vmem:[#allocation5 + $0xe8c] ss:$16 sps:$4 sm:$0xff]  }
 0x1eb   :  { %3765 = vmatpush2.bf16.msra.mxu0 %v5574_v27 }
 0x1ec   :  { %3808 = vmatpush2.bf16.msra.mxu1 %v5577_v30  ;;  %3766 = vmatprep.subr.bf16.mxu0 %v5582_v32  ;;  %v5631_v32 = vld [vmem:[#allocation5 + $0xe88] ss:$16 sps:$4 sm:$0xff]  }
 0x1ed   :  { %3809 = vmatprep.subr.bf16.mxu1 %v5585_v33  ;;  %v3440_v33 = vpop.f32.mrf.mxu0 }
 0x1ef   :  { %3767 = vmatpush2.bf16.msra.mxu0 %v5580_v35  ;;  %v5636_v35 = vld [vmem:[#allocation5 + $0xc6c] ss:$16 sps:$4 sm:$0xff]  }
 0x1f0   :  { %3810 = vmatpush2.bf16.msra.mxu1 %v5583_v36  ;;  %3768 = vmatprep.subr.bf16.mxu0 %v5588_v38  ;;  %v5639_v36 = vld [vmem:[#allocation5 + $0xe6c] ss:$16 sps:$4 sm:$0xff]  }
 0x1f1   :  { %3811 = vmatprep.subr.bf16.mxu1 %v5591_v53 }
 0x1f3   :  { %3769 = vmatpush2.bf16.msra.mxu0 %v5586_v39 }
 0x1f4   :  { %3812 = vmatpush2.bf16.msra.mxu1 %v5589_v41  ;;  %3770 = vmatprep.subr.bf16.mxu0 %v5594_v43  ;;  %v5637_v43 = vld [vmem:[#allocation5 + $0xe68] ss:$16 sps:$4 sm:$0xff]  }
 0x1f5   :  { %3813 = vmatprep.subr.bf16.mxu1 %v5597_v44  ;;  %v5642_v44 = vld [vmem:[#allocation5 + $0xc4c] ss:$16 sps:$4 sm:$0xff]  }
 0x1f7   :  { %3771 = vmatpush2.bf16.msra.mxu0 %v5592_v12  ;;  %v5645_v12 = vld [vmem:[#allocation5 + $0xe4c] ss:$16 sps:$4 sm:$0xff]  }
 0x1f8   :  { %3814 = vmatpush2.bf16.msra.mxu1 %v5595_v13  ;;  %3772 = vmatprep.subr.bf16.mxu0 %v5600_v50 }
 0x1f9   :  { %3815 = vmatprep.subr.bf16.mxu1 %v5603_v51 }
 0x1fb   :  { %3773 = vmatpush2.bf16.msra.mxu0 %v5598_v56 }
 0x1fc   :  { %3816 = vmatpush2.bf16.msra.mxu1 %v5601_v45  ;;  %3774 = vmatprep.subr.bf16.mxu0 %v5606_v29  ;;  %v5640_v45 = vld [vmem:[#allocation5 + $0xc48] ss:$16 sps:$4 sm:$0xff]  }
 0x1fd   :  { %3817 = vmatprep.subr.bf16.mxu1 %v5609_v47  ;;  %v5648_v47 = vld [vmem:[#allocation5 + $0xc2c] ss:$16 sps:$4 sm:$0xff]  }
 0x1ff   :  { %3775 = vmatpush2.bf16.msra.mxu0 %v5604_v60  ;;  %v5651_v60 = vld [vmem:[#allocation5 + $0xe2c] ss:$16 sps:$4 sm:$0xff]  }
 0x200   :  { %3818 = vmatpush2.bf16.msra.mxu1 %v5607_v61  ;;  %3830 = vmatprep.subr.bf16.mxu0 %v5612_v46 }
 0x201   :  { %3873 = vmatprep.subr.bf16.mxu1 %v5615_v62 }
 0x202   :  { %3777 = vmatmul.mubr.bf16.vlgmr.msra.gmra.mxu0 %v5975_v58  ;;  %v6044_v58 = vld [vmem:[#allocation7] sm:$0xf]  ;;  %v6055_v39 = vpop.f32.mrf.mxu0 }
 0x203   :  { %3820 = vmatmul.mubr.bf16.vlgmr.msra.gmra.mxu1 %v5977_v59  ;;  %3831 = vmatpush1.bf16.msra.mxu0 %v5610_v3  ;;  %v6046_v59 = vpop.f32.mrf.mxu1  ;;  %v655_v27 = vrot.slane %v6044_v58, %v654_v20  ;;  %v5654_v3 = vld [vmem:[#allocation5 + $0xc0c] ss:$16 sps:$4 sm:$0xff]  }
 0x204   :  { %3874 = vmatpush1.bf16.msra.mxu1 %v5613_v4  ;;  %3832 = vmatprep.subr.bf16.mxu0 %v5618_v7  ;;  %v5657_v4 = vld [vmem:[#allocation5 + $0xe0c] ss:$16 sps:$4 sm:$0xff]  }
 0x205   :  { %3875 = vmatprep.subr.bf16.mxu1 %v5621_v8  ;;  %3862 = vmatprep.mubr.bf16.mxu0 %v5979_v0  ;;  %v3479_v30 = vpop.f32.mrf.mxu1  ;;  %v3269_v0 = vadd.f32 %v6013_v42, %v655_v27  ;;  %v3265_v38 = vadd.f32 %v6005_v31, %v655_v27  ;;  %v5634_v42 = vld [vmem:[#allocation5 + $0xc68] ss:$16 sps:$4 sm:$0xff]   ;;  %v3522_v31 = vpop.f32.mrf.mxu0  ;;  %v5666_v27 = vld [vmem:[#allocation5 + $0xdcc] ss:$16 sps:$4 sm:$0xff]  }
 0x206   :  { %3905 = vmatprep.mubr.bf16.mxu1 %v5981_v1  ;;  %v5628_v1 = vld [vmem:[#allocation5 + $0xc88] ss:$16 sps:$4 sm:$0xff]  }
 0x207   :  { %3833 = vmatpush1.bf16.msra.mxu0 %v5616_v10  ;;  %v6053_v53 = vpop.f32.mrf.mxu1  ;;  %v3312_v41 = vadd.f32 %v6019_v52, %v3269_v0  ;;  %v3308_v13 = vadd.f32 %v6011_v54, %v3265_v38  ;;  %v5643_v52 = vld [vmem:[#allocation5 + $0xe48] ss:$16 sps:$4 sm:$0xff]   ;;  %v6063_v46 = vpop.f32.mrf.mxu0  ;;  %v5669_v0 = vld [vmem:[#allocation5 + $0xfcc] ss:$16 sps:$4 sm:$0xff]  }
 0x208   :  { %3876 = vmatpush1.bf16.msra.mxu1 %v5619_v11  ;;  %3834 = vmatprep.subr.bf16.mxu0 %v5624_v16  ;;  %v5652_v11 = vld [vmem:[#allocation5 + $0xc08] ss:$16 sps:$4 sm:$0xff]   ;;  %v5675_v38 = vld [vmem:[#allocation5 + $0xfac] ss:$16 sps:$4 sm:$0xff]  }
 0x209   :  { %3877 = vmatprep.subr.bf16.mxu1 %v5627_v17  ;;  %v3355_v50 = vadd.f32 %v6029_v2, %v3312_v41  ;;  %v3483_v51 = vpop.f32.mrf.mxu1  ;;  %v3351_v56 = vadd.f32 %v6021_v55, %v3308_v13  ;;  %v5649_v55 = vld [vmem:[#allocation5 + $0xe28] ss:$16 sps:$4 sm:$0xff]   ;;  %v3526_v8 = vpop.f32.mrf.mxu0  ;;  %v5663_v17 = vld [vmem:[#allocation5 + $0xfec] ss:$16 sps:$4 sm:$0xff]  }
 0x20a   :  { %v5678_v13 = vld [vmem:[#allocation5 + $0xd8c] ss:$16 sps:$4 sm:$0xff]  }
 0x20b   :  { %3835 = vmatpush1.bf16.msra.mxu0 %v5622_v21  ;;  %v6061_v29 = vpop.f32.mrf.mxu1  ;;  %v3398_v61 = vadd.f32 %v3397_v14, %v3355_v50  ;;  %v3394_v54 = vadd.f32 %v6027_v40, %v3351_v56  ;;  %v5655_v14 = vld [vmem:[#allocation5 + $0xe08] ss:$16 sps:$4 sm:$0xff]   ;;  %v5660_v40 = vld [vmem:[#allocation5 + $0xdec] ss:$16 sps:$4 sm:$0xff]  }
 0x20c   :  { %3878 = vmatpush1.bf16.msra.mxu1 %v5625_v22  ;;  %3836 = vmatprep.subr.bf16.mxu0 %v5630_v25  ;;  %v5658_v25 = vld [vmem:[#allocation5 + $0xde8] ss:$16 sps:$4 sm:$0xff]   ;;  %v5681_v50 = vld [vmem:[#allocation5 + $0xf8c] ss:$16 sps:$4 sm:$0xff]  }
 0x20d   :  { %3879 = vmatprep.subr.bf16.mxu1 %v5633_v26  ;;  %v3441_v62 = vadd.f32 %v3440_v33, %v3398_v61  ;;  %v3565_v2 = vpop.f32.mrf.mxu1  ;;  %v3437_v7 = vadd.f32 %v6039_v15, %v3394_v54  ;;  %v5661_v26 = vld [vmem:[#allocation5 + $0xfe8] ss:$16 sps:$4 sm:$0xff]  }
 0x20e   :  { %v5664_v33 = vld [vmem:[#allocation5 + $0xdc8] ss:$16 sps:$4 sm:$0xff]  }
 0x20f   :  { %3837 = vmatpush1.bf16.msra.mxu0 %v5628_v1  ;;  %v3484_v10 = vadd.f32 %v3483_v51, %v3441_v62  ;;  %v6067_v16 = vpop.f32.mrf.mxu1  ;;  %v3480_v20 = vadd.f32 %v3479_v30, %v3437_v7  ;;  %v650_v30 = vsub.s32 0, %v6035_v9  ;;  %v5679_v56 = vld [vmem:[#allocation5 + $0xf88] ss:$16 sps:$4 sm:$0xff]   ;;  %v5699_v7 = vld [vmem:[#allocation5 + $0xf2c] ss:$16 sps:$4 sm:$0xff]  }
 0x210   :  { %3880 = vmatpush1.bf16.msra.mxu1 %v5631_v32  ;;  %3838 = vmatprep.subr.bf16.mxu0 %v5636_v35  ;;  %v5667_v35 = vld [vmem:[#allocation5 + $0xfc8] ss:$16 sps:$4 sm:$0xff]  }
 0x211   :  { %3881 = vmatprep.subr.bf16.mxu1 %v5639_v36  ;;  %v3527_v21 = vadd.f32 %v3526_v8, %v3484_v10  ;;  %v3523_v22 = vadd.f32 %v3522_v31, %v3480_v20  ;;  %v3569_v15 = vpop.f32.mrf.mxu1  ;;  %v5672_v36 = vld [vmem:[#allocation5 + $0xdac] ss:$16 sps:$4 sm:$0xff]   ;;  %v5676_v31 = vld [vmem:[#allocation5 + $0xd88] ss:$16 sps:$4 sm:$0xff]  }
 0x212   :  { %v5682_v61 = vld [vmem:[#allocation5 + $0xd68] ss:$16 sps:$4 sm:$0xff]  }
 0x213   :  { %3839 = vmatpush1.bf16.msra.mxu0 %v5634_v42  ;;  %v6069_v1 = vadd.f32 %v3569_v15, %v3527_v21  ;;  %v6071_v32 = vadd.f32 %v3565_v2, %v3523_v22  ;;  %v5685_v54 = vld [vmem:[#allocation5 + $0xf68] ss:$16 sps:$4 sm:$0xff]  }
 0x214   :  { %3882 = vmatpush1.bf16.msra.mxu1 %v5637_v43  ;;  %3840 = vmatprep.subr.bf16.mxu0 %v5642_v44  ;;  %v5670_v43 = vld [vmem:[#allocation5 + $0xda8] ss:$16 sps:$4 sm:$0xff]  }
 0x215   :  { %3883 = vmatprep.subr.bf16.mxu1 %v5645_v12  ;;  %v3929_v41 = vmul.f32 0.70710677, %v6069_v1  ;;  %v3925_v42 = vmul.f32 0.70710677, %v6071_v32  ;;  %v5673_v44 = vld [vmem:[#allocation5 + $0xfa8] ss:$16 sps:$4 sm:$0xff]   ;;  %v651_v12 = vrot.slane %v6044_v58, %v650_v30 }
 0x216   :  { %v5688_v2 = vld [vmem:[#allocation5 + $0xd48] ss:$16 sps:$4 sm:$0xff]   ;;  %v3921_v22 = vmul.f32 0.5, %v6069_v1  ;;  %v3917_v15 = vmul.f32 0.5, %v6071_v32  ;;  %v5707_v1 = vld [vmem:[#allocation8 + $0x38] sm:$0xff]  }
 0x217   :  { %3841 = vmatpush1.bf16.msra.mxu0 %v5640_v45  ;;  %5738 = verf.f32 %v3929_v41  ;;  %v3267_v51 = vadd.f32 %v6009_v37, %v651_v12  ;;  %v3263_v45 = vadd.f32 %v6003_v24, %v651_v12  ;;  %v5694_v10 = vld [vmem:[#allocation5 + $0xd28] ss:$16 sps:$4 sm:$0xff]  }
 0x218   :  { %3884 = vmatpush1.bf16.msra.mxu1 %v5643_v52  ;;  %3842 = vmatprep.subr.bf16.mxu0 %v5648_v47  ;;  %5740 = verf.f32 %v3925_v42  ;;  %v5684_v52 = vld [vmem:[#allocation5 + $0xd6c] ss:$16 sps:$4 sm:$0xff]   ;;  %v5713_v41 = vld [vmem:[#allocation8 + $0x20] sm:$0xff]   ;;  %v5717_v42 = vld [vmem:[#allocation8 + $0x10] sm:$0xff]  }
 0x219   :  { %3885 = vmatprep.subr.bf16.mxu1 %v5651_v60  ;;  %v5687_v47 = vld [vmem:[#allocation5 + $0xf6c] ss:$16 sps:$4 sm:$0xff]   ;;  %v3310_v60 = vadd.f32 %v6015_v48, %v3267_v51  ;;  %v3306_v62 = vadd.f32 %v6007_v34, %v3263_v45  ;;  %v5720_v51 = vld [vmem:[#allocation8 + $0x40] sm:$0xff]  }
 0x21a   :  { %v5721_v45 = vld [vmem:[#allocation8] sm:$0xff]  }
 0x21b   :  { %3843 = vmatpush1.bf16.msra.mxu0 %v5646_v63  ;;  %v3353_v37 = vadd.f32 %v6025_v57, %v3310_v60  ;;  %v5690_v63 = vld [vmem:[#allocation5 + $0xd4c] ss:$16 sps:$4 sm:$0xff]   ;;  %v3349_v24 = vadd.f32 %v6017_v49, %v3306_v62 }
 0x21c   :  { %3886 = vmatpush1.bf16.msra.mxu1 %v5649_v55  ;;  %3844 = vmatprep.subr.bf16.mxu0 %v5654_v3  ;;  %v5693_v55 = vld [vmem:[#allocation5 + $0xf4c] ss:$16 sps:$4 sm:$0xff]   ;;  %v5691_v3 = vld [vmem:[#allocation5 + $0xf48] ss:$16 sps:$4 sm:$0xff]  }
 0x21d   :  { %3887 = vmatprep.subr.bf16.mxu1 %v5657_v4  ;;  %v3396_v48 = vadd.f32 %v6031_v5, %v3353_v37  ;;  %v5696_v4 = vld [vmem:[#allocation5 + $0xd2c] ss:$16 sps:$4 sm:$0xff]   ;;  %v3392_v34 = vadd.f32 %v6023_v28, %v3349_v24  ;;  %v5700_v28 = vld [vmem:[#allocation5 + $0xd08] ss:$16 sps:$4 sm:$0xff]  }
 0x21e   :  { %v5705_v5 = vld [vmem:[#allocation5 + $0xf0c] ss:$16 sps:$4 sm:$0xff]   ;;  %v5724_v37 = vld [vmem:[#allocation8 + $0xf0] sm:$0xff]  }
 0x21f   :  { %3845 = vmatpush1.bf16.msra.mxu0 %v5652_v11  ;;  %v3439_v57 = vadd.f32 %v6048_v23, %v3396_v48  ;;  %v5697_v11 = vld [vmem:[#allocation5 + $0xf28] ss:$16 sps:$4 sm:$0xff]   ;;  %v5723_v62 = vld [vmem:[#allocation8 + $0xb8] sm:$0xff]   ;;  %v5727_v24 = vld [vmem:[#allocation8 + $0xa8] sm:$0xff]  }
 0x220   :  { %3888 = vmatpush1.bf16.msra.mxu1 %v5655_v14  ;;  %3846 = vmatprep.subr.bf16.mxu0 %v5660_v40  ;;  %v3435_v14 = vadd.f32 %v6033_v6, %v3392_v34  ;;  %v5702_v40 = vld [vmem:[#allocation5 + $0xd0c] ss:$16 sps:$4 sm:$0xff]   ;;  %v5703_v23 = vld [vmem:[#allocation5 + $0xf08] ss:$16 sps:$4 sm:$0xff]  }
 0x221   :  { %3889 = vmatprep.subr.bf16.mxu1 %v5663_v17  ;;  %v3482_v20 = vadd.f32 %v6053_v53, %v3439_v57  ;;  %v5706_v6 = vld [vmem:[#allocation8 + $0x78] sm:$0xff]   ;;  %v5734_v34 = vld [vmem:[#allocation8 + $0xc8] sm:$0xff]  }
 0x222   :  { %v5730_v48 = vld [vmem:[#allocation8 + $0xd8] sm:$0xff]   ;;  %v5735_v57 = vld [vmem:[#allocation8 + $0x88] sm:$0xff]  }
 0x223   :  { %3847 = vmatpush2.bf16.msra.mxu0 %v5658_v25  ;;  %v3478_v25 = vadd.f32 %v6046_v59, %v3435_v14 }
 0x224   :  { %3890 = vmatpush2.bf16.msra.mxu1 %v5661_v26  ;;  %3848 = vmatprep.subr.bf16.mxu0 %v5666_v27  ;;  %v5739_v8 = vpop.eup %5738  ;;  %v3525_v26 = vadd.f32 %v6063_v46, %v3482_v20  ;;  %v5709_v46 = vld [vmem:[#allocation8 + $0x30] sm:$0xff]  }
 0x225   :  { %3891 = vmatprep.subr.bf16.mxu1 %v5669_v0  ;;  %v5741_v49 = vpop.eup %5740  ;;  %v3945_v17 = vadd.f32 1.0, %v5739_v8  ;;  %v3521_v0 = vadd.f32 %v6055_v39, %v3478_v25  ;;  %v5710_v39 = vld [vmem:[#allocation8 + $0x68] sm:$0xff]   ;;  %v5733_v8 = vld [vmem:[#allocation8 + $0x90] sm:$0xff]   ;;  %v658_v25 = vsub.s32 2, %v6035_v9 }
 0x226   :  { %v3941_v21 = vadd.f32 1.0, %v5741_v49 }
 0x227   :  { %3849 = vmatpush2.bf16.msra.mxu0 %v5664_v33  ;;  %v3953_v27 = vmul.f32 %v3945_v17, %v3921_v22  ;;  %v3568_v33 = vadd.f32 %v6067_v16, %v3525_v26  ;;  %v3564_v59 = vadd.f32 %v6061_v29, %v3521_v0  ;;  %v5712_v16 = vld [vmem:[#allocation8 + $0x60] sm:$0xff]   ;;  %v5714_v29 = vld [vmem:[#allocation8 + $0x58] sm:$0xff]  }
 0x228   :  { %3892 = vmatpush2.bf16.msra.mxu1 %v5667_v35  ;;  %3850 = vmatprep.subr.bf16.mxu0 %v5672_v36  ;;  %v3949_v53 = vmul.f32 %v3941_v21, %v3917_v15  ;;  %v5708_v35 = vld [vmem:[#allocation8 + $0x70] sm:$0xff]   ;;  %v662_v15 = vsub.s32 3, %v6035_v9 }
 0x229   :  { %3893 = vmatprep.subr.bf16.mxu1 %v5675_v38  ;;  %v3928_v32 = vmul.f32 0.70710677, %v3568_v33  ;;  %v3924_v36 = vmul.f32 0.70710677, %v3564_v59  ;;  %v5711_v38 = vld [vmem:[#allocation8 + $0x28] sm:$0xff]  }
 0x22a   :  { %v3957_v30 = vpack.c.bf16 %v3953_v27, %v3949_v53  ;;  %v659_v27 = vrot.slane %v6044_v58, %v658_v25 }
 0x22b   :  { %3851 = vmatpush2.bf16.msra.mxu0 %v5670_v43  ;;  %5742 = verf.f32 %v3928_v32  ;;  %v5718_v43 = vld [vmem:[#allocation8 + $0x48] sm:$0xff]  }
 0x22c   :  { %3894 = vmatpush2.bf16.msra.mxu1 %v5673_v44  ;;  %3852 = vmatprep.subr.bf16.mxu0 %v5678_v13  ;;  %5744 = verf.f32 %v3924_v36  ;;  %v5719_v13 = vld [vmem:[#allocation8 + $0x8] sm:$0xff]  }
 0x22d   :  { %3895 = vmatprep.subr.bf16.mxu1 %v5681_v50 }
 0x22f   :  { %3853 = vmatpush2.bf16.msra.mxu0 %v5676_v31 }
 0x230   :  { %3896 = vmatpush2.bf16.msra.mxu1 %v5679_v56  ;;  %3854 = vmatprep.subr.bf16.mxu0 %v5684_v52  ;;  %v3920_v56 = vmul.f32 0.5, %v3568_v33  ;;  %v3916_v52 = vmul.f32 0.5, %v3564_v59 }
 0x231   :  { %3897 = vmatprep.subr.bf16.mxu1 %v5687_v47 }
 0x233   :  { %3855 = vmatpush2.bf16.msra.mxu0 %v5682_v61 }
 0x234   :  { %3898 = vmatpush2.bf16.msra.mxu1 %v5685_v54  ;;  %3856 = vmatprep.subr.bf16.mxu0 %v5690_v63  ;;  %v5722_v54 = vld [vmem:[#allocation8 + $0xf8] sm:$0xff]   ;;  %v5725_v63 = vld [vmem:[#allocation8 + $0xb0] sm:$0xff]  }
 0x235   :  { %3899 = vmatprep.subr.bf16.mxu1 %v5693_v55  ;;  %v5726_v55 = vld [vmem:[#allocation8 + $0xe8] sm:$0xff]  }
 0x237   :  { %3857 = vmatpush2.bf16.msra.mxu0 %v5688_v2  ;;  %v5728_v2 = vld [vmem:[#allocation8 + $0xe0] sm:$0xff]  }
 0x238   :  { %3900 = vmatpush2.bf16.msra.mxu1 %v5691_v3  ;;  %3858 = vmatprep.subr.bf16.mxu0 %v5696_v4  ;;  %v5743_v44 = vpop.eup %5742  ;;  %v5729_v3 = vld [vmem:[#allocation8 + $0xa0] sm:$0xff]   ;;  %v5731_v4 = vld [vmem:[#allocation8 + $0x98] sm:$0xff]  }
 0x239   :  { %3901 = vmatprep.subr.bf16.mxu1 %v5699_v7  ;;  %v5745_v12 = vpop.eup %5744  ;;  %v3944_v50 = vadd.f32 1.0, %v5743_v44  ;;  %v5732_v7 = vld [vmem:[#allocation8 + $0xd0] sm:$0xff]  }
 0x23a   :  { %v3940_v31 = vadd.f32 1.0, %v5745_v12 }
 0x23b   :  { %3859 = vmatpush2.bf16.msra.mxu0 %v5694_v10  ;;  %v3952_v47 = vmul.f32 %v3944_v50, %v3920_v56  ;;  %v5736_v10 = vld [vmem:[#allocation8 + $0xc0] sm:$0xff]  }
 0x23c   :  { %3902 = vmatpush2.bf16.msra.mxu1 %v5697_v11  ;;  %3860 = vmatprep.subr.bf16.mxu0 %v5702_v40  ;;  %v3948_v60 = vmul.f32 %v3940_v31, %v3916_v52  ;;  %v5737_v11 = vld [vmem:[#allocation8 + $0x80] sm:$0xff]  }
 0x23d   :  { %3903 = vmatprep.subr.bf16.mxu1 %v5705_v5 }
 0x23e   :  { %v3956_v61 = vpack.c.bf16 %v3952_v47, %v3948_v60 }
 0x23f   :  { %3861 = vmatpush2.bf16.msra.mxu0 %v5700_v28 }
 0x240   :  { %3904 = vmatpush2.bf16.msra.mxu1 %v5703_v23  ;;  %4881 = vmatprep.subr.bf16.mxu0 %v5706_v6 }
 0x241   :  { %4903 = vmatprep.subr.bf16.mxu1 %v5722_v54 }
 0x242   :  { %3863 = vmatmul.mubr.bf16.vlgmr.msra.gmra.mxu0 %v5987_v18  ;;  %v5715_v18 = vld [vmem:[#allocation8 + $0x18] sm:$0xff]   ;;  %v3606_v49 = vpop.f32.mrf.mxu0 }
 0x243   :  { %3906 = vmatmul.mubr.bf16.vlgmr.msra.gmra.mxu1 %v5989_v19  ;;  %4882 = vmatpush3.bf16.msra.mxu0 %v5707_v1  ;;  %v5716_v19 = vld [vmem:[#allocation8 + $0x50] sm:$0xff]   ;;  %v3649_v14 = vpop.f32.mrf.mxu1  ;;  %v663_v1 = vrot.slane %v6044_v58, %v662_v15  ;;  %v3607_v33 = vadd.f32 %v3606_v49, %v659_v27 }
 0x244   :  { %4255 = vmatprep.mubr.bf16.mxu0 %v3957_v30  ;;  %4883 = vmatprep.subr.bf16.mxu0 %v5708_v35  ;;  %v3608_v40 = vpop.f32.mrf.mxu0 }
 0x245   :  { %4904 = vmatpush3.bf16.msra.mxu1 %v5723_v62  ;;  %v3651_v5 = vpop.f32.mrf.mxu1  ;;  %v3609_v59 = vadd.f32 %v3608_v40, %v663_v1 }
 0x246   :  { %4905 = vmatprep.subr.bf16.mxu1 %v5724_v37  ;;  %v3610_v17 = vpop.f32.mrf.mxu0 }
 0x247   :  { %4884 = vmatpush3.bf16.msra.mxu0 %v5709_v46  ;;  %v3653_v20 = vpop.f32.mrf.mxu1  ;;  %v3611_v36 = vadd.f32 %v3610_v17, %v659_v27 }
 0x248   :  { %4885 = vmatprep.subr.bf16.mxu0 %v5710_v39  ;;  %v3612_v21 = vpop.f32.mrf.mxu0  ;;  %v3650_v39 = vadd.f32 %v3649_v14, %v3607_v33 }
 0x249   :  { %4906 = vmatpush3.bf16.msra.mxu1 %v5725_v63  ;;  %v3655_v22 = vpop.f32.mrf.mxu1  ;;  %v3654_v9 = vadd.f32 %v3653_v20, %v3611_v36 }
 0x24a   :  { %4907 = vmatprep.subr.bf16.mxu1 %v5726_v55 }
 0x24b   :  { %4886 = vmatpush3.bf16.msra.mxu0 %v5711_v38  ;;  %v3652_v38 = vadd.f32 %v3651_v5, %v3609_v59 }
 0x24c   :  { %4887 = vmatprep.subr.bf16.mxu0 %v5712_v16 }
 0x24d   :  { %4908 = vmatpush3.bf16.msra.mxu1 %v5727_v24 }
 0x24e   :  { %4909 = vmatprep.subr.bf16.mxu1 %v5728_v2 }
 0x24f   :  { %4888 = vmatpush3.bf16.msra.mxu0 %v5713_v41  ;;  %v3613_v41 = vadd.f32 %v3612_v21, %v663_v1 }
 0x250   :  { %4889 = vmatprep.subr.bf16.mxu0 %v5714_v29 }
 0x251   :  { %4910 = vmatpush3.bf16.msra.mxu1 %v5729_v3  ;;  %v3656_v44 = vadd.f32 %v3655_v22, %v3613_v41 }
 0x252   :  { %4911 = vmatprep.subr.bf16.mxu1 %v5730_v48 }
 0x253   :  { %4890 = vmatpush3.bf16.msra.mxu0 %v5715_v18 }
 0x254   :  { %4891 = vmatprep.subr.bf16.mxu0 %v5716_v19 }
 0x255   :  { %4912 = vmatpush3.bf16.msra.mxu1 %v5731_v4 }
 0x256   :  { %4913 = vmatprep.subr.bf16.mxu1 %v5732_v7 }
 0x257   :  { %4892 = vmatpush3.bf16.msra.mxu0 %v5717_v42 }
 0x258   :  { %4893 = vmatprep.subr.bf16.mxu0 %v5718_v43 }
 0x259   :  { %4914 = vmatpush3.bf16.msra.mxu1 %v5733_v8 }
 0x25a   :  { %4915 = vmatprep.subr.bf16.mxu1 %v5734_v34 }
 0x25b   :  { %4894 = vmatpush3.bf16.msra.mxu0 %v5719_v13 }
 0x25c   :  { %4895 = vmatprep.subr.bf16.mxu0 %v5720_v51 }
 0x25d   :  { %4916 = vmatpush3.bf16.msra.mxu1 %v5735_v57 }
 0x25e   :  { %4917 = vmatprep.subr.bf16.mxu1 %v5736_v10 }
 0x25f   :  { %4896 = vmatpush3.bf16.msra.mxu0 %v5721_v45 }
 0x261   :  { %4918 = vmatpush3.bf16.msra.mxu1 %v5737_v11 }
 0x262   :  { %4256 = vmatmul.mubr.bf16.vlgmr.msra.gmra.mxu0 %v3956_v61 }
 0x282   :  { %v3692_v28 = vpop.f32.mrf.mxu0 }
 0x283   :  { %v3735_v23 = vpop.f32.mrf.mxu1  ;;  %v3693_v16 = vadd.f32 %v3692_v28, %v3650_v39 }
 0x284   :  { %v3694_v26 = vpop.f32.mrf.mxu0 }
 0x285   :  { %v3737_v6 = vpop.f32.mrf.mxu1  ;;  %v3695_v19 = vadd.f32 %v3694_v26, %v3652_v38  ;;  %v3736_v42 = vadd.f32 %v3735_v23, %v3693_v16 }
 0x286   :  { %v3696_v0 = vpop.f32.mrf.mxu0 }
 0x287   :  { %v3739_v53 = vpop.f32.mrf.mxu1  ;;  %v3697_v43 = vadd.f32 %v3696_v0, %v3654_v9  ;;  %v3738_v13 = vadd.f32 %v3737_v6, %v3695_v19 }
 0x288   :  { %v3698_v35 = vpop.f32.mrf.mxu0 }
 0x289   :  { %v3741_v30 = vpop.f32.mrf.mxu1  ;;  %v3699_v51 = vadd.f32 %v3698_v35, %v3656_v44  ;;  %v3740_v31 = vadd.f32 %v3739_v53, %v3697_v43 }
 0x28b   :  { %v3742_v61 = vadd.f32 %v3741_v30, %v3699_v51 }
 0x2c2   :  { %v3778_v46 = vpop.f32.mrf.mxu0 }
 0x2c3   :  { %v3821_v32 = vpop.f32.mrf.mxu1  ;;  %v3779_v50 = vadd.f32 %v3778_v46, %v3736_v42 }
 0x2c4   :  { %v3780_v29 = vpop.f32.mrf.mxu0 }
 0x2c5   :  { %v3823_v18 = vpop.f32.mrf.mxu1  ;;  %v3781_v56 = vadd.f32 %v3780_v29, %v3738_v13  ;;  %v3822_v47 = vadd.f32 %v3821_v32, %v3779_v50 }
 0x2c6   :  { %v3782_v12 = vpop.f32.mrf.mxu0 }
 0x2c7   :  { %v3825_v58 = vpop.f32.mrf.mxu1  ;;  %v3783_v60 = vadd.f32 %v3782_v12, %v3740_v31  ;;  %v3824_v37 = vadd.f32 %v3823_v18, %v3781_v56  ;;  %v4848_v18 = vld [vmem:[#allocation10] ss:$0 sm:$0xff] }
 0x2c8   :  { %v3784_v45 = vpop.f32.mrf.mxu0 }
 0x2c9   :  { %v3827_v52 = vpop.f32.mrf.mxu1  ;;  %v3785_v55 = vadd.f32 %v3784_v45, %v3742_v61  ;;  %v3826_v3 = vadd.f32 %v3825_v58, %v3783_v60 }
 0x2cb   :  { %v3828_v11 = vadd.f32 %v3827_v52, %v3785_v55 }
 0x302   :  { %v3864_v54 = vpop.f32.mrf.mxu0 }
 0x303   :  { %v3907_v62 = vpop.f32.mrf.mxu1  ;;  %v3865_v63 = vadd.f32 %v3864_v54, %v3822_v47 }
 0x304   :  { %v3866_v24 = vpop.f32.mrf.mxu0 }
 0x305   :  { %v3909_v2 = vpop.f32.mrf.mxu1  ;;  %v3908_v48 = vadd.f32 %v3907_v62, %v3865_v63  ;;  %v3867_v4 = vadd.f32 %v3866_v24, %v3824_v37 }
 0x306   :  { %v3868_v7 = vpop.f32.mrf.mxu0 }
 0x307   :  { %v3926_v8 = vmul.f32 0.70710677, %v3908_v48  ;;  %v3910_v34 = vadd.f32 %v3909_v2, %v3867_v4  ;;  %v3869_v57 = vadd.f32 %v3868_v7, %v3826_v3  ;;  %v3911_v10 = vpop.f32.mrf.mxu1  ;;  %v3918_v35 = vmul.f32 0.5, %v3908_v48 }
 0x308   :  { %v3870_v49 = vpop.f32.mrf.mxu0 }
 0x309   :  { %v3927_v14 = vmul.f32 0.70710677, %v3910_v34  ;;  %v3912_v40 = vadd.f32 %v3911_v10, %v3869_v57  ;;  %v3871_v5 = vadd.f32 %v3870_v49, %v3828_v11  ;;  %5746 = verf.f32 %v3926_v8  ;;  %v3913_v20 = vpop.f32.mrf.mxu1 }
 0x30a   :  { %v3919_v53 = vmul.f32 0.5, %v3910_v34 }
 0x30b   :  { %v3930_v17 = vmul.f32 0.70710677, %v3912_v40  ;;  %5748 = verf.f32 %v3927_v14  ;;  %v3914_v21 = vadd.f32 %v3913_v20, %v3871_v5  ;;  %v3922_v0 = vmul.f32 0.5, %v3912_v40 }
 0x30d   :  { %5750 = verf.f32 %v3930_v17  ;;  %v3931_v22 = vmul.f32 0.70710677, %v3914_v21  ;;  %v3923_v1 = vmul.f32 0.5, %v3914_v21 }
 0x30f   :  { %5752 = verf.f32 %v3931_v22 }
 0x316   :  { %v5747_v28 = vpop.eup %5746 }
 0x317   :  { %v3942_v27 = vadd.f32 1.0, %v5747_v28 }
 0x318   :  { %v5749_v23 = vpop.eup %5748 }
 0x319   :  { %v3943_v6 = vadd.f32 1.0, %v5749_v23  ;;  %v3950_v32 = vmul.f32 %v3942_v27, %v3918_v35 }
 0x31a   :  { %v5751_v25 = vpop.eup %5750 }
 0x31b   :  { %v3946_v26 = vadd.f32 1.0, %v5751_v25  ;;  %v3951_v59 = vmul.f32 %v3943_v6, %v3919_v53 }
 0x31c   :  { %v5753_v15 = vpop.eup %5752 }
 0x31d   :  { %v3947_v33 = vadd.f32 1.0, %v5753_v15  ;;  %v3954_v30 = vmul.f32 %v3946_v26, %v3922_v0 }
 0x31f   :  { %v3955_v46 = vmul.f32 %v3947_v33, %v3923_v1  ;;  %v3958_v36 = vpack.c.bf16 %v3954_v30, %v3950_v32 }
 0x321   :  { %v3959_v39 = vpack.c.bf16 %v3955_v46, %v3951_v59 }
 0x322   :  { %v4897_v38 = vpop.f32.mrf.mxu0 }
 0x323   :  { %4296 = vmatprep.mubr.bf16.mxu1 %v3959_v39 }
 0x324   :  { %4297 = vmatmul.mubr.bf16.vlgmr.msra.gmra.mxu1 %v3958_v36  ;;  %v4898_v16 = vpop.f32.mrf.mxu0 }
 0x325   :  { %v4899_v29 = vadd.f32 %v4898_v16, %v4897_v38 }
 0x326   :  { %v4900_v41 = vpop.f32.mrf.mxu0 }
 0x327   :  { %v4258_v43 = vadd.f32 %v4899_v29, %v4848_v18 }
 0x328   :  { %v4901_v9 = vpop.f32.mrf.mxu0 }
 0x329   :  { %v4902_v44 = vadd.f32 %v4901_v9, %v4900_v41 }
 0x32b   :  { %v4261_v51 = vadd.f32 %v4902_v44, %v4848_v18 }
 0x3e4   :  { %v4919_v19 = vpop.f32.mrf.mxu1 }
 0x3e6   :  { %v4920_v42 = vpop.f32.mrf.mxu1 }
 0x3e7   :  { %v4921_v12 = vadd.f32 %v4920_v42, %v4919_v19 }
 0x3e8   :  { %v4922_v58 = vpop.f32.mrf.mxu1 }
 0x3e9   :  { %v4299_v13 = vadd.f32 %v4921_v12, %v4258_v43 }
 0x3ea   :  { %v4923_v50 = vpop.f32.mrf.mxu1 }
 0x3eb   :  { %v4307_v31 = vmul.f32 0.70710677, %v4299_v13  ;;  %v4924_v56 = vadd.f32 %v4923_v50, %v4922_v58  ;;  %v4305_v60 = vmul.f32 0.5, %v4299_v13 }
 0x3ed   :  { %5754 = verf.f32 %v4307_v31  ;;  %v4302_v45 = vadd.f32 %v4924_v56, %v4261_v51 }
 0x3ef   :  { %v4308_v52 = vmul.f32 0.70710677, %v4302_v45  ;;  %v4306_v37 = vmul.f32 0.5, %v4302_v45 }
 0x3f1   :  { %5756 = verf.f32 %v4308_v52 }
 0x3fa   :  { %v5755_v47 = vpop.eup %5754 }
 0x3fb   :  { %v4311_v61 = vadd.f32 1.0, %v5755_v47 }
 0x3fd   :  { %v4313_v54 = vmul.f32 %v4311_v61, %v4305_v60 }
 0x3fe   :  { %v5757_v62 = vpop.eup %5756 }
 0x3ff   :  { %4315 = vst [vmem:[#allocation11] sm:$0xff] %v4313_v54  ;;  %v4312_v63 = vadd.f32 1.0, %v5757_v62 }
 0x401   :  { %v4314_v55 = vmul.f32 %v4312_v63, %v4306_v37 }
 0x403   :  { %4316 = vst [vmem:[#allocation11 + $0x8] sm:$0xff] %v4314_v55 }
 0x404   :  { %5869 = shalt.err (!%p5866_p1)
}
 0x405   :  { %s5898_s23 = smov 8  }
 0x406   :  { %4328 = dma.vmem_to_hbm [thread:$0]  %s4323_s4, 256, %s6111_s5, [#allocation4], %s5894_s10, %s5894_s10, %s5898_s23  }
 0x407   :  { %5884 = dma.done.wait [#allocation4], 256  }
 0x408   :  { %5885 = vsyncadd [#allocation4], 4294967040 }
 0x409   :  { %4332 = vsyncpa [#allocation3], 1 }
 0x40a   :  { %4333 = vsyncpa [#allocation6], 1 }
 0x40b   :  { %4334 = vsyncpa [#allocation9], 1 }
 0x40c   :  { %4335 = vsyncpa [#allocation4], 1 }

// kernel: tpu_custom_call.1
= control target key start
LH: loop header
LB: loop body
LE: loop exit
PB: predicated region body
PF: predicated region fallthrough
CT: control target
= control target key end

     0   :  { %10 = vsyncpa [#allocation3], 0  ;;  %s6106_s0 = inlined_call_operand.hbm [shape: f32[16,2048], index: 0, kind: input, shape index: {}]   ;;  %s6107_s1 = inlined_call_operand.hbm [shape: bf16[2048,512], index: 1, kind: input, shape index: {}]   ;;  %s6108_s2 = inlined_call_operand.hbm [shape: f32[1,512], index: 2, kind: input, shape index: {}]   ;;  %s6109_s3 = inlined_call_operand.hbm [shape: bf16[512,128], index: 3, kind: input, shape index: {}]   ;;  %s6110_s4 = inlined_call_operand.hbm [shape: f32[1,128], index: 4, kind: input, shape index: {}]   ;;  %s6111_s5 = inlined_call_operand.hbm [shape: f32[16,128], index: 5, kind: output, shape index: {}]  }
   0x1   :  { %11 = vsyncpa [#allocation6], 0 }
   0x2   :  { %12 = vsyncpa [#allocation9], 0 }
   0x3   :  { %13 = vsyncpa [#allocation4], 0  ;;  %s5886_s18 = smov [#allocation5]  }
   0x4   :  { %s31_s19 = sshll.u32 %s5886_s18, 4  ;;  %s32_s19 = int_to_ptr.vmem [resolvable:$true] %s31_s19 }
   0x5   :  { %s5766_s20 = scalar_lea.vmem %s32_s19, 65536  ;;  %p5771_p1 = scmp.lt.s32.totalorder %s32_s19, %s32_s19 }
   0x6   :  { %p5767_p0 = scmp.ne.s32.totalorder %s32_s19, %s5766_s20  ;;  %p5772_p2 = scmp.lt.s32.totalorder %s5766_s20, %s5766_s20 }
   0x8   :  { %p5773_p3 = por %p5772_p2, %p5771_p1 }
   0xa   :  { %p5774_p4 = pnand %p5773_p3, %p5767_p0 }
   0xc   :  { %5777 = shalt.err (!%p5774_p4)
}
   0xd   :  { %s5887_s21 = smov 256   ;;  %s5888_s22 = smov 16  }
   0xe   :  { %37 = dma.hbm_to_vmem [thread:$0]  %s6107_s1, 65536, %s32_s19, [#allocation6], %s5887_s21, %s5887_s21, %s5888_s22  }
   0xf   :  { %s5889_s25 = smov [#allocation8]  }
  0x10   :  { %s53_s26 = sshll.u32 %s5889_s25, 4  ;;  %s54_s26 = int_to_ptr.vmem [resolvable:$true] %s53_s26 }
  0x11   :  { %s5786_s27 = scalar_lea.vmem %s54_s26, 4096  ;;  %p5791_p6 = scmp.lt.s32.totalorder %s54_s26, %s54_s26 }
  0x12   :  { %p5787_p5 = scmp.ne.s32.totalorder %s54_s26, %s5786_s27  ;;  %p5792_p7 = scmp.lt.s32.totalorder %s5786_s27, %s5786_s27 }
  0x14   :  { %p5793_p8 = por %p5792_p7, %p5791_p6 }
  0x16   :  { %p5794_p9 = pnand %p5793_p8, %p5787_p5 }
  0x18   :  { %5797 = shalt.err (!%p5794_p9)
}
  0x19   :  { %s5890_s28 = smov 64   ;;  %s5891_s29 = smov 4  }
  0x1a   :  { %59 = dma.hbm_to_vmem [thread:$0]  %s6109_s3, 4096, %s54_s26, [#allocation9], %s5890_s28, %s5890_s28, %s5891_s29  }
  0x1b   :  { %s5892_s7 = smov [#allocation2]  }
  0x1c   :  { %s19_s8 = sshll.u32 %s5892_s7, 4  ;;  %s20_s8 = int_to_ptr.vmem [resolvable:$true] %s19_s8 }
  0x1d   :  { %s5806_s1 = scalar_lea.vmem %s20_s8, 4096  ;;  %p5811_p11 = scmp.lt.s32.totalorder %s20_s8, %s20_s8 }
  0x1e   :  { %p5807_p10 = scmp.ne.s32.totalorder %s20_s8, %s5806_s1  ;;  %p5812_p12 = scmp.lt.s32.totalorder %s5806_s1, %s5806_s1 }
  0x20   :  { %p5813_p13 = por %p5812_p12, %p5811_p11 }
  0x22   :  { %p5814_p0 = pnand %p5813_p13, %p5807_p10 }
  0x24   :  { %5817 = shalt.err (!%p5814_p0)
}
  0x25   :  { %s5893_s9 = smov 2048   ;;  %s5894_s10 = smov 128  }
  0x26   :  { %25 = dma.hbm_to_vmem [thread:$0]  %s6106_s0, 4096, %s20_s8, [#allocation3], %s5893_s9, %s5893_s9, %s5894_s10  }
  0x27   :  { %s5895_s13 = smov [#allocation7]   ;;  %s5896_s3 = smov [#allocation10]  }
  0x28   :  { %s44_s14 = sshll.u32 %s5895_s13, 4  ;;  %s66_s15 = sshll.u32 %s5896_s3, 4  ;;  %s45_s14 = int_to_ptr.vmem [resolvable:$true] %s44_s14  ;;  %s67_s15 = int_to_ptr.vmem [resolvable:$true] %s66_s15 }
  0x29   :  { %s5826_s16 = scalar_lea.vmem %s45_s14, 64  ;;  %p5831_p2 = scmp.lt.s32.totalorder %s45_s14, %s45_s14 }
  0x2a   :  { %p5827_p1 = scmp.ne.s32.totalorder %s45_s14, %s5826_s16  ;;  %p5832_p3 = scmp.lt.s32.totalorder %s5826_s16, %s5826_s16 }
  0x2c   :  { %p5833_p4 = por %p5832_p3, %p5831_p2 }
  0x2e   :  { %p5834_p5 = pnand %p5833_p4, %p5827_p1 }
  0x30   :  { %5837 = shalt.err (!%p5834_p5)
}
  0x31   :  { %47 = dma.hbm_to_vmem [thread:$0]  %s6108_s2, 64, %s45_s14, [#allocation6]  }
  0x32   :  { %s5846_s19 = scalar_lea.vmem %s67_s15, 16  ;;  %s5850_s0 = scalar_lea.vmem %s67_s15, 32 }
  0x33   :  { %p5847_p6 = scmp.ne.s32.totalorder %s67_s15, %s5846_s19  ;;  %p5851_p7 = scmp.lt.s32.totalorder %s67_s15, %s67_s15 }
  0x34   :  { %p5852_p8 = scmp.lt.s32.totalorder %s5850_s0, %s5846_s19 }
  0x36   :  { %p5853_p9 = por %p5852_p8, %p5851_p7 }
  0x38   :  { %p5854_p10 = pnand %p5853_p9, %p5847_p6 }
  0x3a   :  { %5857 = shalt.err (!%p5854_p10)
}
  0x3b   :  { %69 = dma.hbm_to_vmem [thread:$0]  %s6110_s4, 16, %s67_s15, [#allocation9]  }
  0x3c   :  { %5878 = dma.done.wait [#allocation3], 4096  }
  0x3d   :  { %5879 = vsyncadd [#allocation3], 4294963200 }
  0x3e   :  { %5880 = dma.done.wait [#allocation6], 65600  }
  0x3f   :  { %5881 = vsyncadd [#allocation6], 4294901696 }
  0x40   :  { %5882 = dma.done.wait [#allocation9], 4112  }
  0x41   :  { %5883 = vsyncadd [#allocation9], 4294963184  ;;  %v4938_v0 = vld [vmem:[#allocation5 + $0xe4] ss:$16 sps:$4 sm:$0xff]   ;;  %v4942_v2 = vld [vmem:[#allocation5 + $0xe0] ss:$16 sps:$4 sm:$0xff]  }
  0x42   :  { %v4940_v1 = vld [vmem:[#allocation5 + $0x2e4] ss:$16 sps:$4 sm:$0xff]   ;;  %3228 = vmatprep.subr.bf16.mxu0 %v4938_v0  ;;  %v4943_v3 = vld [vmem:[#allocation5 + $0x2e0] ss:$16 sps:$4 sm:$0xff]   ;;  %v87_v46 = vld [vmem:[#allocation2 + $0x8] sm:$0xff]  ;;  %s5897_s2 = smov [#allocation11]  }
  0x43   :  { %3271 = vmatprep.subr.bf16.mxu1 %v4940_v1  ;;  %v4944_v4 = vld [vmem:[#allocation5 + $0xc4] ss:$16 sps:$4 sm:$0xff]   ;;  %3229 = vmatpush1.bf16.msra.mxu0 %v4942_v2  ;;  %v4948_v6 = vld [vmem:[#allocation5 + $0xc0] ss:$16 sps:$4 sm:$0xff]   ;;  %v103_v47 = vld [vmem:[#allocation2 + $0x88] sm:$0xff]  ;;  %s4322_s4 = sshll.u32 %s5897_s2, 4  ;;  %s4323_s4 = int_to_ptr.vmem [resolvable:$true] %s4322_s4 }
  0x44   :  { %3272 = vmatpush1.bf16.msra.mxu1 %v4943_v3  ;;  %v4946_v5 = vld [vmem:[#allocation5 + $0x2c4] ss:$16 sps:$4 sm:$0xff]   ;;  %3230 = vmatprep.subr.bf16.mxu0 %v4944_v4  ;;  %v4949_v7 = vld [vmem:[#allocation5 + $0x2c0] ss:$16 sps:$4 sm:$0xff]   ;;  %v89_v48 = vld [vmem:[#allocation2 + $0x18] sm:$0xff]  ;;  %v5945_v53 = vpack.c.bf16 %v103_v47, %v87_v46  ;;  %s5858_s22 = scalar_lea.vmem %s4323_s4, 256  ;;  %p5863_p12 = scmp.lt.s32.totalorder %s4323_s4, %s4323_s4 }
  0x45   :  { %3273 = vmatprep.subr.bf16.mxu1 %v4946_v5  ;;  %v4950_v8 = vld [vmem:[#allocation5 + $0xa4] ss:$16 sps:$4 sm:$0xff]   ;;  %v4954_v10 = vld [vmem:[#allocation5 + $0xa0] ss:$16 sps:$4 sm:$0xff]   ;;  %v105_v49 = vld [vmem:[#allocation2 + $0x98] sm:$0xff]  ;;  %p5859_p11 = scmp.ne.s32.totalorder %s4323_s4, %s5858_s22  ;;  %p5864_p13 = scmp.lt.s32.totalorder %s5858_s22, %s5858_s22 }
  0x46   :  { %v4952_v9 = vld [vmem:[#allocation5 + $0x2a4] ss:$16 sps:$4 sm:$0xff]   ;;  %v4955_v11 = vld [vmem:[#allocation5 + $0x2a0] ss:$16 sps:$4 sm:$0xff]   ;;  %v5947_v54 = vpack.c.bf16 %v105_v49, %v89_v48  ;;  %3260 = vmatprep.mubr.bf16.mxu0 %v5945_v53  ;;  %v109_v46 = vld [vmem:[#allocation2 + $0xb8] sm:$0xff] }
  0x47   :  { %3231 = vmatpush1.bf16.msra.mxu0 %v4948_v6  ;;  %v4956_v12 = vld [vmem:[#allocation5 + $0x84] ss:$16 sps:$4 sm:$0xff]   ;;  %v4960_v14 = vld [vmem:[#allocation5 + $0x80] ss:$16 sps:$4 sm:$0xff]   ;;  %p5865_p0 = por %p5864_p13, %p5863_p12 }
  0x48   :  { %3274 = vmatpush1.bf16.msra.mxu1 %v4949_v7  ;;  %3232 = vmatprep.subr.bf16.mxu0 %v4950_v8  ;;  %v4958_v13 = vld [vmem:[#allocation5 + $0x284] ss:$16 sps:$4 sm:$0xff]   ;;  %v4961_v15 = vld [vmem:[#allocation5 + $0x280] ss:$16 sps:$4 sm:$0xff]  }
  0x49   :  { %3275 = vmatprep.subr.bf16.mxu1 %v4952_v9  ;;  %v4962_v16 = vld [vmem:[#allocation5 + $0x64] ss:$16 sps:$4 sm:$0xff]   ;;  %v4966_v18 = vld [vmem:[#allocation5 + $0x60] ss:$16 sps:$4 sm:$0xff]   ;;  %3303 = vmatprep.mubr.bf16.mxu1 %v5947_v54  ;;  %p5866_p1 = pnand %p5865_p0, %p5859_p11 }
  0x4a   :  { %v4964_v17 = vld [vmem:[#allocation5 + $0x264] ss:$16 sps:$4 sm:$0xff]   ;;  %v4967_v19 = vld [vmem:[#allocation5 + $0x260] ss:$16 sps:$4 sm:$0xff]  }
  0x4b   :  { %3233 = vmatpush1.bf16.msra.mxu0 %v4954_v10  ;;  %v4968_v20 = vld [vmem:[#allocation5 + $0x44] ss:$16 sps:$4 sm:$0xff]   ;;  %v4972_v22 = vld [vmem:[#allocation5 + $0x40] ss:$16 sps:$4 sm:$0xff]  }
  0x4c   :  { %3276 = vmatpush1.bf16.msra.mxu1 %v4955_v11  ;;  %3234 = vmatprep.subr.bf16.mxu0 %v4956_v12  ;;  %v4970_v21 = vld [vmem:[#allocation5 + $0x244] ss:$16 sps:$4 sm:$0xff]   ;;  %v4973_v23 = vld [vmem:[#allocation5 + $0x240] ss:$16 sps:$4 sm:$0xff]  }
  0x4d   :  { %3277 = vmatprep.subr.bf16.mxu1 %v4958_v13  ;;  %v4974_v24 = vld [vmem:[#allocation5 + $0x24] ss:$16 sps:$4 sm:$0xff]   ;;  %v4978_v26 = vld [vmem:[#allocation5 + $0x20] ss:$16 sps:$4 sm:$0xff]  }
  0x4e   :  { %v4976_v25 = vld [vmem:[#allocation5 + $0x224] ss:$16 sps:$4 sm:$0xff]   ;;  %v4979_v27 = vld [vmem:[#allocation5 + $0x220] ss:$16 sps:$4 sm:$0xff]  }
  0x4f   :  { %3235 = vmatpush1.bf16.msra.mxu0 %v4960_v14  ;;  %v4980_v28 = vld [vmem:[#allocation5 + $0x4] ss:$16 sps:$4 sm:$0xff]   ;;  %v4984_v30 = vld [vmem:[#allocation5] ss:$16 sps:$4 sm:$0xff]  }
  0x50   :  { %3278 = vmatpush1.bf16.msra.mxu1 %v4961_v15  ;;  %3236 = vmatprep.subr.bf16.mxu0 %v4962_v16  ;;  %v4982_v29 = vld [vmem:[#allocation5 + $0x204] ss:$16 sps:$4 sm:$0xff]   ;;  %v4985_v31 = vld [vmem:[#allocation5 + $0x200] ss:$16 sps:$4 sm:$0xff]  }
  0x51   :  { %3279 = vmatprep.subr.bf16.mxu1 %v4964_v17  ;;  %v4986_v32 = vld [vmem:[#allocation5 + $0x1e4] ss:$16 sps:$4 sm:$0xff]   ;;  %v4990_v34 = vld [vmem:[#allocation5 + $0x1e0] ss:$16 sps:$4 sm:$0xff]  }
  0x52   :  { %v4988_v33 = vld [vmem:[#allocation5 + $0x3e4] ss:$16 sps:$4 sm:$0xff]   ;;  %v4991_v35 = vld [vmem:[#allocation5 + $0x3e0] ss:$16 sps:$4 sm:$0xff]  }
  0x53   :  { %3237 = vmatpush1.bf16.msra.mxu0 %v4966_v18  ;;  %v4992_v36 = vld [vmem:[#allocation5 + $0x1c4] ss:$16 sps:$4 sm:$0xff]   ;;  %v4996_v38 = vld [vmem:[#allocation5 + $0x1c0] ss:$16 sps:$4 sm:$0xff]  }
  0x54   :  { %3280 = vmatpush1.bf16.msra.mxu1 %v4967_v19  ;;  %3238 = vmatprep.subr.bf16.mxu0 %v4968_v20  ;;  %v4994_v37 = vld [vmem:[#allocation5 + $0x3c4] ss:$16 sps:$4 sm:$0xff]   ;;  %v4997_v39 = vld [vmem:[#allocation5 + $0x3c0] ss:$16 sps:$4 sm:$0xff]  }
  0x55   :  { %3281 = vmatprep.subr.bf16.mxu1 %v4970_v21  ;;  %v4998_v40 = vld [vmem:[#allocation5 + $0x1a4] ss:$16 sps:$4 sm:$0xff]   ;;  %v5002_v42 = vld [vmem:[#allocation5 + $0x1a0] ss:$16 sps:$4 sm:$0xff]  }
  0x56   :  { %v5000_v41 = vld [vmem:[#allocation5 + $0x3a4] ss:$16 sps:$4 sm:$0xff]   ;;  %v5003_v43 = vld [vmem:[#allocation5 + $0x3a0] ss:$16 sps:$4 sm:$0xff]  }
  0x57   :  { %3239 = vmatpush1.bf16.msra.mxu0 %v4972_v22  ;;  %v5004_v44 = vld [vmem:[#allocation5 + $0x184] ss:$16 sps:$4 sm:$0xff]   ;;  %v5008_v50 = vld [vmem:[#allocation5 + $0x180] ss:$16 sps:$4 sm:$0xff]  }
  0x58   :  { %3282 = vmatpush1.bf16.msra.mxu1 %v4973_v23  ;;  %3240 = vmatprep.subr.bf16.mxu0 %v4974_v24  ;;  %v5006_v45 = vld [vmem:[#allocation5 + $0x384] ss:$16 sps:$4 sm:$0xff]   ;;  %v5009_v51 = vld [vmem:[#allocation5 + $0x380] ss:$16 sps:$4 sm:$0xff]  }
  0x59   :  { %3283 = vmatprep.subr.bf16.mxu1 %v4976_v25  ;;  %v5010_v52 = vld [vmem:[#allocation5 + $0x164] ss:$16 sps:$4 sm:$0xff]   ;;  %v5014_v56 = vld [vmem:[#allocation5 + $0x160] ss:$16 sps:$4 sm:$0xff]  }
  0x5a   :  { %v5012_v55 = vld [vmem:[#allocation5 + $0x364] ss:$16 sps:$4 sm:$0xff]   ;;  %v5015_v57 = vld [vmem:[#allocation5 + $0x360] ss:$16 sps:$4 sm:$0xff]  }
  0x5b   :  { %3241 = vmatpush1.bf16.msra.mxu0 %v4978_v26  ;;  %v5016_v58 = vld [vmem:[#allocation5 + $0x144] ss:$16 sps:$4 sm:$0xff]   ;;  %v5020_v60 = vld [vmem:[#allocation5 + $0x140] ss:$16 sps:$4 sm:$0xff]  }
  0x5c   :  { %3284 = vmatpush1.bf16.msra.mxu1 %v4979_v27  ;;  %3242 = vmatprep.subr.bf16.mxu0 %v4980_v28  ;;  %v5018_v59 = vld [vmem:[#allocation5 + $0x344] ss:$16 sps:$4 sm:$0xff]   ;;  %v5021_v61 = vld [vmem:[#allocation5 + $0x340] ss:$16 sps:$4 sm:$0xff]  }
  0x5d   :  { %3285 = vmatprep.subr.bf16.mxu1 %v4982_v29  ;;  %v5022_v62 = vld [vmem:[#allocation5 + $0x124] ss:$16 sps:$4 sm:$0xff]   ;;  %v5026_v0 = vld [vmem:[#allocation5 + $0x120] ss:$16 sps:$4 sm:$0xff]  }
  0x5e   :  { %v5024_v63 = vld [vmem:[#allocation5 + $0x324] ss:$16 sps:$4 sm:$0xff]   ;;  %v5027_v1 = vld [vmem:[#allocation5 + $0x320] ss:$16 sps:$4 sm:$0xff]  }
  0x5f   :  { %3243 = vmatpush1.bf16.msra.mxu0 %v4984_v30  ;;  %v5028_v2 = vld [vmem:[#allocation5 + $0x104] ss:$16 sps:$4 sm:$0xff]   ;;  %v5032_v4 = vld [vmem:[#allocation5 + $0x100] ss:$16 sps:$4 sm:$0xff]  }
  0x60   :  { %3286 = vmatpush1.bf16.msra.mxu1 %v4985_v31  ;;  %3244 = vmatprep.subr.bf16.mxu0 %v4986_v32  ;;  %v5030_v3 = vld [vmem:[#allocation5 + $0x304] ss:$16 sps:$4 sm:$0xff]   ;;  %v5033_v5 = vld [vmem:[#allocation5 + $0x300] ss:$16 sps:$4 sm:$0xff]  }
  0x61   :  { %3287 = vmatprep.subr.bf16.mxu1 %v4988_v33  ;;  %v86_v6 = vld [vmem:[#allocation2] sm:$0xff]  ;;  %v88_v8 = vld [vmem:[#allocation2 + $0x10] sm:$0xff] }
  0x62   :  { %v102_v7 = vld [vmem:[#allocation2 + $0x80] sm:$0xff]  ;;  %v104_v9 = vld [vmem:[#allocation2 + $0x90] sm:$0xff] }
  0x63   :  { %3245 = vmatpush2.bf16.msra.mxu0 %v4990_v34  ;;  %v5036_v10 = vld [vmem:[#allocation5 + $0x4e4] ss:$16 sps:$4 sm:$0xff]   ;;  %v5951_v12 = vpack.c.bf16 %v102_v7, %v86_v6  ;;  %v5953_v13 = vpack.c.bf16 %v104_v9, %v88_v8  ;;  %v5034_v14 = vld [vmem:[#allocation5 + $0x4e0] ss:$16 sps:$4 sm:$0xff]  }
  0x64   :  { %3288 = vmatpush2.bf16.msra.mxu1 %v4991_v35  ;;  %3246 = vmatprep.subr.bf16.mxu0 %v4992_v36  ;;  %v5039_v11 = vld [vmem:[#allocation5 + $0x6e4] ss:$16 sps:$4 sm:$0xff]   ;;  %v5037_v15 = vld [vmem:[#allocation5 + $0x6e0] ss:$16 sps:$4 sm:$0xff]  }
  0x65   :  { %3289 = vmatprep.subr.bf16.mxu1 %v4994_v37  ;;  %v5042_v16 = vld [vmem:[#allocation5 + $0x4c4] ss:$16 sps:$4 sm:$0xff]   ;;  %v5040_v18 = vld [vmem:[#allocation5 + $0x4c0] ss:$16 sps:$4 sm:$0xff]  }
  0x66   :  { %v5045_v17 = vld [vmem:[#allocation5 + $0x6c4] ss:$16 sps:$4 sm:$0xff]   ;;  %v5043_v19 = vld [vmem:[#allocation5 + $0x6c0] ss:$16 sps:$4 sm:$0xff]  }
  0x67   :  { %3247 = vmatpush2.bf16.msra.mxu0 %v4996_v38  ;;  %v5048_v20 = vld [vmem:[#allocation5 + $0x4a4] ss:$16 sps:$4 sm:$0xff]   ;;  %v5046_v22 = vld [vmem:[#allocation5 + $0x4a0] ss:$16 sps:$4 sm:$0xff]  }
  0x68   :  { %3290 = vmatpush2.bf16.msra.mxu1 %v4997_v39  ;;  %3248 = vmatprep.subr.bf16.mxu0 %v4998_v40  ;;  %v5051_v21 = vld [vmem:[#allocation5 + $0x6a4] ss:$16 sps:$4 sm:$0xff]   ;;  %v5049_v23 = vld [vmem:[#allocation5 + $0x6a0] ss:$16 sps:$4 sm:$0xff]   ;;  %v91_v40 = vld [vmem:[#allocation2 + $0x28] sm:$0xff] }
  0x69   :  { %3291 = vmatprep.subr.bf16.mxu1 %v5000_v41  ;;  %v5054_v24 = vld [vmem:[#allocation5 + $0x484] ss:$16 sps:$4 sm:$0xff]   ;;  %v5052_v26 = vld [vmem:[#allocation5 + $0x480] ss:$16 sps:$4 sm:$0xff]   ;;  %v107_v41 = vld [vmem:[#allocation2 + $0xa8] sm:$0xff] }
  0x6a   :  { %v5057_v25 = vld [vmem:[#allocation5 + $0x684] ss:$16 sps:$4 sm:$0xff]   ;;  %v5055_v27 = vld [vmem:[#allocation5 + $0x680] ss:$16 sps:$4 sm:$0xff]  }
  0x6b   :  { %3249 = vmatpush2.bf16.msra.mxu0 %v5002_v42  ;;  %v5060_v28 = vld [vmem:[#allocation5 + $0x464] ss:$16 sps:$4 sm:$0xff]   ;;  %v5058_v30 = vld [vmem:[#allocation5 + $0x460] ss:$16 sps:$4 sm:$0xff]   ;;  %v93_v42 = vld [vmem:[#allocation2 + $0x38] sm:$0xff] }
  0x6c   :  { %3292 = vmatpush2.bf16.msra.mxu1 %v5003_v43  ;;  %3250 = vmatprep.subr.bf16.mxu0 %v5004_v44  ;;  %v5063_v29 = vld [vmem:[#allocation5 + $0x664] ss:$16 sps:$4 sm:$0xff]   ;;  %v5061_v31 = vld [vmem:[#allocation5 + $0x660] ss:$16 sps:$4 sm:$0xff]   ;;  %v5959_v47 = vpack.c.bf16 %v109_v46, %v93_v42  ;;  %v113_v42 = vld [vmem:[#allocation2 + $0xd8] sm:$0xff] }
  0x6d   :  { %3293 = vmatprep.subr.bf16.mxu1 %v5006_v45  ;;  %v5066_v32 = vld [vmem:[#allocation5 + $0x444] ss:$16 sps:$4 sm:$0xff]   ;;  %v5064_v34 = vld [vmem:[#allocation5 + $0x440] ss:$16 sps:$4 sm:$0xff]   ;;  %v5957_v45 = vpack.c.bf16 %v107_v41, %v91_v40  ;;  %v97_v41 = vld [vmem:[#allocation2 + $0x58] sm:$0xff] }
  0x6e   :  { %v5069_v33 = vld [vmem:[#allocation5 + $0x644] ss:$16 sps:$4 sm:$0xff]   ;;  %v5067_v35 = vld [vmem:[#allocation5 + $0x640] ss:$16 sps:$4 sm:$0xff]   ;;  %v5971_v46 = vpack.c.bf16 %v113_v42, %v97_v41 }
  0x6f   :  { %3251 = vmatpush2.bf16.msra.mxu0 %v5008_v50  ;;  %v5072_v36 = vld [vmem:[#allocation5 + $0x424] ss:$16 sps:$4 sm:$0xff]   ;;  %v5070_v38 = vld [vmem:[#allocation5 + $0x420] ss:$16 sps:$4 sm:$0xff]  }
  0x70   :  { %3294 = vmatpush2.bf16.msra.mxu1 %v5009_v51  ;;  %3252 = vmatprep.subr.bf16.mxu0 %v5010_v52  ;;  %v5075_v37 = vld [vmem:[#allocation5 + $0x624] ss:$16 sps:$4 sm:$0xff]   ;;  %v5073_v39 = vld [vmem:[#allocation5 + $0x620] ss:$16 sps:$4 sm:$0xff]  }
  0x71   :  { %3295 = vmatprep.subr.bf16.mxu1 %v5012_v55  ;;  %v5078_v43 = vld [vmem:[#allocation5 + $0x404] ss:$16 sps:$4 sm:$0xff]   ;;  %v5076_v48 = vld [vmem:[#allocation5 + $0x400] ss:$16 sps:$4 sm:$0xff]  }
  0x72   :  { %v5081_v44 = vld [vmem:[#allocation5 + $0x604] ss:$16 sps:$4 sm:$0xff]   ;;  %v5079_v49 = vld [vmem:[#allocation5 + $0x600] ss:$16 sps:$4 sm:$0xff]  }
  0x73   :  { %3253 = vmatpush2.bf16.msra.mxu0 %v5014_v56  ;;  %v5084_v50 = vld [vmem:[#allocation5 + $0x5e4] ss:$16 sps:$4 sm:$0xff]   ;;  %v5082_v52 = vld [vmem:[#allocation5 + $0x5e0] ss:$16 sps:$4 sm:$0xff]  }
  0x74   :  { %3296 = vmatpush2.bf16.msra.mxu1 %v5015_v57  ;;  %3254 = vmatprep.subr.bf16.mxu0 %v5016_v58  ;;  %v5087_v51 = vld [vmem:[#allocation5 + $0x7e4] ss:$16 sps:$4 sm:$0xff]   ;;  %v5085_v55 = vld [vmem:[#allocation5 + $0x7e0] ss:$16 sps:$4 sm:$0xff]  }
  0x75   :  { %3297 = vmatprep.subr.bf16.mxu1 %v5018_v59  ;;  %v5090_v56 = vld [vmem:[#allocation5 + $0x5c4] ss:$16 sps:$4 sm:$0xff]   ;;  %v5088_v58 = vld [vmem:[#allocation5 + $0x5c0] ss:$16 sps:$4 sm:$0xff]  }
  0x76   :  { %v5093_v57 = vld [vmem:[#allocation5 + $0x7c4] ss:$16 sps:$4 sm:$0xff]   ;;  %v5091_v59 = vld [vmem:[#allocation5 + $0x7c0] ss:$16 sps:$4 sm:$0xff]  }
  0x77   :  { %3255 = vmatpush2.bf16.msra.mxu0 %v5020_v60  ;;  %v5096_v60 = vld [vmem:[#allocation5 + $0x5a4] ss:$16 sps:$4 sm:$0xff]   ;;  %v5106_v6 = vld [vmem:[#allocation5 + $0x560] ss:$16 sps:$4 sm:$0xff]  }
  0x78   :  { %3298 = vmatpush2.bf16.msra.mxu1 %v5021_v61  ;;  %3256 = vmatprep.subr.bf16.mxu0 %v5022_v62  ;;  %v5099_v61 = vld [vmem:[#allocation5 + $0x7a4] ss:$16 sps:$4 sm:$0xff]   ;;  %v5094_v62 = vld [vmem:[#allocation5 + $0x5a0] ss:$16 sps:$4 sm:$0xff]  }
  0x79   :  { %3299 = vmatprep.subr.bf16.mxu1 %v5024_v63  ;;  %v5097_v63 = vld [vmem:[#allocation5 + $0x7a0] ss:$16 sps:$4 sm:$0xff]   ;;  %v5114_v8 = vld [vmem:[#allocation5 + $0x544] ss:$16 sps:$4 sm:$0xff]  }
  0x7a   :  { %v5109_v7 = vld [vmem:[#allocation5 + $0x760] ss:$16 sps:$4 sm:$0xff]   ;;  %v5117_v9 = vld [vmem:[#allocation5 + $0x744] ss:$16 sps:$4 sm:$0xff]  }
  0x7b   :  { %3257 = vmatpush2.bf16.msra.mxu0 %v5026_v0  ;;  %v5102_v0 = vld [vmem:[#allocation5 + $0x584] ss:$16 sps:$4 sm:$0xff]   ;;  %v5220_v41 = vld [vmem:[#allocation5 + $0x900] ss:$16 sps:$4 sm:$0xff]  }
  0x7c   :  { %3300 = vmatpush2.bf16.msra.mxu1 %v5027_v1  ;;  %3258 = vmatprep.subr.bf16.mxu0 %v5028_v2  ;;  %v5105_v1 = vld [vmem:[#allocation5 + $0x784] ss:$16 sps:$4 sm:$0xff]   ;;  %v5100_v2 = vld [vmem:[#allocation5 + $0x580] ss:$16 sps:$4 sm:$0xff]  }
  0x7d   :  { %3301 = vmatprep.subr.bf16.mxu1 %v5030_v3  ;;  %v5103_v3 = vld [vmem:[#allocation5 + $0x780] ss:$16 sps:$4 sm:$0xff]  }
  0x7e   :  { %v5223_v42 = vld [vmem:[#allocation5 + $0xb00] ss:$16 sps:$4 sm:$0xff]  }
  0x7f   :  { %3259 = vmatpush2.bf16.msra.mxu0 %v5032_v4  ;;  %v5108_v4 = vld [vmem:[#allocation5 + $0x564] ss:$16 sps:$4 sm:$0xff]  }
  0x80   :  { %3302 = vmatpush2.bf16.msra.mxu1 %v5033_v5  ;;  %3314 = vmatprep.subr.bf16.mxu0 %v5036_v10  ;;  %v5111_v5 = vld [vmem:[#allocation5 + $0x764] ss:$16 sps:$4 sm:$0xff]   ;;  %v5112_v10 = vld [vmem:[#allocation5 + $0x540] ss:$16 sps:$4 sm:$0xff]  }
  0x81   :  { %3357 = vmatprep.subr.bf16.mxu1 %v5039_v11  ;;  %v5115_v11 = vld [vmem:[#allocation5 + $0x740] ss:$16 sps:$4 sm:$0xff]  }
  0x82   :  { %3261 = vmatmul.mubr.bf16.vlgmr.msra.gmra.mxu0 %v5951_v12 }
  0x83   :  { %3304 = vmatmul.mubr.bf16.vlgmr.msra.gmra.mxu1 %v5953_v13  ;;  %3315 = vmatpush1.bf16.msra.mxu0 %v5034_v14  ;;  %v5120_v14 = vld [vmem:[#allocation5 + $0x524] ss:$16 sps:$4 sm:$0xff]  }
  0x84   :  { %3358 = vmatpush1.bf16.msra.mxu1 %v5037_v15  ;;  %3316 = vmatprep.subr.bf16.mxu0 %v5042_v16  ;;  %v5123_v15 = vld [vmem:[#allocation5 + $0x724] ss:$16 sps:$4 sm:$0xff]   ;;  %v5118_v16 = vld [vmem:[#allocation5 + $0x520] ss:$16 sps:$4 sm:$0xff]  }
  0x85   :  { %3359 = vmatprep.subr.bf16.mxu1 %v5045_v17  ;;  %3346 = vmatprep.mubr.bf16.mxu0 %v5957_v45  ;;  %v5121_v17 = vld [vmem:[#allocation5 + $0x720] ss:$16 sps:$4 sm:$0xff]  }
  0x86   :  { %3389 = vmatprep.mubr.bf16.mxu1 %v5959_v47 }
  0x87   :  { %3317 = vmatpush1.bf16.msra.mxu0 %v5040_v18  ;;  %v5126_v18 = vld [vmem:[#allocation5 + $0x504] ss:$16 sps:$4 sm:$0xff]  }
  0x88   :  { %3360 = vmatpush1.bf16.msra.mxu1 %v5043_v19  ;;  %3318 = vmatprep.subr.bf16.mxu0 %v5048_v20  ;;  %v5129_v19 = vld [vmem:[#allocation5 + $0x704] ss:$16 sps:$4 sm:$0xff]   ;;  %v5124_v20 = vld [vmem:[#allocation5 + $0x500] ss:$16 sps:$4 sm:$0xff]  }
  0x89   :  { %3361 = vmatprep.subr.bf16.mxu1 %v5051_v21  ;;  %v5127_v21 = vld [vmem:[#allocation5 + $0x700] ss:$16 sps:$4 sm:$0xff]  }
  0x8b   :  { %3319 = vmatpush1.bf16.msra.mxu0 %v5046_v22  ;;  %v90_v22 = vld [vmem:[#allocation2 + $0x20] sm:$0xff] }
  0x8c   :  { %3362 = vmatpush1.bf16.msra.mxu1 %v5049_v23  ;;  %3320 = vmatprep.subr.bf16.mxu0 %v5054_v24  ;;  %v106_v23 = vld [vmem:[#allocation2 + $0xa0] sm:$0xff]  ;;  %v92_v24 = vld [vmem:[#allocation2 + $0x30] sm:$0xff] }
  0x8d   :  { %3363 = vmatprep.subr.bf16.mxu1 %v5057_v25  ;;  %v108_v25 = vld [vmem:[#allocation2 + $0xb0] sm:$0xff] }
  0x8f   :  { %3321 = vmatpush1.bf16.msra.mxu0 %v5052_v26  ;;  %v5132_v26 = vld [vmem:[#allocation5 + $0x8e4] ss:$16 sps:$4 sm:$0xff]  }
  0x90   :  { %3364 = vmatpush1.bf16.msra.mxu1 %v5055_v27  ;;  %3322 = vmatprep.subr.bf16.mxu0 %v5060_v28  ;;  %v5135_v27 = vld [vmem:[#allocation5 + $0xae4] ss:$16 sps:$4 sm:$0xff]   ;;  %v5963_v28 = vpack.c.bf16 %v106_v23, %v90_v22  ;;  %v5196_v22 = vld [vmem:[#allocation5 + $0x980] ss:$16 sps:$4 sm:$0xff]  }
  0x91   :  { %3365 = vmatprep.subr.bf16.mxu1 %v5063_v29  ;;  %v5965_v29 = vpack.c.bf16 %v108_v25, %v92_v24  ;;  %v5199_v23 = vld [vmem:[#allocation5 + $0xb80] ss:$16 sps:$4 sm:$0xff]   ;;  %v5204_v24 = vld [vmem:[#allocation5 + $0x964] ss:$16 sps:$4 sm:$0xff]  }
  0x92   :  { %v5207_v25 = vld [vmem:[#allocation5 + $0xb64] ss:$16 sps:$4 sm:$0xff]  }
  0x93   :  { %3323 = vmatpush1.bf16.msra.mxu0 %v5058_v30  ;;  %v5130_v30 = vld [vmem:[#allocation5 + $0x8e0] ss:$16 sps:$4 sm:$0xff]  }
  0x94   :  { %3366 = vmatpush1.bf16.msra.mxu1 %v5061_v31  ;;  %3324 = vmatprep.subr.bf16.mxu0 %v5066_v32  ;;  %v5133_v31 = vld [vmem:[#allocation5 + $0xae0] ss:$16 sps:$4 sm:$0xff]   ;;  %v5138_v32 = vld [vmem:[#allocation5 + $0x8c4] ss:$16 sps:$4 sm:$0xff]  }
  0x95   :  { %3367 = vmatprep.subr.bf16.mxu1 %v5069_v33  ;;  %v5141_v33 = vld [vmem:[#allocation5 + $0xac4] ss:$16 sps:$4 sm:$0xff]  }
  0x97   :  { %3325 = vmatpush1.bf16.msra.mxu0 %v5064_v34  ;;  %v5136_v34 = vld [vmem:[#allocation5 + $0x8c0] ss:$16 sps:$4 sm:$0xff]  }
  0x98   :  { %3368 = vmatpush1.bf16.msra.mxu1 %v5067_v35  ;;  %3326 = vmatprep.subr.bf16.mxu0 %v5072_v36  ;;  %v5139_v35 = vld [vmem:[#allocation5 + $0xac0] ss:$16 sps:$4 sm:$0xff]   ;;  %v5144_v36 = vld [vmem:[#allocation5 + $0x8a4] ss:$16 sps:$4 sm:$0xff]  }
  0x99   :  { %3369 = vmatprep.subr.bf16.mxu1 %v5075_v37  ;;  %v5147_v37 = vld [vmem:[#allocation5 + $0xaa4] ss:$16 sps:$4 sm:$0xff]  }
  0x9b   :  { %3327 = vmatpush1.bf16.msra.mxu0 %v5070_v38  ;;  %v95_v38 = vld [vmem:[#allocation2 + $0x48] sm:$0xff] }
  0x9c   :  { %3370 = vmatpush1.bf16.msra.mxu1 %v5073_v39  ;;  %3328 = vmatprep.subr.bf16.mxu0 %v5078_v43  ;;  %v111_v39 = vld [vmem:[#allocation2 + $0xc8] sm:$0xff]  ;;  %v5142_v43 = vld [vmem:[#allocation5 + $0x8a0] ss:$16 sps:$4 sm:$0xff]  }
  0x9d   :  { %3371 = vmatprep.subr.bf16.mxu1 %v5081_v44  ;;  %v5969_v40 = vpack.c.bf16 %v111_v39, %v95_v38  ;;  %v5145_v44 = vld [vmem:[#allocation5 + $0xaa0] ss:$16 sps:$4 sm:$0xff]   ;;  %v5222_v38 = vld [vmem:[#allocation5 + $0x904] ss:$16 sps:$4 sm:$0xff]  }
  0x9e   :  { %v5225_v39 = vld [vmem:[#allocation5 + $0xb04] ss:$16 sps:$4 sm:$0xff]  }
  0x9f   :  { %3329 = vmatpush1.bf16.msra.mxu0 %v5076_v48  ;;  %v5150_v48 = vld [vmem:[#allocation5 + $0x884] ss:$16 sps:$4 sm:$0xff]  }
  0xa0   :  { %3372 = vmatpush1.bf16.msra.mxu1 %v5079_v49  ;;  %3330 = vmatprep.subr.bf16.mxu0 %v5084_v50  ;;  %v5153_v49 = vld [vmem:[#allocation5 + $0xa84] ss:$16 sps:$4 sm:$0xff]   ;;  %v5148_v50 = vld [vmem:[#allocation5 + $0x880] ss:$16 sps:$4 sm:$0xff]  }
  0xa1   :  { %3373 = vmatprep.subr.bf16.mxu1 %v5087_v51  ;;  %v5151_v51 = vld [vmem:[#allocation5 + $0xa80] ss:$16 sps:$4 sm:$0xff]  }
  0xa3   :  { %3331 = vmatpush2.bf16.msra.mxu0 %v5082_v52  ;;  %v5156_v52 = vld [vmem:[#allocation5 + $0x864] ss:$16 sps:$4 sm:$0xff]  }
  0xa4   :  { %3374 = vmatpush2.bf16.msra.mxu1 %v5085_v55  ;;  %3332 = vmatprep.subr.bf16.mxu0 %v5090_v56  ;;  %v5159_v55 = vld [vmem:[#allocation5 + $0xa64] ss:$16 sps:$4 sm:$0xff]   ;;  %v5154_v56 = vld [vmem:[#allocation5 + $0x860] ss:$16 sps:$4 sm:$0xff]  }
  0xa5   :  { %3375 = vmatprep.subr.bf16.mxu1 %v5093_v57  ;;  %v5157_v57 = vld [vmem:[#allocation5 + $0xa60] ss:$16 sps:$4 sm:$0xff]  }
  0xa7   :  { %3333 = vmatpush2.bf16.msra.mxu0 %v5088_v58  ;;  %v5162_v58 = vld [vmem:[#allocation5 + $0x844] ss:$16 sps:$4 sm:$0xff]  }
  0xa8   :  { %3376 = vmatpush2.bf16.msra.mxu1 %v5091_v59  ;;  %3334 = vmatprep.subr.bf16.mxu0 %v5096_v60  ;;  %v5165_v59 = vld [vmem:[#allocation5 + $0xa44] ss:$16 sps:$4 sm:$0xff]   ;;  %v5160_v60 = vld [vmem:[#allocation5 + $0x840] ss:$16 sps:$4 sm:$0xff]  }
  0xa9   :  { %3377 = vmatprep.subr.bf16.mxu1 %v5099_v61  ;;  %v5163_v61 = vld [vmem:[#allocation5 + $0xa40] ss:$16 sps:$4 sm:$0xff]  }
  0xab   :  { %3335 = vmatpush2.bf16.msra.mxu0 %v5094_v62  ;;  %v5168_v62 = vld [vmem:[#allocation5 + $0x824] ss:$16 sps:$4 sm:$0xff]  }
  0xac   :  { %3378 = vmatpush2.bf16.msra.mxu1 %v5097_v63  ;;  %3336 = vmatprep.subr.bf16.mxu0 %v5102_v0  ;;  %v5171_v63 = vld [vmem:[#allocation5 + $0xa24] ss:$16 sps:$4 sm:$0xff]   ;;  %v5166_v0 = vld [vmem:[#allocation5 + $0x820] ss:$16 sps:$4 sm:$0xff]  }
  0xad   :  { %3379 = vmatprep.subr.bf16.mxu1 %v5105_v1  ;;  %v5169_v1 = vld [vmem:[#allocation5 + $0xa20] ss:$16 sps:$4 sm:$0xff]  }
  0xaf   :  { %3337 = vmatpush2.bf16.msra.mxu0 %v5100_v2  ;;  %v5174_v2 = vld [vmem:[#allocation5 + $0x804] ss:$16 sps:$4 sm:$0xff]  }
  0xb0   :  { %3380 = vmatpush2.bf16.msra.mxu1 %v5103_v3  ;;  %3338 = vmatprep.subr.bf16.mxu0 %v5108_v4  ;;  %v5177_v3 = vld [vmem:[#allocation5 + $0xa04] ss:$16 sps:$4 sm:$0xff]   ;;  %v5172_v4 = vld [vmem:[#allocation5 + $0x800] ss:$16 sps:$4 sm:$0xff]  }
  0xb1   :  { %3381 = vmatprep.subr.bf16.mxu1 %v5111_v5  ;;  %v5175_v5 = vld [vmem:[#allocation5 + $0xa00] ss:$16 sps:$4 sm:$0xff]  }
  0xb3   :  { %3339 = vmatpush2.bf16.msra.mxu0 %v5106_v6  ;;  %v5180_v6 = vld [vmem:[#allocation5 + $0x9e4] ss:$16 sps:$4 sm:$0xff]  }
  0xb4   :  { %3382 = vmatpush2.bf16.msra.mxu1 %v5109_v7  ;;  %3340 = vmatprep.subr.bf16.mxu0 %v5114_v8  ;;  %v5183_v7 = vld [vmem:[#allocation5 + $0xbe4] ss:$16 sps:$4 sm:$0xff]   ;;  %v5178_v8 = vld [vmem:[#allocation5 + $0x9e0] ss:$16 sps:$4 sm:$0xff]  }
  0xb5   :  { %3383 = vmatprep.subr.bf16.mxu1 %v5117_v9  ;;  %v5181_v9 = vld [vmem:[#allocation5 + $0xbe0] ss:$16 sps:$4 sm:$0xff]  }
  0xb7   :  { %3341 = vmatpush2.bf16.msra.mxu0 %v5112_v10  ;;  %v5186_v10 = vld [vmem:[#allocation5 + $0x9c4] ss:$16 sps:$4 sm:$0xff]  }
  0xb8   :  { %3384 = vmatpush2.bf16.msra.mxu1 %v5115_v11  ;;  %3342 = vmatprep.subr.bf16.mxu0 %v5120_v14  ;;  %v5189_v11 = vld [vmem:[#allocation5 + $0xbc4] ss:$16 sps:$4 sm:$0xff]   ;;  %v5184_v14 = vld [vmem:[#allocation5 + $0x9c0] ss:$16 sps:$4 sm:$0xff]  }
  0xb9   :  { %3385 = vmatprep.subr.bf16.mxu1 %v5123_v15  ;;  %v5187_v15 = vld [vmem:[#allocation5 + $0xbc0] ss:$16 sps:$4 sm:$0xff]  }
  0xbb   :  { %3343 = vmatpush2.bf16.msra.mxu0 %v5118_v16  ;;  %v5192_v16 = vld [vmem:[#allocation5 + $0x9a4] ss:$16 sps:$4 sm:$0xff]  }
  0xbc   :  { %3386 = vmatpush2.bf16.msra.mxu1 %v5121_v17  ;;  %3344 = vmatprep.subr.bf16.mxu0 %v5126_v18  ;;  %v5195_v17 = vld [vmem:[#allocation5 + $0xba4] ss:$16 sps:$4 sm:$0xff]   ;;  %v5190_v18 = vld [vmem:[#allocation5 + $0x9a0] ss:$16 sps:$4 sm:$0xff]  }
  0xbd   :  { %3387 = vmatprep.subr.bf16.mxu1 %v5129_v19  ;;  %v5193_v19 = vld [vmem:[#allocation5 + $0xba0] ss:$16 sps:$4 sm:$0xff]  }
  0xbf   :  { %3345 = vmatpush2.bf16.msra.mxu0 %v5124_v20  ;;  %v5198_v20 = vld [vmem:[#allocation5 + $0x984] ss:$16 sps:$4 sm:$0xff]  }
  0xc0   :  { %3388 = vmatpush2.bf16.msra.mxu1 %v5127_v21  ;;  %3400 = vmatprep.subr.bf16.mxu0 %v5132_v26  ;;  %v5201_v21 = vld [vmem:[#allocation5 + $0xb84] ss:$16 sps:$4 sm:$0xff]   ;;  %v5202_v26 = vld [vmem:[#allocation5 + $0x960] ss:$16 sps:$4 sm:$0xff]  }
  0xc1   :  { %3443 = vmatprep.subr.bf16.mxu1 %v5135_v27  ;;  %v5205_v27 = vld [vmem:[#allocation5 + $0xb60] ss:$16 sps:$4 sm:$0xff]  }
  0xc2   :  { %3347 = vmatmul.mubr.bf16.vlgmr.msra.gmra.mxu0 %v5963_v28 }
  0xc3   :  { %3390 = vmatmul.mubr.bf16.vlgmr.msra.gmra.mxu1 %v5965_v29  ;;  %3401 = vmatpush1.bf16.msra.mxu0 %v5130_v30  ;;  %v5210_v30 = vld [vmem:[#allocation5 + $0x944] ss:$16 sps:$4 sm:$0xff]  }
  0xc4   :  { %3444 = vmatpush1.bf16.msra.mxu1 %v5133_v31  ;;  %3402 = vmatprep.subr.bf16.mxu0 %v5138_v32  ;;  %v5213_v31 = vld [vmem:[#allocation5 + $0xb44] ss:$16 sps:$4 sm:$0xff]   ;;  %v5208_v32 = vld [vmem:[#allocation5 + $0x940] ss:$16 sps:$4 sm:$0xff]  }
  0xc5   :  { %3445 = vmatprep.subr.bf16.mxu1 %v5141_v33  ;;  %3432 = vmatprep.mubr.bf16.mxu0 %v5969_v40  ;;  %v5211_v33 = vld [vmem:[#allocation5 + $0xb40] ss:$16 sps:$4 sm:$0xff]  }
  0xc6   :  { %3475 = vmatprep.mubr.bf16.mxu1 %v5971_v46 }
  0xc7   :  { %3403 = vmatpush1.bf16.msra.mxu0 %v5136_v34  ;;  %v5216_v34 = vld [vmem:[#allocation5 + $0x924] ss:$16 sps:$4 sm:$0xff]  }
  0xc8   :  { %3446 = vmatpush1.bf16.msra.mxu1 %v5139_v35  ;;  %3404 = vmatprep.subr.bf16.mxu0 %v5144_v36  ;;  %v5219_v35 = vld [vmem:[#allocation5 + $0xb24] ss:$16 sps:$4 sm:$0xff]   ;;  %v5214_v36 = vld [vmem:[#allocation5 + $0x920] ss:$16 sps:$4 sm:$0xff]  }
  0xc9   :  { %3447 = vmatprep.subr.bf16.mxu1 %v5147_v37  ;;  %v5217_v37 = vld [vmem:[#allocation5 + $0xb20] ss:$16 sps:$4 sm:$0xff]  }
  0xcb   :  { %3405 = vmatpush1.bf16.msra.mxu0 %v5142_v43  ;;  %v94_v43 = vld [vmem:[#allocation2 + $0x40] sm:$0xff] }
  0xcc   :  { %3448 = vmatpush1.bf16.msra.mxu1 %v5145_v44  ;;  %3406 = vmatprep.subr.bf16.mxu0 %v5150_v48  ;;  %v110_v44 = vld [vmem:[#allocation2 + $0xc0] sm:$0xff]  ;;  %v96_v48 = vld [vmem:[#allocation2 + $0x50] sm:$0xff] }
  0xcd   :  { %3449 = vmatprep.subr.bf16.mxu1 %v5153_v49  ;;  %v112_v49 = vld [vmem:[#allocation2 + $0xd0] sm:$0xff] }
  0xcf   :  { %3407 = vmatpush1.bf16.msra.mxu0 %v5148_v50  ;;  %v5228_v50 = vld [vmem:[#allocation5 + $0xce4] ss:$16 sps:$4 sm:$0xff]  }
  0xd0   :  { %3450 = vmatpush1.bf16.msra.mxu1 %v5151_v51  ;;  %3408 = vmatprep.subr.bf16.mxu0 %v5156_v52  ;;  %v5231_v51 = vld [vmem:[#allocation5 + $0xee4] ss:$16 sps:$4 sm:$0xff]   ;;  %v99_v52 = vld [vmem:[#allocation2 + $0x68] sm:$0xff] }
  0xd1   :  { %3451 = vmatprep.subr.bf16.mxu1 %v5159_v55  ;;  %v5226_v55 = vld [vmem:[#allocation5 + $0xce0] ss:$16 sps:$4 sm:$0xff]  }
  0xd3   :  { %3409 = vmatpush1.bf16.msra.mxu0 %v5154_v56  ;;  %v115_v56 = vld [vmem:[#allocation2 + $0xe8] sm:$0xff] }
  0xd4   :  { %3452 = vmatpush1.bf16.msra.mxu1 %v5157_v57  ;;  %3410 = vmatprep.subr.bf16.mxu0 %v5162_v58  ;;  %v101_v57 = vld [vmem:[#allocation2 + $0x78] sm:$0xff]  ;;  %v5975_v58 = vpack.c.bf16 %v110_v44, %v94_v43  ;;  %v5286_v43 = vld [vmem:[#allocation5 + $0xda0] ss:$16 sps:$4 sm:$0xff]  }
  0xd5   :  { %3453 = vmatprep.subr.bf16.mxu1 %v5165_v59  ;;  %v5977_v59 = vpack.c.bf16 %v112_v49, %v96_v48  ;;  %v5289_v44 = vld [vmem:[#allocation5 + $0xfa0] ss:$16 sps:$4 sm:$0xff]   ;;  %v5294_v48 = vld [vmem:[#allocation5 + $0xd84] ss:$16 sps:$4 sm:$0xff]  }
  0xd6   :  { %v5297_v49 = vld [vmem:[#allocation5 + $0xf84] ss:$16 sps:$4 sm:$0xff]  }
  0xd7   :  { %3411 = vmatpush1.bf16.msra.mxu0 %v5160_v60  ;;  %v117_v60 = vld [vmem:[#allocation2 + $0xf8] sm:$0xff] }
  0xd8   :  { %3454 = vmatpush1.bf16.msra.mxu1 %v5163_v61  ;;  %3412 = vmatprep.subr.bf16.mxu0 %v5168_v62  ;;  %v5229_v61 = vld [vmem:[#allocation5 + $0xee0] ss:$16 sps:$4 sm:$0xff]   ;;  %v5234_v62 = vld [vmem:[#allocation5 + $0xcc4] ss:$16 sps:$4 sm:$0xff]  }
  0xd9   :  { %3455 = vmatprep.subr.bf16.mxu1 %v5171_v63  ;;  %v5237_v63 = vld [vmem:[#allocation5 + $0xec4] ss:$16 sps:$4 sm:$0xff]  }
  0xdb   :  { %3413 = vmatpush1.bf16.msra.mxu0 %v5166_v0  ;;  %v5979_v0 = vpack.c.bf16 %v115_v56, %v99_v52  ;;  %v5300_v52 = vld [vmem:[#allocation5 + $0xd64] ss:$16 sps:$4 sm:$0xff]   ;;  %v5298_v56 = vld [vmem:[#allocation5 + $0xd60] ss:$16 sps:$4 sm:$0xff]  }
  0xdc   :  { %3456 = vmatpush1.bf16.msra.mxu1 %v5169_v1  ;;  %3414 = vmatprep.subr.bf16.mxu0 %v5174_v2  ;;  %v5981_v1 = vpack.c.bf16 %v117_v60, %v101_v57  ;;  %v5232_v2 = vld [vmem:[#allocation5 + $0xcc0] ss:$16 sps:$4 sm:$0xff]   ;;  %v5306_v60 = vld [vmem:[#allocation5 + $0xd44] ss:$16 sps:$4 sm:$0xff]  }
  0xdd   :  { %3457 = vmatprep.subr.bf16.mxu1 %v5177_v3  ;;  %v5235_v3 = vld [vmem:[#allocation5 + $0xec0] ss:$16 sps:$4 sm:$0xff]  }
  0xde   :  { %v5301_v57 = vld [vmem:[#allocation5 + $0xf60] ss:$16 sps:$4 sm:$0xff]  }
  0xdf   :  { %3415 = vmatpush1.bf16.msra.mxu0 %v5172_v4  ;;  %v5240_v4 = vld [vmem:[#allocation5 + $0xca4] ss:$16 sps:$4 sm:$0xff]  }
  0xe0   :  { %3458 = vmatpush1.bf16.msra.mxu1 %v5175_v5  ;;  %3416 = vmatprep.subr.bf16.mxu0 %v5180_v6  ;;  %v5243_v5 = vld [vmem:[#allocation5 + $0xea4] ss:$16 sps:$4 sm:$0xff]   ;;  %v5238_v6 = vld [vmem:[#allocation5 + $0xca0] ss:$16 sps:$4 sm:$0xff]  }
  0xe1   :  { %3459 = vmatprep.subr.bf16.mxu1 %v5183_v7  ;;  %v5241_v7 = vld [vmem:[#allocation5 + $0xea0] ss:$16 sps:$4 sm:$0xff]  }
  0xe3   :  { %3417 = vmatpush2.bf16.msra.mxu0 %v5178_v8  ;;  %v5246_v8 = vld [vmem:[#allocation5 + $0xc84] ss:$16 sps:$4 sm:$0xff]  }
  0xe4   :  { %3460 = vmatpush2.bf16.msra.mxu1 %v5181_v9  ;;  %3418 = vmatprep.subr.bf16.mxu0 %v5186_v10  ;;  %v5249_v9 = vld [vmem:[#allocation5 + $0xe84] ss:$16 sps:$4 sm:$0xff]   ;;  %v5244_v10 = vld [vmem:[#allocation5 + $0xc80] ss:$16 sps:$4 sm:$0xff]  }
  0xe5   :  { %3461 = vmatprep.subr.bf16.mxu1 %v5189_v11  ;;  %v5247_v11 = vld [vmem:[#allocation5 + $0xe80] ss:$16 sps:$4 sm:$0xff]  }
  0xe7   :  { %3419 = vmatpush2.bf16.msra.mxu0 %v5184_v14  ;;  %v5252_v14 = vld [vmem:[#allocation5 + $0xc64] ss:$16 sps:$4 sm:$0xff]  }
  0xe8   :  { %3462 = vmatpush2.bf16.msra.mxu1 %v5187_v15  ;;  %3420 = vmatprep.subr.bf16.mxu0 %v5192_v16  ;;  %v5255_v15 = vld [vmem:[#allocation5 + $0xe64] ss:$16 sps:$4 sm:$0xff]   ;;  %v5250_v16 = vld [vmem:[#allocation5 + $0xc60] ss:$16 sps:$4 sm:$0xff]  }
  0xe9   :  { %3463 = vmatprep.subr.bf16.mxu1 %v5195_v17  ;;  %v5253_v17 = vld [vmem:[#allocation5 + $0xe60] ss:$16 sps:$4 sm:$0xff]  }
  0xeb   :  { %3421 = vmatpush2.bf16.msra.mxu0 %v5190_v18  ;;  %v5258_v18 = vld [vmem:[#allocation5 + $0xc44] ss:$16 sps:$4 sm:$0xff]  }
  0xec   :  { %3464 = vmatpush2.bf16.msra.mxu1 %v5193_v19  ;;  %3422 = vmatprep.subr.bf16.mxu0 %v5198_v20  ;;  %v5261_v19 = vld [vmem:[#allocation5 + $0xe44] ss:$16 sps:$4 sm:$0xff]   ;;  %v5256_v20 = vld [vmem:[#allocation5 + $0xc40] ss:$16 sps:$4 sm:$0xff]  }
  0xed   :  { %3465 = vmatprep.subr.bf16.mxu1 %v5201_v21  ;;  %v5259_v21 = vld [vmem:[#allocation5 + $0xe40] ss:$16 sps:$4 sm:$0xff]  }
  0xef   :  { %3423 = vmatpush2.bf16.msra.mxu0 %v5196_v22  ;;  %v5264_v22 = vld [vmem:[#allocation5 + $0xc24] ss:$16 sps:$4 sm:$0xff]  }
  0xf0   :  { %3466 = vmatpush2.bf16.msra.mxu1 %v5199_v23  ;;  %3424 = vmatprep.subr.bf16.mxu0 %v5204_v24  ;;  %v5267_v23 = vld [vmem:[#allocation5 + $0xe24] ss:$16 sps:$4 sm:$0xff]   ;;  %v5262_v24 = vld [vmem:[#allocation5 + $0xc20] ss:$16 sps:$4 sm:$0xff]  }
  0xf1   :  { %3467 = vmatprep.subr.bf16.mxu1 %v5207_v25  ;;  %v5265_v25 = vld [vmem:[#allocation5 + $0xe20] ss:$16 sps:$4 sm:$0xff]  }
  0xf3   :  { %3425 = vmatpush2.bf16.msra.mxu0 %v5202_v26  ;;  %v5270_v26 = vld [vmem:[#allocation5 + $0xc04] ss:$16 sps:$4 sm:$0xff]  }
  0xf4   :  { %3468 = vmatpush2.bf16.msra.mxu1 %v5205_v27  ;;  %3426 = vmatprep.subr.bf16.mxu0 %v5210_v30  ;;  %v5273_v27 = vld [vmem:[#allocation5 + $0xe04] ss:$16 sps:$4 sm:$0xff]   ;;  %v5268_v30 = vld [vmem:[#allocation5 + $0xc00] ss:$16 sps:$4 sm:$0xff]  }
  0xf5   :  { %3469 = vmatprep.subr.bf16.mxu1 %v5213_v31  ;;  %v5271_v31 = vld [vmem:[#allocation5 + $0xe00] ss:$16 sps:$4 sm:$0xff]  }
  0xf7   :  { %3427 = vmatpush2.bf16.msra.mxu0 %v5208_v32  ;;  %v5276_v32 = vld [vmem:[#allocation5 + $0xde4] ss:$16 sps:$4 sm:$0xff]  }
  0xf8   :  { %3470 = vmatpush2.bf16.msra.mxu1 %v5211_v33  ;;  %3428 = vmatprep.subr.bf16.mxu0 %v5216_v34  ;;  %v5279_v33 = vld [vmem:[#allocation5 + $0xfe4] ss:$16 sps:$4 sm:$0xff]   ;;  %v5274_v34 = vld [vmem:[#allocation5 + $0xde0] ss:$16 sps:$4 sm:$0xff]  }
  0xf9   :  { %3471 = vmatprep.subr.bf16.mxu1 %v5219_v35  ;;  %v5277_v35 = vld [vmem:[#allocation5 + $0xfe0] ss:$16 sps:$4 sm:$0xff]  }
  0xfb   :  { %3429 = vmatpush2.bf16.msra.mxu0 %v5214_v36  ;;  %v5282_v36 = vld [vmem:[#allocation5 + $0xdc4] ss:$16 sps:$4 sm:$0xff]  }
  0xfc   :  { %3472 = vmatpush2.bf16.msra.mxu1 %v5217_v37  ;;  %3430 = vmatprep.subr.bf16.mxu0 %v5222_v38  ;;  %v5285_v37 = vld [vmem:[#allocation5 + $0xfc4] ss:$16 sps:$4 sm:$0xff]   ;;  %v5280_v38 = vld [vmem:[#allocation5 + $0xdc0] ss:$16 sps:$4 sm:$0xff]  }
  0xfd   :  { %3473 = vmatprep.subr.bf16.mxu1 %v5225_v39  ;;  %v5283_v39 = vld [vmem:[#allocation5 + $0xfc0] ss:$16 sps:$4 sm:$0xff]  }
  0xff   :  { %3431 = vmatpush2.bf16.msra.mxu0 %v5220_v41  ;;  %v5288_v41 = vld [vmem:[#allocation5 + $0xda4] ss:$16 sps:$4 sm:$0xff]  }
 0x100   :  { %3474 = vmatpush2.bf16.msra.mxu1 %v5223_v42  ;;  %3486 = vmatprep.subr.bf16.mxu0 %v5228_v50  ;;  %v5291_v42 = vld [vmem:[#allocation5 + $0xfa4] ss:$16 sps:$4 sm:$0xff]   ;;  %v5292_v50 = vld [vmem:[#allocation5 + $0xd80] ss:$16 sps:$4 sm:$0xff]  }
 0x101   :  { %3529 = vmatprep.subr.bf16.mxu1 %v5231_v51  ;;  %v5295_v51 = vld [vmem:[#allocation5 + $0xf80] ss:$16 sps:$4 sm:$0xff]  }
 0x102   :  { %3433 = vmatmul.mubr.bf16.vlgmr.msra.gmra.mxu0 %v5975_v58 }
 0x103   :  { %3476 = vmatmul.mubr.bf16.vlgmr.msra.gmra.mxu1 %v5977_v59  ;;  %3487 = vmatpush1.bf16.msra.mxu0 %v5226_v55  ;;  %v5303_v55 = vld [vmem:[#allocation5 + $0xf64] ss:$16 sps:$4 sm:$0xff]  }
 0x104   :  { %3530 = vmatpush1.bf16.msra.mxu1 %v5229_v61  ;;  %3488 = vmatprep.subr.bf16.mxu0 %v5234_v62  ;;  %v5309_v61 = vld [vmem:[#allocation5 + $0xf44] ss:$16 sps:$4 sm:$0xff]   ;;  %v5304_v62 = vld [vmem:[#allocation5 + $0xd40] ss:$16 sps:$4 sm:$0xff]  }
 0x105   :  { %3531 = vmatprep.subr.bf16.mxu1 %v5237_v63  ;;  %3518 = vmatprep.mubr.bf16.mxu0 %v5979_v0  ;;  %v5307_v63 = vld [vmem:[#allocation5 + $0xf40] ss:$16 sps:$4 sm:$0xff]  }
 0x106   :  { %3561 = vmatprep.mubr.bf16.mxu1 %v5981_v1 }
 0x107   :  { %3489 = vmatpush1.bf16.msra.mxu0 %v5232_v2  ;;  %v5312_v2 = vld [vmem:[#allocation5 + $0xd24] ss:$16 sps:$4 sm:$0xff]  }
 0x108   :  { %3532 = vmatpush1.bf16.msra.mxu1 %v5235_v3  ;;  %3490 = vmatprep.subr.bf16.mxu0 %v5240_v4  ;;  %v5315_v3 = vld [vmem:[#allocation5 + $0xf24] ss:$16 sps:$4 sm:$0xff]   ;;  %v5310_v4 = vld [vmem:[#allocation5 + $0xd20] ss:$16 sps:$4 sm:$0xff]  }
 0x109   :  { %3533 = vmatprep.subr.bf16.mxu1 %v5243_v5  ;;  %v5313_v5 = vld [vmem:[#allocation5 + $0xf20] ss:$16 sps:$4 sm:$0xff]  }
 0x10b   :  { %3491 = vmatpush1.bf16.msra.mxu0 %v5238_v6  ;;  %v5318_v6 = vld [vmem:[#allocation5 + $0xd04] ss:$16 sps:$4 sm:$0xff]  }
 0x10c   :  { %3534 = vmatpush1.bf16.msra.mxu1 %v5241_v7  ;;  %3492 = vmatprep.subr.bf16.mxu0 %v5246_v8  ;;  %v5321_v7 = vld [vmem:[#allocation5 + $0xf04] ss:$16 sps:$4 sm:$0xff]   ;;  %v5316_v8 = vld [vmem:[#allocation5 + $0xd00] ss:$16 sps:$4 sm:$0xff]  }
 0x10d   :  { %3535 = vmatprep.subr.bf16.mxu1 %v5249_v9  ;;  %v5319_v9 = vld [vmem:[#allocation5 + $0xf00] ss:$16 sps:$4 sm:$0xff]  }
 0x10f   :  { %3493 = vmatpush1.bf16.msra.mxu0 %v5244_v10  ;;  %v98_v10 = vld [vmem:[#allocation2 + $0x60] sm:$0xff] }
 0x110   :  { %3536 = vmatpush1.bf16.msra.mxu1 %v5247_v11  ;;  %3494 = vmatprep.subr.bf16.mxu0 %v5252_v14  ;;  %v114_v11 = vld [vmem:[#allocation2 + $0xe0] sm:$0xff]  ;;  %v100_v14 = vld [vmem:[#allocation2 + $0x70] sm:$0xff] }
 0x111   :  { %3537 = vmatprep.subr.bf16.mxu1 %v5255_v15  ;;  %v116_v15 = vld [vmem:[#allocation2 + $0xf0] sm:$0xff] }
 0x113   :  { %3495 = vmatpush1.bf16.msra.mxu0 %v5250_v16  ;;  %v5324_v16 = vld [vmem:[#allocation5 + $0xec] ss:$16 sps:$4 sm:$0xff]  }
 0x114   :  { %3538 = vmatpush1.bf16.msra.mxu1 %v5253_v17  ;;  %3496 = vmatprep.subr.bf16.mxu0 %v5258_v18  ;;  %v5327_v17 = vld [vmem:[#allocation5 + $0x2ec] ss:$16 sps:$4 sm:$0xff]   ;;  %v5987_v18 = vpack.c.bf16 %v114_v11, %v98_v10  ;;  %v5388_v10 = vld [vmem:[#allocation5 + $0x188] ss:$16 sps:$4 sm:$0xff]  }
 0x115   :  { %3539 = vmatprep.subr.bf16.mxu1 %v5261_v19  ;;  %v5989_v19 = vpack.c.bf16 %v116_v15, %v100_v14  ;;  %v5391_v11 = vld [vmem:[#allocation5 + $0x388] ss:$16 sps:$4 sm:$0xff]   ;;  %v5396_v14 = vld [vmem:[#allocation5 + $0x16c] ss:$16 sps:$4 sm:$0xff]  }
 0x116   :  { %v5399_v15 = vld [vmem:[#allocation5 + $0x36c] ss:$16 sps:$4 sm:$0xff]  }
 0x117   :  { %3497 = vmatpush1.bf16.msra.mxu0 %v5256_v20  ;;  %v5322_v20 = vld [vmem:[#allocation5 + $0xe8] ss:$16 sps:$4 sm:$0xff]  }
 0x118   :  { %3540 = vmatpush1.bf16.msra.mxu1 %v5259_v21  ;;  %3498 = vmatprep.subr.bf16.mxu0 %v5264_v22  ;;  %v5325_v21 = vld [vmem:[#allocation5 + $0x2e8] ss:$16 sps:$4 sm:$0xff]   ;;  %v5330_v22 = vld [vmem:[#allocation5 + $0xcc] ss:$16 sps:$4 sm:$0xff]  }
 0x119   :  { %3541 = vmatprep.subr.bf16.mxu1 %v5267_v23  ;;  %v5333_v23 = vld [vmem:[#allocation5 + $0x2cc] ss:$16 sps:$4 sm:$0xff]  }
 0x11b   :  { %3499 = vmatpush1.bf16.msra.mxu0 %v5262_v24  ;;  %v5328_v24 = vld [vmem:[#allocation5 + $0xc8] ss:$16 sps:$4 sm:$0xff]  }
 0x11c   :  { %3542 = vmatpush1.bf16.msra.mxu1 %v5265_v25  ;;  %3500 = vmatprep.subr.bf16.mxu0 %v5270_v26  ;;  %v5331_v25 = vld [vmem:[#allocation5 + $0x2c8] ss:$16 sps:$4 sm:$0xff]   ;;  %v5336_v26 = vld [vmem:[#allocation5 + $0xac] ss:$16 sps:$4 sm:$0xff]  }
 0x11d   :  { %3543 = vmatprep.subr.bf16.mxu1 %v5273_v27  ;;  %v5339_v27 = vld [vmem:[#allocation5 + $0x2ac] ss:$16 sps:$4 sm:$0xff]  }
 0x11f   :  { %3501 = vmatpush1.bf16.msra.mxu0 %v5268_v30  ;;  %v5334_v30 = vld [vmem:[#allocation5 + $0xa8] ss:$16 sps:$4 sm:$0xff]  }
 0x120   :  { %3544 = vmatpush1.bf16.msra.mxu1 %v5271_v31  ;;  %3502 = vmatprep.subr.bf16.mxu0 %v5276_v32  ;;  %v5337_v31 = vld [vmem:[#allocation5 + $0x2a8] ss:$16 sps:$4 sm:$0xff]   ;;  %v5342_v32 = vld [vmem:[#allocation5 + $0x8c] ss:$16 sps:$4 sm:$0xff]  }
 0x121   :  { %3545 = vmatprep.subr.bf16.mxu1 %v5279_v33  ;;  %v5345_v33 = vld [vmem:[#allocation5 + $0x28c] ss:$16 sps:$4 sm:$0xff]  }
 0x123   :  { %3503 = vmatpush2.bf16.msra.mxu0 %v5274_v34  ;;  %v5340_v34 = vld [vmem:[#allocation5 + $0x88] ss:$16 sps:$4 sm:$0xff]  }
 0x124   :  { %3546 = vmatpush2.bf16.msra.mxu1 %v5277_v35  ;;  %3504 = vmatprep.subr.bf16.mxu0 %v5282_v36  ;;  %v5343_v35 = vld [vmem:[#allocation5 + $0x288] ss:$16 sps:$4 sm:$0xff]   ;;  %v5348_v36 = vld [vmem:[#allocation5 + $0x6c] ss:$16 sps:$4 sm:$0xff]  }
 0x125   :  { %3547 = vmatprep.subr.bf16.mxu1 %v5285_v37  ;;  %v5351_v37 = vld [vmem:[#allocation5 + $0x26c] ss:$16 sps:$4 sm:$0xff]  }
 0x127   :  { %3505 = vmatpush2.bf16.msra.mxu0 %v5280_v38  ;;  %v5346_v38 = vld [vmem:[#allocation5 + $0x68] ss:$16 sps:$4 sm:$0xff]  }
 0x128   :  { %3548 = vmatpush2.bf16.msra.mxu1 %v5283_v39  ;;  %3506 = vmatprep.subr.bf16.mxu0 %v5288_v41  ;;  %v5357_v39 = vld [vmem:[#allocation5 + $0x24c] ss:$16 sps:$4 sm:$0xff]   ;;  %v5352_v41 = vld [vmem:[#allocation5 + $0x48] ss:$16 sps:$4 sm:$0xff]  }
 0x129   :  { %3549 = vmatprep.subr.bf16.mxu1 %v5291_v42  ;;  %v5355_v42 = vld [vmem:[#allocation5 + $0x248] ss:$16 sps:$4 sm:$0xff]  }
 0x12b   :  { %3507 = vmatpush2.bf16.msra.mxu0 %v5286_v43  ;;  %v5360_v43 = vld [vmem:[#allocation5 + $0x2c] ss:$16 sps:$4 sm:$0xff]  }
 0x12c   :  { %3550 = vmatpush2.bf16.msra.mxu1 %v5289_v44  ;;  %3508 = vmatprep.subr.bf16.mxu0 %v5294_v48  ;;  %v5363_v44 = vld [vmem:[#allocation5 + $0x22c] ss:$16 sps:$4 sm:$0xff]   ;;  %v5358_v48 = vld [vmem:[#allocation5 + $0x28] ss:$16 sps:$4 sm:$0xff]  }
 0x12d   :  { %3551 = vmatprep.subr.bf16.mxu1 %v5297_v49  ;;  %v5361_v49 = vld [vmem:[#allocation5 + $0x228] ss:$16 sps:$4 sm:$0xff]  }
 0x12f   :  { %3509 = vmatpush2.bf16.msra.mxu0 %v5292_v50  ;;  %v5366_v50 = vld [vmem:[#allocation5 + $0xc] ss:$16 sps:$4 sm:$0xff]  }
 0x130   :  { %3552 = vmatpush2.bf16.msra.mxu1 %v5295_v51  ;;  %3510 = vmatprep.subr.bf16.mxu0 %v5300_v52  ;;  %v5369_v51 = vld [vmem:[#allocation5 + $0x20c] ss:$16 sps:$4 sm:$0xff]   ;;  %v5364_v52 = vld [vmem:[#allocation5 + $0x8] ss:$16 sps:$4 sm:$0xff]  }
 0x131   :  { %3553 = vmatprep.subr.bf16.mxu1 %v5303_v55  ;;  %v5367_v55 = vld [vmem:[#allocation5 + $0x208] ss:$16 sps:$4 sm:$0xff]  }
 0x133   :  { %3511 = vmatpush2.bf16.msra.mxu0 %v5298_v56  ;;  %v5372_v56 = vld [vmem:[#allocation5 + $0x1ec] ss:$16 sps:$4 sm:$0xff]  }
 0x134   :  { %3554 = vmatpush2.bf16.msra.mxu1 %v5301_v57  ;;  %3512 = vmatprep.subr.bf16.mxu0 %v5306_v60  ;;  %v5375_v57 = vld [vmem:[#allocation5 + $0x3ec] ss:$16 sps:$4 sm:$0xff]   ;;  %v5370_v60 = vld [vmem:[#allocation5 + $0x1e8] ss:$16 sps:$4 sm:$0xff]  }
 0x135   :  { %3555 = vmatprep.subr.bf16.mxu1 %v5309_v61  ;;  %v5373_v61 = vld [vmem:[#allocation5 + $0x3e8] ss:$16 sps:$4 sm:$0xff]  }
 0x137   :  { %3513 = vmatpush2.bf16.msra.mxu0 %v5304_v62  ;;  %v5378_v62 = vld [vmem:[#allocation5 + $0x1cc] ss:$16 sps:$4 sm:$0xff]  }
 0x138   :  { %3556 = vmatpush2.bf16.msra.mxu1 %v5307_v63  ;;  %3514 = vmatprep.subr.bf16.mxu0 %v5312_v2  ;;  %v5381_v63 = vld [vmem:[#allocation5 + $0x3cc] ss:$16 sps:$4 sm:$0xff]   ;;  %v5376_v2 = vld [vmem:[#allocation5 + $0x1c8] ss:$16 sps:$4 sm:$0xff]  }
 0x139   :  { %3557 = vmatprep.subr.bf16.mxu1 %v5315_v3  ;;  %v5379_v3 = vld [vmem:[#allocation5 + $0x3c8] ss:$16 sps:$4 sm:$0xff]  }
 0x13b   :  { %3515 = vmatpush2.bf16.msra.mxu0 %v5310_v4  ;;  %v5384_v4 = vld [vmem:[#allocation5 + $0x1ac] ss:$16 sps:$4 sm:$0xff]  }
 0x13c   :  { %3558 = vmatpush2.bf16.msra.mxu1 %v5313_v5  ;;  %3516 = vmatprep.subr.bf16.mxu0 %v5318_v6  ;;  %v5387_v5 = vld [vmem:[#allocation5 + $0x3ac] ss:$16 sps:$4 sm:$0xff]   ;;  %v5382_v6 = vld [vmem:[#allocation5 + $0x1a8] ss:$16 sps:$4 sm:$0xff]  }
 0x13d   :  { %3559 = vmatprep.subr.bf16.mxu1 %v5321_v7  ;;  %v5385_v7 = vld [vmem:[#allocation5 + $0x3a8] ss:$16 sps:$4 sm:$0xff]  }
 0x13f   :  { %3517 = vmatpush2.bf16.msra.mxu0 %v5316_v8  ;;  %v5390_v8 = vld [vmem:[#allocation5 + $0x18c] ss:$16 sps:$4 sm:$0xff]  }
 0x140   :  { %3560 = vmatpush2.bf16.msra.mxu1 %v5319_v9  ;;  %3572 = vmatprep.subr.bf16.mxu0 %v5324_v16  ;;  %v5393_v9 = vld [vmem:[#allocation5 + $0x38c] ss:$16 sps:$4 sm:$0xff]   ;;  %v5394_v16 = vld [vmem:[#allocation5 + $0x168] ss:$16 sps:$4 sm:$0xff]  }
 0x141   :  { %3615 = vmatprep.subr.bf16.mxu1 %v5327_v17  ;;  %v5397_v17 = vld [vmem:[#allocation5 + $0x368] ss:$16 sps:$4 sm:$0xff]  }
 0x142   :  { %3519 = vmatmul.mubr.bf16.vlgmr.msra.gmra.mxu0 %v5987_v18 }
 0x143   :  { %3562 = vmatmul.mubr.bf16.vlgmr.msra.gmra.mxu1 %v5989_v19  ;;  %3573 = vmatpush1.bf16.msra.mxu0 %v5322_v20  ;;  %v5402_v20 = vld [vmem:[#allocation5 + $0x14c] ss:$16 sps:$4 sm:$0xff]  }
 0x144   :  { %3616 = vmatpush1.bf16.msra.mxu1 %v5325_v21  ;;  %3574 = vmatprep.subr.bf16.mxu0 %v5330_v22  ;;  %v5405_v21 = vld [vmem:[#allocation5 + $0x34c] ss:$16 sps:$4 sm:$0xff]   ;;  %v5400_v22 = vld [vmem:[#allocation5 + $0x148] ss:$16 sps:$4 sm:$0xff]  }
 0x145   :  { %3617 = vmatprep.subr.bf16.mxu1 %v5333_v23  ;;  %3604 = vmatprep.mubr.bf16.mxu0 %v5945_v53  ;;  %v5349_v53 = vld [vmem:[#allocation5 + $0x268] ss:$16 sps:$4 sm:$0xff]  }
 0x146   :  { %3647 = vmatprep.mubr.bf16.mxu1 %v5947_v54  ;;  %v5354_v54 = vld [vmem:[#allocation5 + $0x4c] ss:$16 sps:$4 sm:$0xff]   ;;  %v5403_v23 = vld [vmem:[#allocation5 + $0x348] ss:$16 sps:$4 sm:$0xff]  }
 0x147   :  { %3575 = vmatpush1.bf16.msra.mxu0 %v5328_v24  ;;  %v5408_v24 = vld [vmem:[#allocation5 + $0x12c] ss:$16 sps:$4 sm:$0xff]  }
 0x148   :  { %3618 = vmatpush1.bf16.msra.mxu1 %v5331_v25  ;;  %3576 = vmatprep.subr.bf16.mxu0 %v5336_v26  ;;  %v5411_v25 = vld [vmem:[#allocation5 + $0x32c] ss:$16 sps:$4 sm:$0xff]   ;;  %v5406_v26 = vld [vmem:[#allocation5 + $0x128] ss:$16 sps:$4 sm:$0xff]  }
 0x149   :  { %3619 = vmatprep.subr.bf16.mxu1 %v5339_v27  ;;  %v5409_v27 = vld [vmem:[#allocation5 + $0x328] ss:$16 sps:$4 sm:$0xff]  }
 0x14b   :  { %3577 = vmatpush1.bf16.msra.mxu0 %v5334_v30  ;;  %v5414_v30 = vld [vmem:[#allocation5 + $0x10c] ss:$16 sps:$4 sm:$0xff]  }
 0x14c   :  { %3620 = vmatpush1.bf16.msra.mxu1 %v5337_v31  ;;  %3578 = vmatprep.subr.bf16.mxu0 %v5342_v32  ;;  %v5417_v31 = vld [vmem:[#allocation5 + $0x30c] ss:$16 sps:$4 sm:$0xff]   ;;  %v5412_v32 = vld [vmem:[#allocation5 + $0x108] ss:$16 sps:$4 sm:$0xff]  }
 0x14d   :  { %3621 = vmatprep.subr.bf16.mxu1 %v5345_v33  ;;  %v5415_v33 = vld [vmem:[#allocation5 + $0x308] ss:$16 sps:$4 sm:$0xff]  }
 0x14f   :  { %3579 = vmatpush1.bf16.msra.mxu0 %v5340_v34  ;;  %v5420_v34 = vld [vmem:[#allocation5 + $0x4ec] ss:$16 sps:$4 sm:$0xff]  }
 0x150   :  { %3622 = vmatpush1.bf16.msra.mxu1 %v5343_v35  ;;  %3580 = vmatprep.subr.bf16.mxu0 %v5348_v36  ;;  %v5423_v35 = vld [vmem:[#allocation5 + $0x6ec] ss:$16 sps:$4 sm:$0xff]   ;;  %v5418_v36 = vld [vmem:[#allocation5 + $0x4e8] ss:$16 sps:$4 sm:$0xff]  }
 0x151   :  { %3623 = vmatprep.subr.bf16.mxu1 %v5351_v37  ;;  %v5421_v37 = vld [vmem:[#allocation5 + $0x6e8] ss:$16 sps:$4 sm:$0xff]  }
 0x153   :  { %3581 = vmatpush1.bf16.msra.mxu0 %v5346_v38  ;;  %v5426_v38 = vld [vmem:[#allocation5 + $0x4cc] ss:$16 sps:$4 sm:$0xff]  }
 0x154   :  { %3624 = vmatpush1.bf16.msra.mxu1 %v5349_v53  ;;  %3582 = vmatprep.subr.bf16.mxu0 %v5354_v54  ;;  %v5429_v53 = vld [vmem:[#allocation5 + $0x6cc] ss:$16 sps:$4 sm:$0xff]   ;;  %v5424_v54 = vld [vmem:[#allocation5 + $0x4c8] ss:$16 sps:$4 sm:$0xff]  }
 0x155   :  { %3625 = vmatprep.subr.bf16.mxu1 %v5357_v39  ;;  %v5427_v39 = vld [vmem:[#allocation5 + $0x6c8] ss:$16 sps:$4 sm:$0xff]  }
 0x157   :  { %3583 = vmatpush1.bf16.msra.mxu0 %v5352_v41  ;;  %v5432_v41 = vld [vmem:[#allocation5 + $0x4ac] ss:$16 sps:$4 sm:$0xff]  }
 0x158   :  { %3626 = vmatpush1.bf16.msra.mxu1 %v5355_v42  ;;  %3584 = vmatprep.subr.bf16.mxu0 %v5360_v43  ;;  %v5435_v42 = vld [vmem:[#allocation5 + $0x6ac] ss:$16 sps:$4 sm:$0xff]   ;;  %v5430_v43 = vld [vmem:[#allocation5 + $0x4a8] ss:$16 sps:$4 sm:$0xff]  }
 0x159   :  { %3627 = vmatprep.subr.bf16.mxu1 %v5363_v44  ;;  %v5433_v44 = vld [vmem:[#allocation5 + $0x6a8] ss:$16 sps:$4 sm:$0xff]  }
 0x15b   :  { %3585 = vmatpush1.bf16.msra.mxu0 %v5358_v48  ;;  %v5438_v48 = vld [vmem:[#allocation5 + $0x48c] ss:$16 sps:$4 sm:$0xff]  }
 0x15c   :  { %3628 = vmatpush1.bf16.msra.mxu1 %v5361_v49  ;;  %3586 = vmatprep.subr.bf16.mxu0 %v5366_v50  ;;  %v5441_v49 = vld [vmem:[#allocation5 + $0x68c] ss:$16 sps:$4 sm:$0xff]  }
 0x15d   :  { %3629 = vmatprep.subr.bf16.mxu1 %v5369_v51  ;;  %v5444_v50 = vld [vmem:[#allocation5 + $0x46c] ss:$16 sps:$4 sm:$0xff]  }
 0x15e   :  { %v5447_v51 = vld [vmem:[#allocation5 + $0x66c] ss:$16 sps:$4 sm:$0xff]  }
 0x15f   :  { %3587 = vmatpush1.bf16.msra.mxu0 %v5364_v52  ;;  %v5442_v52 = vld [vmem:[#allocation5 + $0x468] ss:$16 sps:$4 sm:$0xff]  }
 0x160   :  { %3630 = vmatpush1.bf16.msra.mxu1 %v5367_v55  ;;  %3588 = vmatprep.subr.bf16.mxu0 %v5372_v56  ;;  %v5445_v55 = vld [vmem:[#allocation5 + $0x668] ss:$16 sps:$4 sm:$0xff]   ;;  %v5450_v56 = vld [vmem:[#allocation5 + $0x44c] ss:$16 sps:$4 sm:$0xff]  }
 0x161   :  { %3631 = vmatprep.subr.bf16.mxu1 %v5375_v57  ;;  %v5451_v57 = vld [vmem:[#allocation5 + $0x648] ss:$16 sps:$4 sm:$0xff]  }
 0x163   :  { %3589 = vmatpush2.bf16.msra.mxu0 %v5370_v60  ;;  %v5456_v60 = vld [vmem:[#allocation5 + $0x42c] ss:$16 sps:$4 sm:$0xff]  }
 0x164   :  { %3632 = vmatpush2.bf16.msra.mxu1 %v5373_v61  ;;  %3590 = vmatprep.subr.bf16.mxu0 %v5378_v62  ;;  %v5459_v61 = vld [vmem:[#allocation5 + $0x62c] ss:$16 sps:$4 sm:$0xff]   ;;  %v5454_v62 = vld [vmem:[#allocation5 + $0x428] ss:$16 sps:$4 sm:$0xff]  }
 0x165   :  { %3633 = vmatprep.subr.bf16.mxu1 %v5381_v63  ;;  %v5457_v63 = vld [vmem:[#allocation5 + $0x628] ss:$16 sps:$4 sm:$0xff]  }
 0x167   :  { %3591 = vmatpush2.bf16.msra.mxu0 %v5376_v2  ;;  %v5462_v2 = vld [vmem:[#allocation5 + $0x40c] ss:$16 sps:$4 sm:$0xff]  }
 0x168   :  { %3634 = vmatpush2.bf16.msra.mxu1 %v5379_v3  ;;  %3592 = vmatprep.subr.bf16.mxu0 %v5384_v4  ;;  %v5465_v3 = vld [vmem:[#allocation5 + $0x60c] ss:$16 sps:$4 sm:$0xff]   ;;  %v5460_v4 = vld [vmem:[#allocation5 + $0x408] ss:$16 sps:$4 sm:$0xff]  }
 0x169   :  { %3635 = vmatprep.subr.bf16.mxu1 %v5387_v5  ;;  %v5463_v5 = vld [vmem:[#allocation5 + $0x608] ss:$16 sps:$4 sm:$0xff]  }
 0x16b   :  { %3593 = vmatpush2.bf16.msra.mxu0 %v5382_v6  ;;  %v5468_v6 = vld [vmem:[#allocation5 + $0x5ec] ss:$16 sps:$4 sm:$0xff]  }
 0x16c   :  { %3636 = vmatpush2.bf16.msra.mxu1 %v5385_v7  ;;  %3594 = vmatprep.subr.bf16.mxu0 %v5390_v8  ;;  %v5471_v7 = vld [vmem:[#allocation5 + $0x7ec] ss:$16 sps:$4 sm:$0xff]   ;;  %v5466_v8 = vld [vmem:[#allocation5 + $0x5e8] ss:$16 sps:$4 sm:$0xff]  }
 0x16d   :  { %3637 = vmatprep.subr.bf16.mxu1 %v5393_v9  ;;  %v5469_v9 = vld [vmem:[#allocation5 + $0x7e8] ss:$16 sps:$4 sm:$0xff]  }
 0x16f   :  { %3595 = vmatpush2.bf16.msra.mxu0 %v5388_v10  ;;  %v5474_v10 = vld [vmem:[#allocation5 + $0x5cc] ss:$16 sps:$4 sm:$0xff]  }
 0x170   :  { %3638 = vmatpush2.bf16.msra.mxu1 %v5391_v11  ;;  %3596 = vmatprep.subr.bf16.mxu0 %v5396_v14  ;;  %v5477_v11 = vld [vmem:[#allocation5 + $0x7cc] ss:$16 sps:$4 sm:$0xff]   ;;  %v5472_v14 = vld [vmem:[#allocation5 + $0x5c8] ss:$16 sps:$4 sm:$0xff]  }
 0x171   :  { %3639 = vmatprep.subr.bf16.mxu1 %v5399_v15  ;;  %v5475_v15 = vld [vmem:[#allocation5 + $0x7c8] ss:$16 sps:$4 sm:$0xff]  }
 0x173   :  { %3597 = vmatpush2.bf16.msra.mxu0 %v5394_v16  ;;  %v5480_v16 = vld [vmem:[#allocation5 + $0x5ac] ss:$16 sps:$4 sm:$0xff]  }
 0x174   :  { %3640 = vmatpush2.bf16.msra.mxu1 %v5397_v17  ;;  %3598 = vmatprep.subr.bf16.mxu0 %v5402_v20  ;;  %v5483_v17 = vld [vmem:[#allocation5 + $0x7ac] ss:$16 sps:$4 sm:$0xff]   ;;  %v5478_v20 = vld [vmem:[#allocation5 + $0x5a8] ss:$16 sps:$4 sm:$0xff]  }
 0x175   :  { %3641 = vmatprep.subr.bf16.mxu1 %v5405_v21  ;;  %v5481_v21 = vld [vmem:[#allocation5 + $0x7a8] ss:$16 sps:$4 sm:$0xff]  }
 0x177   :  { %3599 = vmatpush2.bf16.msra.mxu0 %v5400_v22  ;;  %v5486_v22 = vld [vmem:[#allocation5 + $0x58c] ss:$16 sps:$4 sm:$0xff]  }
 0x178   :  { %3642 = vmatpush2.bf16.msra.mxu1 %v5403_v23  ;;  %3600 = vmatprep.subr.bf16.mxu0 %v5408_v24  ;;  %v5489_v23 = vld [vmem:[#allocation5 + $0x78c] ss:$16 sps:$4 sm:$0xff]   ;;  %v5484_v24 = vld [vmem:[#allocation5 + $0x588] ss:$16 sps:$4 sm:$0xff]  }
 0x179   :  { %3643 = vmatprep.subr.bf16.mxu1 %v5411_v25  ;;  %v5487_v25 = vld [vmem:[#allocation5 + $0x788] ss:$16 sps:$4 sm:$0xff]  }
 0x17b   :  { %3601 = vmatpush2.bf16.msra.mxu0 %v5406_v26  ;;  %v5492_v26 = vld [vmem:[#allocation5 + $0x56c] ss:$16 sps:$4 sm:$0xff]  }
 0x17c   :  { %3644 = vmatpush2.bf16.msra.mxu1 %v5409_v27  ;;  %3602 = vmatprep.subr.bf16.mxu0 %v5414_v30  ;;  %v5495_v27 = vld [vmem:[#allocation5 + $0x76c] ss:$16 sps:$4 sm:$0xff]   ;;  %v5490_v30 = vld [vmem:[#allocation5 + $0x568] ss:$16 sps:$4 sm:$0xff]  }
 0x17d   :  { %3645 = vmatprep.subr.bf16.mxu1 %v5417_v31  ;;  %v5493_v31 = vld [vmem:[#allocation5 + $0x768] ss:$16 sps:$4 sm:$0xff]  }
 0x17f   :  { %3603 = vmatpush2.bf16.msra.mxu0 %v5412_v32  ;;  %v5498_v32 = vld [vmem:[#allocation5 + $0x54c] ss:$16 sps:$4 sm:$0xff]  }
 0x180   :  { %3646 = vmatpush2.bf16.msra.mxu1 %v5415_v33  ;;  %3658 = vmatprep.subr.bf16.mxu0 %v5420_v34  ;;  %v5501_v33 = vld [vmem:[#allocation5 + $0x74c] ss:$16 sps:$4 sm:$0xff]   ;;  %v5496_v34 = vld [vmem:[#allocation5 + $0x548] ss:$16 sps:$4 sm:$0xff]  }
 0x181   :  { %3701 = vmatprep.subr.bf16.mxu1 %v5423_v35  ;;  %v5499_v35 = vld [vmem:[#allocation5 + $0x748] ss:$16 sps:$4 sm:$0xff]  }
 0x182   :  { %3605 = vmatmul.mubr.bf16.vlgmr.msra.gmra.mxu0 %v5951_v12  ;;  %v5436_v12 = vld [vmem:[#allocation5 + $0x488] ss:$16 sps:$4 sm:$0xff]  }
 0x183   :  { %3648 = vmatmul.mubr.bf16.vlgmr.msra.gmra.mxu1 %v5953_v13  ;;  %3659 = vmatpush1.bf16.msra.mxu0 %v5418_v36  ;;  %v5439_v13 = vld [vmem:[#allocation5 + $0x688] ss:$16 sps:$4 sm:$0xff]   ;;  %v5504_v36 = vld [vmem:[#allocation5 + $0x52c] ss:$16 sps:$4 sm:$0xff]  }
 0x184   :  { %3702 = vmatpush1.bf16.msra.mxu1 %v5421_v37  ;;  %3660 = vmatprep.subr.bf16.mxu0 %v5426_v38  ;;  %v5507_v37 = vld [vmem:[#allocation5 + $0x72c] ss:$16 sps:$4 sm:$0xff]   ;;  %v5502_v38 = vld [vmem:[#allocation5 + $0x528] ss:$16 sps:$4 sm:$0xff]  }
 0x185   :  { %3703 = vmatprep.subr.bf16.mxu1 %v5429_v53  ;;  %3690 = vmatprep.mubr.bf16.mxu0 %v5957_v45  ;;  %v5453_v45 = vld [vmem:[#allocation5 + $0x64c] ss:$16 sps:$4 sm:$0xff]   ;;  %v5505_v53 = vld [vmem:[#allocation5 + $0x728] ss:$16 sps:$4 sm:$0xff]  }
 0x186   :  { %3733 = vmatprep.mubr.bf16.mxu1 %v5959_v47  ;;  %v5448_v47 = vld [vmem:[#allocation5 + $0x448] ss:$16 sps:$4 sm:$0xff]  }
 0x187   :  { %3661 = vmatpush1.bf16.msra.mxu0 %v5424_v54  ;;  %v5510_v54 = vld [vmem:[#allocation5 + $0x50c] ss:$16 sps:$4 sm:$0xff]  }
 0x188   :  { %3704 = vmatpush1.bf16.msra.mxu1 %v5427_v39  ;;  %3662 = vmatprep.subr.bf16.mxu0 %v5432_v41  ;;  %v5513_v39 = vld [vmem:[#allocation5 + $0x70c] ss:$16 sps:$4 sm:$0xff]   ;;  %v5508_v41 = vld [vmem:[#allocation5 + $0x508] ss:$16 sps:$4 sm:$0xff]  }
 0x189   :  { %3705 = vmatprep.subr.bf16.mxu1 %v5435_v42  ;;  %v5511_v42 = vld [vmem:[#allocation5 + $0x708] ss:$16 sps:$4 sm:$0xff]  }
 0x18b   :  { %3663 = vmatpush1.bf16.msra.mxu0 %v5430_v43  ;;  %v5516_v43 = vld [vmem:[#allocation5 + $0x8ec] ss:$16 sps:$4 sm:$0xff]  }
 0x18c   :  { %3706 = vmatpush1.bf16.msra.mxu1 %v5433_v44  ;;  %3664 = vmatprep.subr.bf16.mxu0 %v5438_v48  ;;  %v5519_v44 = vld [vmem:[#allocation5 + $0xaec] ss:$16 sps:$4 sm:$0xff]   ;;  %v5514_v48 = vld [vmem:[#allocation5 + $0x8e8] ss:$16 sps:$4 sm:$0xff]  }
 0x18d   :  { %3707 = vmatprep.subr.bf16.mxu1 %v5441_v49  ;;  %v5517_v49 = vld [vmem:[#allocation5 + $0xae8] ss:$16 sps:$4 sm:$0xff]  }
 0x18f   :  { %3665 = vmatpush1.bf16.msra.mxu0 %v5436_v12  ;;  %v5522_v12 = vld [vmem:[#allocation5 + $0x8cc] ss:$16 sps:$4 sm:$0xff]  }
 0x190   :  { %3708 = vmatpush1.bf16.msra.mxu1 %v5439_v13  ;;  %3666 = vmatprep.subr.bf16.mxu0 %v5444_v50  ;;  %v5525_v13 = vld [vmem:[#allocation5 + $0xacc] ss:$16 sps:$4 sm:$0xff]   ;;  %v5520_v50 = vld [vmem:[#allocation5 + $0x8c8] ss:$16 sps:$4 sm:$0xff]  }
 0x191   :  { %3709 = vmatprep.subr.bf16.mxu1 %v5447_v51  ;;  %v5523_v51 = vld [vmem:[#allocation5 + $0xac8] ss:$16 sps:$4 sm:$0xff]  }
 0x193   :  { %3667 = vmatpush1.bf16.msra.mxu0 %v5442_v52  ;;  %v5528_v52 = vld [vmem:[#allocation5 + $0x8ac] ss:$16 sps:$4 sm:$0xff]  }
 0x194   :  { %3710 = vmatpush1.bf16.msra.mxu1 %v5445_v55  ;;  %3668 = vmatprep.subr.bf16.mxu0 %v5450_v56  ;;  %v5531_v55 = vld [vmem:[#allocation5 + $0xaac] ss:$16 sps:$4 sm:$0xff]   ;;  %v5526_v56 = vld [vmem:[#allocation5 + $0x8a8] ss:$16 sps:$4 sm:$0xff]  }
 0x195   :  { %3711 = vmatprep.subr.bf16.mxu1 %v5453_v45  ;;  %v5529_v45 = vld [vmem:[#allocation5 + $0xaa8] ss:$16 sps:$4 sm:$0xff]  }
 0x197   :  { %3669 = vmatpush1.bf16.msra.mxu0 %v5448_v47  ;;  %v5532_v47 = vld [vmem:[#allocation5 + $0x888] ss:$16 sps:$4 sm:$0xff]  }
 0x198   :  { %3712 = vmatpush1.bf16.msra.mxu1 %v5451_v57  ;;  %3670 = vmatprep.subr.bf16.mxu0 %v5456_v60  ;;  %v5535_v57 = vld [vmem:[#allocation5 + $0xa88] ss:$16 sps:$4 sm:$0xff]   ;;  %v5540_v60 = vld [vmem:[#allocation5 + $0x86c] ss:$16 sps:$4 sm:$0xff]  }
 0x199   :  { %3713 = vmatprep.subr.bf16.mxu1 %v5459_v61  ;;  %v5543_v61 = vld [vmem:[#allocation5 + $0xa6c] ss:$16 sps:$4 sm:$0xff]  }
 0x19b   :  { %3671 = vmatpush1.bf16.msra.mxu0 %v5454_v62  ;;  %v5546_v62 = vld [vmem:[#allocation5 + $0x84c] ss:$16 sps:$4 sm:$0xff]  }
 0x19c   :  { %3714 = vmatpush1.bf16.msra.mxu1 %v5457_v63  ;;  %3672 = vmatprep.subr.bf16.mxu0 %v5462_v2  ;;  %v5549_v63 = vld [vmem:[#allocation5 + $0xa4c] ss:$16 sps:$4 sm:$0xff]   ;;  %v5544_v2 = vld [vmem:[#allocation5 + $0x848] ss:$16 sps:$4 sm:$0xff]  }
 0x19d   :  { %3715 = vmatprep.subr.bf16.mxu1 %v5465_v3  ;;  %v5547_v3 = vld [vmem:[#allocation5 + $0xa48] ss:$16 sps:$4 sm:$0xff]  }
 0x19f   :  { %3673 = vmatpush1.bf16.msra.mxu0 %v5460_v4  ;;  %v5552_v4 = vld [vmem:[#allocation5 + $0x82c] ss:$16 sps:$4 sm:$0xff]  }
 0x1a0   :  { %3716 = vmatpush1.bf16.msra.mxu1 %v5463_v5  ;;  %3674 = vmatprep.subr.bf16.mxu0 %v5468_v6  ;;  %v5555_v5 = vld [vmem:[#allocation5 + $0xa2c] ss:$16 sps:$4 sm:$0xff]   ;;  %v5550_v6 = vld [vmem:[#allocation5 + $0x828] ss:$16 sps:$4 sm:$0xff]  }
 0x1a1   :  { %3717 = vmatprep.subr.bf16.mxu1 %v5471_v7  ;;  %v5553_v7 = vld [vmem:[#allocation5 + $0xa28] ss:$16 sps:$4 sm:$0xff]  }
 0x1a3   :  { %3675 = vmatpush2.bf16.msra.mxu0 %v5466_v8  ;;  %v5558_v8 = vld [vmem:[#allocation5 + $0x80c] ss:$16 sps:$4 sm:$0xff]  }
 0x1a4   :  { %3718 = vmatpush2.bf16.msra.mxu1 %v5469_v9  ;;  %3676 = vmatprep.subr.bf16.mxu0 %v5474_v10  ;;  %v5561_v9 = vld [vmem:[#allocation5 + $0xa0c] ss:$16 sps:$4 sm:$0xff]   ;;  %v5556_v10 = vld [vmem:[#allocation5 + $0x808] ss:$16 sps:$4 sm:$0xff]  }
 0x1a5   :  { %3719 = vmatprep.subr.bf16.mxu1 %v5477_v11  ;;  %v5559_v11 = vld [vmem:[#allocation5 + $0xa08] ss:$16 sps:$4 sm:$0xff]  }
 0x1a7   :  { %3677 = vmatpush2.bf16.msra.mxu0 %v5472_v14  ;;  %v5564_v14 = vld [vmem:[#allocation5 + $0x9ec] ss:$16 sps:$4 sm:$0xff]  }
 0x1a8   :  { %3720 = vmatpush2.bf16.msra.mxu1 %v5475_v15  ;;  %3678 = vmatprep.subr.bf16.mxu0 %v5480_v16  ;;  %v5567_v15 = vld [vmem:[#allocation5 + $0xbec] ss:$16 sps:$4 sm:$0xff]   ;;  %v5562_v16 = vld [vmem:[#allocation5 + $0x9e8] ss:$16 sps:$4 sm:$0xff]  }
 0x1a9   :  { %3721 = vmatprep.subr.bf16.mxu1 %v5483_v17  ;;  %v5565_v17 = vld [vmem:[#allocation5 + $0xbe8] ss:$16 sps:$4 sm:$0xff]  }
 0x1ab   :  { %3679 = vmatpush2.bf16.msra.mxu0 %v5478_v20  ;;  %v5570_v20 = vld [vmem:[#allocation5 + $0x9cc] ss:$16 sps:$4 sm:$0xff]  }
 0x1ac   :  { %3722 = vmatpush2.bf16.msra.mxu1 %v5481_v21  ;;  %3680 = vmatprep.subr.bf16.mxu0 %v5486_v22  ;;  %v5573_v21 = vld [vmem:[#allocation5 + $0xbcc] ss:$16 sps:$4 sm:$0xff]   ;;  %v5568_v22 = vld [vmem:[#allocation5 + $0x9c8] ss:$16 sps:$4 sm:$0xff]  }
 0x1ad   :  { %3723 = vmatprep.subr.bf16.mxu1 %v5489_v23  ;;  %v5571_v23 = vld [vmem:[#allocation5 + $0xbc8] ss:$16 sps:$4 sm:$0xff]  }
 0x1af   :  { %3681 = vmatpush2.bf16.msra.mxu0 %v5484_v24  ;;  %v6003_v24 = vpop.f32.mrf.mxu0 }
 0x1b0   :  { %3724 = vmatpush2.bf16.msra.mxu1 %v5487_v25  ;;  %3682 = vmatprep.subr.bf16.mxu0 %v5492_v26  ;;  %v5576_v25 = vld [vmem:[#allocation5 + $0x9ac] ss:$16 sps:$4 sm:$0xff]  }
 0x1b1   :  { %3725 = vmatprep.subr.bf16.mxu1 %v5495_v27  ;;  %v5579_v26 = vld [vmem:[#allocation5 + $0xbac] ss:$16 sps:$4 sm:$0xff]   ;;  %v5574_v27 = vld [vmem:[#allocation5 + $0x9a8] ss:$16 sps:$4 sm:$0xff]  }
 0x1b3   :  { %3683 = vmatpush2.bf16.msra.mxu0 %v5490_v30  ;;  %v5577_v30 = vld [vmem:[#allocation5 + $0xba8] ss:$16 sps:$4 sm:$0xff]  }
 0x1b4   :  { %3726 = vmatpush2.bf16.msra.mxu1 %v5493_v31  ;;  %3684 = vmatprep.subr.bf16.mxu0 %v5498_v32  ;;  %v6005_v31 = vpop.f32.mrf.mxu0  ;;  %v5582_v32 = vld [vmem:[#allocation5 + $0x98c] ss:$16 sps:$4 sm:$0xff]  }
 0x1b5   :  { %3727 = vmatprep.subr.bf16.mxu1 %v5501_v33  ;;  %v5585_v33 = vld [vmem:[#allocation5 + $0xb8c] ss:$16 sps:$4 sm:$0xff]  }
 0x1b7   :  { %3685 = vmatpush2.bf16.msra.mxu0 %v5496_v34  ;;  %v6007_v34 = vpop.f32.mrf.mxu1 }
 0x1b8   :  { %3728 = vmatpush2.bf16.msra.mxu1 %v5499_v35  ;;  %3686 = vmatprep.subr.bf16.mxu0 %v5504_v36  ;;  %v5580_v35 = vld [vmem:[#allocation5 + $0x988] ss:$16 sps:$4 sm:$0xff]  }
 0x1b9   :  { %3729 = vmatprep.subr.bf16.mxu1 %v5507_v37  ;;  %v5583_v36 = vld [vmem:[#allocation5 + $0xb88] ss:$16 sps:$4 sm:$0xff]   ;;  %v6009_v37 = vpop.f32.mrf.mxu0 }
 0x1bb   :  { %3687 = vmatpush2.bf16.msra.mxu0 %v5502_v38  ;;  %v5588_v38 = vld [vmem:[#allocation5 + $0x96c] ss:$16 sps:$4 sm:$0xff]  }
 0x1bc   :  { %3730 = vmatpush2.bf16.msra.mxu1 %v5505_v53  ;;  %3688 = vmatprep.subr.bf16.mxu0 %v5510_v54  ;;  %v5591_v53 = vld [vmem:[#allocation5 + $0xb6c] ss:$16 sps:$4 sm:$0xff]   ;;  %v6011_v54 = vpop.f32.mrf.mxu1 }
 0x1bd   :  { %3731 = vmatprep.subr.bf16.mxu1 %v5513_v39  ;;  %v5586_v39 = vld [vmem:[#allocation5 + $0x968] ss:$16 sps:$4 sm:$0xff]  }
 0x1bf   :  { %3689 = vmatpush2.bf16.msra.mxu0 %v5508_v41  ;;  %v5589_v41 = vld [vmem:[#allocation5 + $0xb68] ss:$16 sps:$4 sm:$0xff]  }
 0x1c0   :  { %3732 = vmatpush2.bf16.msra.mxu1 %v5511_v42  ;;  %3744 = vmatprep.subr.bf16.mxu0 %v5516_v43  ;;  %v6013_v42 = vpop.f32.mrf.mxu0  ;;  %v5594_v43 = vld [vmem:[#allocation5 + $0x94c] ss:$16 sps:$4 sm:$0xff]  }
 0x1c1   :  { %3787 = vmatprep.subr.bf16.mxu1 %v5519_v44  ;;  %v5597_v44 = vld [vmem:[#allocation5 + $0xb4c] ss:$16 sps:$4 sm:$0xff]  }
 0x1c2   :  { %3691 = vmatmul.mubr.bf16.vlgmr.msra.gmra.mxu0 %v5963_v28  ;;  %v5534_v28 = vld [vmem:[#allocation5 + $0x88c] ss:$16 sps:$4 sm:$0xff]  }
 0x1c3   :  { %3734 = vmatmul.mubr.bf16.vlgmr.msra.gmra.mxu1 %v5965_v29  ;;  %3745 = vmatpush1.bf16.msra.mxu0 %v5514_v48  ;;  %v5537_v29 = vld [vmem:[#allocation5 + $0xa8c] ss:$16 sps:$4 sm:$0xff]   ;;  %v6015_v48 = vpop.f32.mrf.mxu1 }
 0x1c4   :  { %3788 = vmatpush1.bf16.msra.mxu1 %v5517_v49  ;;  %3746 = vmatprep.subr.bf16.mxu0 %v5522_v12  ;;  %v6017_v49 = vpop.f32.mrf.mxu0  ;;  %v5592_v12 = vld [vmem:[#allocation5 + $0x948] ss:$16 sps:$4 sm:$0xff]  }
 0x1c5   :  { %3789 = vmatprep.subr.bf16.mxu1 %v5525_v13  ;;  %3776 = vmatprep.mubr.bf16.mxu0 %v5969_v40  ;;  %v5538_v40 = vld [vmem:[#allocation5 + $0x868] ss:$16 sps:$4 sm:$0xff]  }
 0x1c6   :  { %3819 = vmatprep.mubr.bf16.mxu1 %v5971_v46  ;;  %v5541_v46 = vld [vmem:[#allocation5 + $0xa68] ss:$16 sps:$4 sm:$0xff]  }
 0x1c7   :  { %3747 = vmatpush1.bf16.msra.mxu0 %v5520_v50  ;;  %v5595_v13 = vld [vmem:[#allocation5 + $0xb48] ss:$16 sps:$4 sm:$0xff]   ;;  %v5600_v50 = vld [vmem:[#allocation5 + $0x92c] ss:$16 sps:$4 sm:$0xff]  }
 0x1c8   :  { %3790 = vmatpush1.bf16.msra.mxu1 %v5523_v51  ;;  %3748 = vmatprep.subr.bf16.mxu0 %v5528_v52  ;;  %v5603_v51 = vld [vmem:[#allocation5 + $0xb2c] ss:$16 sps:$4 sm:$0xff]   ;;  %v6019_v52 = vpop.f32.mrf.mxu1 }
 0x1c9   :  { %3791 = vmatprep.subr.bf16.mxu1 %v5531_v55  ;;  %v6021_v55 = vpop.f32.mrf.mxu0 }
 0x1cb   :  { %3749 = vmatpush1.bf16.msra.mxu0 %v5526_v56  ;;  %v5598_v56 = vld [vmem:[#allocation5 + $0x928] ss:$16 sps:$4 sm:$0xff]  }
 0x1cc   :  { %3792 = vmatpush1.bf16.msra.mxu1 %v5529_v45  ;;  %3750 = vmatprep.subr.bf16.mxu0 %v5534_v28  ;;  %v5601_v45 = vld [vmem:[#allocation5 + $0xb28] ss:$16 sps:$4 sm:$0xff]   ;;  %v6023_v28 = vpop.f32.mrf.mxu1 }
 0x1cd   :  { %3793 = vmatprep.subr.bf16.mxu1 %v5537_v29  ;;  %v5606_v29 = vld [vmem:[#allocation5 + $0x90c] ss:$16 sps:$4 sm:$0xff]  }
 0x1cf   :  { %3751 = vmatpush1.bf16.msra.mxu0 %v5532_v47  ;;  %v5609_v47 = vld [vmem:[#allocation5 + $0xb0c] ss:$16 sps:$4 sm:$0xff]  }
 0x1d0   :  { %3794 = vmatpush1.bf16.msra.mxu1 %v5535_v57  ;;  %3752 = vmatprep.subr.bf16.mxu0 %v5540_v60  ;;  %v6025_v57 = vpop.f32.mrf.mxu0  ;;  %v5604_v60 = vld [vmem:[#allocation5 + $0x908] ss:$16 sps:$4 sm:$0xff]  }
 0x1d1   :  { %3795 = vmatprep.subr.bf16.mxu1 %v5543_v61  ;;  %v5607_v61 = vld [vmem:[#allocation5 + $0xb08] ss:$16 sps:$4 sm:$0xff]  }
 0x1d3   :  { %3753 = vmatpush1.bf16.msra.mxu0 %v5538_v40  ;;  %v6027_v40 = vpop.f32.mrf.mxu1 }
 0x1d4   :  { %3796 = vmatpush1.bf16.msra.mxu1 %v5541_v46  ;;  %3754 = vmatprep.subr.bf16.mxu0 %v5546_v62  ;;  %v5612_v46 = vld [vmem:[#allocation5 + $0xcec] ss:$16 sps:$4 sm:$0xff]  }
 0x1d5   :  { %3797 = vmatprep.subr.bf16.mxu1 %v5549_v63  ;;  %v5615_v62 = vld [vmem:[#allocation5 + $0xeec] ss:$16 sps:$4 sm:$0xff]   ;;  %v648_v63 = vlaneseq }
 0x1d7   :  { %3755 = vmatpush1.bf16.msra.mxu0 %v5544_v2  ;;  %v6029_v2 = vpop.f32.mrf.mxu0 }
 0x1d8   :  { %3798 = vmatpush1.bf16.msra.mxu1 %v5547_v3  ;;  %3756 = vmatprep.subr.bf16.mxu0 %v5552_v4  ;;  %v5610_v3 = vld [vmem:[#allocation5 + $0xce8] ss:$16 sps:$4 sm:$0xff]  }
 0x1d9   :  { %3799 = vmatprep.subr.bf16.mxu1 %v5555_v5  ;;  %v5613_v4 = vld [vmem:[#allocation5 + $0xee8] ss:$16 sps:$4 sm:$0xff]   ;;  %v6031_v5 = vpop.f32.mrf.mxu1 }
 0x1db   :  { %3757 = vmatpush1.bf16.msra.mxu0 %v5550_v6  ;;  %v6033_v6 = vpop.f32.mrf.mxu0 }
 0x1dc   :  { %3800 = vmatpush1.bf16.msra.mxu1 %v5553_v7  ;;  %3758 = vmatprep.subr.bf16.mxu0 %v5558_v8  ;;  %v5618_v7 = vld [vmem:[#allocation5 + $0xccc] ss:$16 sps:$4 sm:$0xff]  }
 0x1dd   :  { %3801 = vmatprep.subr.bf16.mxu1 %v5561_v9  ;;  %v5621_v8 = vld [vmem:[#allocation5 + $0xecc] ss:$16 sps:$4 sm:$0xff]   ;;  %v6035_v9 = vshrl.u32 %v648_v63, 7  ;;  %v5646_v63 = vld [vmem:[#allocation5 + $0xc28] ss:$16 sps:$4 sm:$0xff]  }
 0x1df   :  { %3759 = vmatpush1.bf16.msra.mxu0 %v5556_v10  ;;  %v5616_v10 = vld [vmem:[#allocation5 + $0xcc8] ss:$16 sps:$4 sm:$0xff]  }
 0x1e0   :  { %3802 = vmatpush1.bf16.msra.mxu1 %v5559_v11  ;;  %3760 = vmatprep.subr.bf16.mxu0 %v5564_v14  ;;  %v5619_v11 = vld [vmem:[#allocation5 + $0xec8] ss:$16 sps:$4 sm:$0xff]   ;;  %v3397_v14 = vpop.f32.mrf.mxu1 }
 0x1e1   :  { %3803 = vmatprep.subr.bf16.mxu1 %v5567_v15  ;;  %v6039_v15 = vpop.f32.mrf.mxu0 }
 0x1e3   :  { %3761 = vmatpush2.bf16.msra.mxu0 %v5562_v16  ;;  %v5624_v16 = vld [vmem:[#allocation5 + $0xcac] ss:$16 sps:$4 sm:$0xff]  }
 0x1e4   :  { %3804 = vmatpush2.bf16.msra.mxu1 %v5565_v17  ;;  %3762 = vmatprep.subr.bf16.mxu0 %v5570_v20  ;;  %v5627_v17 = vld [vmem:[#allocation5 + $0xeac] ss:$16 sps:$4 sm:$0xff]   ;;  %v654_v20 = vsub.s32 1, %v6035_v9 }
 0x1e5   :  { %3805 = vmatprep.subr.bf16.mxu1 %v5573_v21  ;;  %v5622_v21 = vld [vmem:[#allocation5 + $0xca8] ss:$16 sps:$4 sm:$0xff]  }
 0x1e7   :  { %3763 = vmatpush2.bf16.msra.mxu0 %v5568_v22  ;;  %v5625_v22 = vld [vmem:[#allocation5 + $0xea8] ss:$16 sps:$4 sm:$0xff]  }
 0x1e8   :  { %3806 = vmatpush2.bf16.msra.mxu1 %v5571_v23  ;;  %3764 = vmatprep.subr.bf16.mxu0 %v5576_v25  ;;  %v6048_v23 = vpop.f32.mrf.mxu0  ;;  %v5630_v25 = vld [vmem:[#allocation5 + $0xc8c] ss:$16 sps:$4 sm:$0xff]  }
 0x1e9   :  { %3807 = vmatprep.subr.bf16.mxu1 %v5579_v26  ;;  %v5633_v26 = vld [vmem:[#allocation5 + $0xe8c] ss:$16 sps:$4 sm:$0xff]  }
 0x1eb   :  { %3765 = vmatpush2.bf16.msra.mxu0 %v5574_v27 }
 0x1ec   :  { %3808 = vmatpush2.bf16.msra.mxu1 %v5577_v30  ;;  %3766 = vmatprep.subr.bf16.mxu0 %v5582_v32  ;;  %v5631_v32 = vld [vmem:[#allocation5 + $0xe88] ss:$16 sps:$4 sm:$0xff]  }
 0x1ed   :  { %3809 = vmatprep.subr.bf16.mxu1 %v5585_v33  ;;  %v3440_v33 = vpop.f32.mrf.mxu0 }
 0x1ef   :  { %3767 = vmatpush2.bf16.msra.mxu0 %v5580_v35  ;;  %v5636_v35 = vld [vmem:[#allocation5 + $0xc6c] ss:$16 sps:$4 sm:$0xff]  }
 0x1f0   :  { %3810 = vmatpush2.bf16.msra.mxu1 %v5583_v36  ;;  %3768 = vmatprep.subr.bf16.mxu0 %v5588_v38  ;;  %v5639_v36 = vld [vmem:[#allocation5 + $0xe6c] ss:$16 sps:$4 sm:$0xff]  }
 0x1f1   :  { %3811 = vmatprep.subr.bf16.mxu1 %v5591_v53 }
 0x1f3   :  { %3769 = vmatpush2.bf16.msra.mxu0 %v5586_v39 }
 0x1f4   :  { %3812 = vmatpush2.bf16.msra.mxu1 %v5589_v41  ;;  %3770 = vmatprep.subr.bf16.mxu0 %v5594_v43  ;;  %v5637_v43 = vld [vmem:[#allocation5 + $0xe68] ss:$16 sps:$4 sm:$0xff]  }
 0x1f5   :  { %3813 = vmatprep.subr.bf16.mxu1 %v5597_v44  ;;  %v5642_v44 = vld [vmem:[#allocation5 + $0xc4c] ss:$16 sps:$4 sm:$0xff]  }
 0x1f7   :  { %3771 = vmatpush2.bf16.msra.mxu0 %v5592_v12  ;;  %v5645_v12 = vld [vmem:[#allocation5 + $0xe4c] ss:$16 sps:$4 sm:$0xff]  }
 0x1f8   :  { %3814 = vmatpush2.bf16.msra.mxu1 %v5595_v13  ;;  %3772 = vmatprep.subr.bf16.mxu0 %v5600_v50 }
 0x1f9   :  { %3815 = vmatprep.subr.bf16.mxu1 %v5603_v51 }
 0x1fb   :  { %3773 = vmatpush2.bf16.msra.mxu0 %v5598_v56 }
 0x1fc   :  { %3816 = vmatpush2.bf16.msra.mxu1 %v5601_v45  ;;  %3774 = vmatprep.subr.bf16.mxu0 %v5606_v29  ;;  %v5640_v45 = vld [vmem:[#allocation5 + $0xc48] ss:$16 sps:$4 sm:$0xff]  }
 0x1fd   :  { %3817 = vmatprep.subr.bf16.mxu1 %v5609_v47  ;;  %v5648_v47 = vld [vmem:[#allocation5 + $0xc2c] ss:$16 sps:$4 sm:$0xff]  }
 0x1ff   :  { %3775 = vmatpush2.bf16.msra.mxu0 %v5604_v60  ;;  %v5651_v60 = vld [vmem:[#allocation5 + $0xe2c] ss:$16 sps:$4 sm:$0xff]  }
 0x200   :  { %3818 = vmatpush2.bf16.msra.mxu1 %v5607_v61  ;;  %3830 = vmatprep.subr.bf16.mxu0 %v5612_v46 }
 0x201   :  { %3873 = vmatprep.subr.bf16.mxu1 %v5615_v62 }
 0x202   :  { %3777 = vmatmul.mubr.bf16.vlgmr.msra.gmra.mxu0 %v5975_v58  ;;  %v6044_v58 = vld [vmem:[#allocation7] sm:$0xf]  ;;  %v6055_v39 = vpop.f32.mrf.mxu0 }
 0x203   :  { %3820 = vmatmul.mubr.bf16.vlgmr.msra.gmra.mxu1 %v5977_v59  ;;  %3831 = vmatpush1.bf16.msra.mxu0 %v5610_v3  ;;  %v6046_v59 = vpop.f32.mrf.mxu1  ;;  %v655_v27 = vrot.slane %v6044_v58, %v654_v20  ;;  %v5654_v3 = vld [vmem:[#allocation5 + $0xc0c] ss:$16 sps:$4 sm:$0xff]  }
 0x204   :  { %3874 = vmatpush1.bf16.msra.mxu1 %v5613_v4  ;;  %3832 = vmatprep.subr.bf16.mxu0 %v5618_v7  ;;  %v5657_v4 = vld [vmem:[#allocation5 + $0xe0c] ss:$16 sps:$4 sm:$0xff]  }
 0x205   :  { %3875 = vmatprep.subr.bf16.mxu1 %v5621_v8  ;;  %3862 = vmatprep.mubr.bf16.mxu0 %v5979_v0  ;;  %v3479_v30 = vpop.f32.mrf.mxu1  ;;  %v3269_v0 = vadd.f32 %v6013_v42, %v655_v27  ;;  %v3265_v38 = vadd.f32 %v6005_v31, %v655_v27  ;;  %v5634_v42 = vld [vmem:[#allocation5 + $0xc68] ss:$16 sps:$4 sm:$0xff]   ;;  %v3522_v31 = vpop.f32.mrf.mxu0  ;;  %v5666_v27 = vld [vmem:[#allocation5 + $0xdcc] ss:$16 sps:$4 sm:$0xff]  }
 0x206   :  { %3905 = vmatprep.mubr.bf16.mxu1 %v5981_v1  ;;  %v5628_v1 = vld [vmem:[#allocation5 + $0xc88] ss:$16 sps:$4 sm:$0xff]  }
 0x207   :  { %3833 = vmatpush1.bf16.msra.mxu0 %v5616_v10  ;;  %v6053_v53 = vpop.f32.mrf.mxu1  ;;  %v3312_v41 = vadd.f32 %v6019_v52, %v3269_v0  ;;  %v3308_v13 = vadd.f32 %v6011_v54, %v3265_v38  ;;  %v5643_v52 = vld [vmem:[#allocation5 + $0xe48] ss:$16 sps:$4 sm:$0xff]   ;;  %v6063_v46 = vpop.f32.mrf.mxu0  ;;  %v5669_v0 = vld [vmem:[#allocation5 + $0xfcc] ss:$16 sps:$4 sm:$0xff]  }
 0x208   :  { %3876 = vmatpush1.bf16.msra.mxu1 %v5619_v11  ;;  %3834 = vmatprep.subr.bf16.mxu0 %v5624_v16  ;;  %v5652_v11 = vld [vmem:[#allocation5 + $0xc08] ss:$16 sps:$4 sm:$0xff]   ;;  %v5675_v38 = vld [vmem:[#allocation5 + $0xfac] ss:$16 sps:$4 sm:$0xff]  }
 0x209   :  { %3877 = vmatprep.subr.bf16.mxu1 %v5627_v17  ;;  %v3355_v50 = vadd.f32 %v6029_v2, %v3312_v41  ;;  %v3483_v51 = vpop.f32.mrf.mxu1  ;;  %v3351_v56 = vadd.f32 %v6021_v55, %v3308_v13  ;;  %v5649_v55 = vld [vmem:[#allocation5 + $0xe28] ss:$16 sps:$4 sm:$0xff]   ;;  %v3526_v8 = vpop.f32.mrf.mxu0  ;;  %v5663_v17 = vld [vmem:[#allocation5 + $0xfec] ss:$16 sps:$4 sm:$0xff]  }
 0x20a   :  { %v5678_v13 = vld [vmem:[#allocation5 + $0xd8c] ss:$16 sps:$4 sm:$0xff]  }
 0x20b   :  { %3835 = vmatpush1.bf16.msra.mxu0 %v5622_v21  ;;  %v6061_v29 = vpop.f32.mrf.mxu1  ;;  %v3398_v61 = vadd.f32 %v3397_v14, %v3355_v50  ;;  %v3394_v54 = vadd.f32 %v6027_v40, %v3351_v56  ;;  %v5655_v14 = vld [vmem:[#allocation5 + $0xe08] ss:$16 sps:$4 sm:$0xff]   ;;  %v5660_v40 = vld [vmem:[#allocation5 + $0xdec] ss:$16 sps:$4 sm:$0xff]  }
 0x20c   :  { %3878 = vmatpush1.bf16.msra.mxu1 %v5625_v22  ;;  %3836 = vmatprep.subr.bf16.mxu0 %v5630_v25  ;;  %v5658_v25 = vld [vmem:[#allocation5 + $0xde8] ss:$16 sps:$4 sm:$0xff]   ;;  %v5681_v50 = vld [vmem:[#allocation5 + $0xf8c] ss:$16 sps:$4 sm:$0xff]  }
 0x20d   :  { %3879 = vmatprep.subr.bf16.mxu1 %v5633_v26  ;;  %v3441_v62 = vadd.f32 %v3440_v33, %v3398_v61  ;;  %v3565_v2 = vpop.f32.mrf.mxu1  ;;  %v3437_v7 = vadd.f32 %v6039_v15, %v3394_v54  ;;  %v5661_v26 = vld [vmem:[#allocation5 + $0xfe8] ss:$16 sps:$4 sm:$0xff]  }
 0x20e   :  { %v5664_v33 = vld [vmem:[#allocation5 + $0xdc8] ss:$16 sps:$4 sm:$0xff]  }
 0x20f   :  { %3837 = vmatpush1.bf16.msra.mxu0 %v5628_v1  ;;  %v3484_v10 = vadd.f32 %v3483_v51, %v3441_v62  ;;  %v6067_v16 = vpop.f32.mrf.mxu1  ;;  %v3480_v20 = vadd.f32 %v3479_v30, %v3437_v7  ;;  %v650_v30 = vsub.s32 0, %v6035_v9  ;;  %v5679_v56 = vld [vmem:[#allocation5 + $0xf88] ss:$16 sps:$4 sm:$0xff]   ;;  %v5699_v7 = vld [vmem:[#allocation5 + $0xf2c] ss:$16 sps:$4 sm:$0xff]  }
 0x210   :  { %3880 = vmatpush1.bf16.msra.mxu1 %v5631_v32  ;;  %3838 = vmatprep.subr.bf16.mxu0 %v5636_v35  ;;  %v5667_v35 = vld [vmem:[#allocation5 + $0xfc8] ss:$16 sps:$4 sm:$0xff]  }
 0x211   :  { %3881 = vmatprep.subr.bf16.mxu1 %v5639_v36  ;;  %v3527_v21 = vadd.f32 %v3526_v8, %v3484_v10  ;;  %v3523_v22 = vadd.f32 %v3522_v31, %v3480_v20  ;;  %v3569_v15 = vpop.f32.mrf.mxu1  ;;  %v5672_v36 = vld [vmem:[#allocation5 + $0xdac] ss:$16 sps:$4 sm:$0xff]   ;;  %v5676_v31 = vld [vmem:[#allocation5 + $0xd88] ss:$16 sps:$4 sm:$0xff]  }
 0x212   :  { %v5682_v61 = vld [vmem:[#allocation5 + $0xd68] ss:$16 sps:$4 sm:$0xff]  }
 0x213   :  { %3839 = vmatpush1.bf16.msra.mxu0 %v5634_v42  ;;  %v6069_v1 = vadd.f32 %v3569_v15, %v3527_v21  ;;  %v6071_v32 = vadd.f32 %v3565_v2, %v3523_v22  ;;  %v5685_v54 = vld [vmem:[#allocation5 + $0xf68] ss:$16 sps:$4 sm:$0xff]  }
 0x214   :  { %3882 = vmatpush1.bf16.msra.mxu1 %v5637_v43  ;;  %3840 = vmatprep.subr.bf16.mxu0 %v5642_v44  ;;  %v5670_v43 = vld [vmem:[#allocation5 + $0xda8] ss:$16 sps:$4 sm:$0xff]  }
 0x215   :  { %3883 = vmatprep.subr.bf16.mxu1 %v5645_v12  ;;  %v3929_v41 = vmul.f32 0.70710677, %v6069_v1  ;;  %v3925_v42 = vmul.f32 0.70710677, %v6071_v32  ;;  %v5673_v44 = vld [vmem:[#allocation5 + $0xfa8] ss:$16 sps:$4 sm:$0xff]   ;;  %v651_v12 = vrot.slane %v6044_v58, %v650_v30 }
 0x216   :  { %v5688_v2 = vld [vmem:[#allocation5 + $0xd48] ss:$16 sps:$4 sm:$0xff]   ;;  %v3921_v22 = vmul.f32 0.5, %v6069_v1  ;;  %v3917_v15 = vmul.f32 0.5, %v6071_v32  ;;  %v5707_v1 = vld [vmem:[#allocation8 + $0x38] sm:$0xff]  }
 0x217   :  { %3841 = vmatpush1.bf16.msra.mxu0 %v5640_v45  ;;  %5738 = verf.f32 %v3929_v41  ;;  %v3267_v51 = vadd.f32 %v6009_v37, %v651_v12  ;;  %v3263_v45 = vadd.f32 %v6003_v24, %v651_v12  ;;  %v5694_v10 = vld [vmem:[#allocation5 + $0xd28] ss:$16 sps:$4 sm:$0xff]  }
 0x218   :  { %3884 = vmatpush1.bf16.msra.mxu1 %v5643_v52  ;;  %3842 = vmatprep.subr.bf16.mxu0 %v5648_v47  ;;  %5740 = verf.f32 %v3925_v42  ;;  %v5684_v52 = vld [vmem:[#allocation5 + $0xd6c] ss:$16 sps:$4 sm:$0xff]   ;;  %v5713_v41 = vld [vmem:[#allocation8 + $0x20] sm:$0xff]   ;;  %v5717_v42 = vld [vmem:[#allocation8 + $0x10] sm:$0xff]  }
 0x219   :  { %3885 = vmatprep.subr.bf16.mxu1 %v5651_v60  ;;  %v5687_v47 = vld [vmem:[#allocation5 + $0xf6c] ss:$16 sps:$4 sm:$0xff]   ;;  %v3310_v60 = vadd.f32 %v6015_v48, %v3267_v51  ;;  %v3306_v62 = vadd.f32 %v6007_v34, %v3263_v45  ;;  %v5720_v51 = vld [vmem:[#allocation8 + $0x40] sm:$0xff]  }
 0x21a   :  { %v5721_v45 = vld [vmem:[#allocation8] sm:$0xff]  }
 0x21b   :  { %3843 = vmatpush1.bf16.msra.mxu0 %v5646_v63  ;;  %v3353_v37 = vadd.f32 %v6025_v57, %v3310_v60  ;;  %v5690_v63 = vld [vmem:[#allocation5 + $0xd4c] ss:$16 sps:$4 sm:$0xff]   ;;  %v3349_v24 = vadd.f32 %v6017_v49, %v3306_v62 }
 0x21c   :  { %3886 = vmatpush1.bf16.msra.mxu1 %v5649_v55  ;;  %3844 = vmatprep.subr.bf16.mxu0 %v5654_v3  ;;  %v5693_v55 = vld [vmem:[#allocation5 + $0xf4c] ss:$16 sps:$4 sm:$0xff]   ;;  %v5691_v3 = vld [vmem:[#allocation5 + $0xf48] ss:$16 sps:$4 sm:$0xff]  }
 0x21d   :  { %3887 = vmatprep.subr.bf16.mxu1 %v5657_v4  ;;  %v3396_v48 = vadd.f32 %v6031_v5, %v3353_v37  ;;  %v5696_v4 = vld [vmem:[#allocation5 + $0xd2c] ss:$16 sps:$4 sm:$0xff]   ;;  %v3392_v34 = vadd.f32 %v6023_v28, %v3349_v24  ;;  %v5700_v28 = vld [vmem:[#allocation5 + $0xd08] ss:$16 sps:$4 sm:$0xff]  }
 0x21e   :  { %v5705_v5 = vld [vmem:[#allocation5 + $0xf0c] ss:$16 sps:$4 sm:$0xff]   ;;  %v5724_v37 = vld [vmem:[#allocation8 + $0xf0] sm:$0xff]  }
 0x21f   :  { %3845 = vmatpush1.bf16.msra.mxu0 %v5652_v11  ;;  %v3439_v57 = vadd.f32 %v6048_v23, %v3396_v48  ;;  %v5697_v11 = vld [vmem:[#allocation5 + $0xf28] ss:$16 sps:$4 sm:$0xff]   ;;  %v5723_v62 = vld [vmem:[#allocation8 + $0xb8] sm:$0xff]   ;;  %v5727_v24 = vld [vmem:[#allocation8 + $0xa8] sm:$0xff]  }
 0x220   :  { %3888 = vmatpush1.bf16.msra.mxu1 %v5655_v14  ;;  %3846 = vmatprep.subr.bf16.mxu0 %v5660_v40  ;;  %v3435_v14 = vadd.f32 %v6033_v6, %v3392_v34  ;;  %v5702_v40 = vld [vmem:[#allocation5 + $0xd0c] ss:$16 sps:$4 sm:$0xff]   ;;  %v5703_v23 = vld [vmem:[#allocation5 + $0xf08] ss:$16 sps:$4 sm:$0xff]  }
 0x221   :  { %3889 = vmatprep.subr.bf16.mxu1 %v5663_v17  ;;  %v3482_v20 = vadd.f32 %v6053_v53, %v3439_v57  ;;  %v5706_v6 = vld [vmem:[#allocation8 + $0x78] sm:$0xff]   ;;  %v5734_v34 = vld [vmem:[#allocation8 + $0xc8] sm:$0xff]  }
 0x222   :  { %v5730_v48 = vld [vmem:[#allocation8 + $0xd8] sm:$0xff]   ;;  %v5735_v57 = vld [vmem:[#allocation8 + $0x88] sm:$0xff]  }
 0x223   :  { %3847 = vmatpush2.bf16.msra.mxu0 %v5658_v25  ;;  %v3478_v25 = vadd.f32 %v6046_v59, %v3435_v14 }
 0x224   :  { %3890 = vmatpush2.bf16.msra.mxu1 %v5661_v26  ;;  %3848 = vmatprep.subr.bf16.mxu0 %v5666_v27  ;;  %v5739_v8 = vpop.eup %5738  ;;  %v3525_v26 = vadd.f32 %v6063_v46, %v3482_v20  ;;  %v5709_v46 = vld [vmem:[#allocation8 + $0x30] sm:$0xff]  }
 0x225   :  { %3891 = vmatprep.subr.bf16.mxu1 %v5669_v0  ;;  %v5741_v49 = vpop.eup %5740  ;;  %v3945_v17 = vadd.f32 1.0, %v5739_v8  ;;  %v3521_v0 = vadd.f32 %v6055_v39, %v3478_v25  ;;  %v5710_v39 = vld [vmem:[#allocation8 + $0x68] sm:$0xff]   ;;  %v5733_v8 = vld [vmem:[#allocation8 + $0x90] sm:$0xff]   ;;  %v658_v25 = vsub.s32 2, %v6035_v9 }
 0x226   :  { %v3941_v21 = vadd.f32 1.0, %v5741_v49 }
 0x227   :  { %3849 = vmatpush2.bf16.msra.mxu0 %v5664_v33  ;;  %v3953_v27 = vmul.f32 %v3945_v17, %v3921_v22  ;;  %v3568_v33 = vadd.f32 %v6067_v16, %v3525_v26  ;;  %v3564_v59 = vadd.f32 %v6061_v29, %v3521_v0  ;;  %v5712_v16 = vld [vmem:[#allocation8 + $0x60] sm:$0xff]   ;;  %v5714_v29 = vld [vmem:[#allocation8 + $0x58] sm:$0xff]  }
 0x228   :  { %3892 = vmatpush2.bf16.msra.mxu1 %v5667_v35  ;;  %3850 = vmatprep.subr.bf16.mxu0 %v5672_v36  ;;  %v3949_v53 = vmul.f32 %v3941_v21, %v3917_v15  ;;  %v5708_v35 = vld [vmem:[#allocation8 + $0x70] sm:$0xff]   ;;  %v662_v15 = vsub.s32 3, %v6035_v9 }
 0x229   :  { %3893 = vmatprep.subr.bf16.mxu1 %v5675_v38  ;;  %v3928_v32 = vmul.f32 0.70710677, %v3568_v33  ;;  %v3924_v36 = vmul.f32 0.70710677, %v3564_v59  ;;  %v5711_v38 = vld [vmem:[#allocation8 + $0x28] sm:$0xff]  }
 0x22a   :  { %v3957_v30 = vpack.c.bf16 %v3953_v27, %v3949_v53  ;;  %v659_v27 = vrot.slane %v6044_v58, %v658_v25 }
 0x22b   :  { %3851 = vmatpush2.bf16.msra.mxu0 %v5670_v43  ;;  %5742 = verf.f32 %v3928_v32  ;;  %v5718_v43 = vld [vmem:[#allocation8 + $0x48] sm:$0xff]  }
 0x22c   :  { %3894 = vmatpush2.bf16.msra.mxu1 %v5673_v44  ;;  %3852 = vmatprep.subr.bf16.mxu0 %v5678_v13  ;;  %5744 = verf.f32 %v3924_v36  ;;  %v5719_v13 = vld [vmem:[#allocation8 + $0x8] sm:$0xff]  }
 0x22d   :  { %3895 = vmatprep.subr.bf16.mxu1 %v5681_v50 }
 0x22f   :  { %3853 = vmatpush2.bf16.msra.mxu0 %v5676_v31 }
 0x230   :  { %3896 = vmatpush2.bf16.msra.mxu1 %v5679_v56  ;;  %3854 = vmatprep.subr.bf16.mxu0 %v5684_v52  ;;  %v3920_v56 = vmul.f32 0.5, %v3568_v33  ;;  %v3916_v52 = vmul.f32 0.5, %v3564_v59 }
 0x231   :  { %3897 = vmatprep.subr.bf16.mxu1 %v5687_v47 }
 0x233   :  { %3855 = vmatpush2.bf16.msra.mxu0 %v5682_v61 }
 0x234   :  { %3898 = vmatpush2.bf16.msra.mxu1 %v5685_v54  ;;  %3856 = vmatprep.subr.bf16.mxu0 %v5690_v63  ;;  %v5722_v54 = vld [vmem:[#allocation8 + $0xf8] sm:$0xff]   ;;  %v5725_v63 = vld [vmem:[#allocation8 + $0xb0] sm:$0xff]  }
 0x235   :  { %3899 = vmatprep.subr.bf16.mxu1 %v5693_v55  ;;  %v5726_v55 = vld [vmem:[#allocation8 + $0xe8] sm:$0xff]  }
 0x237   :  { %3857 = vmatpush2.bf16.msra.mxu0 %v5688_v2  ;;  %v5728_v2 = vld [vmem:[#allocation8 + $0xe0] sm:$0xff]  }
 0x238   :  { %3900 = vmatpush2.bf16.msra.mxu1 %v5691_v3  ;;  %3858 = vmatprep.subr.bf16.mxu0 %v5696_v4  ;;  %v5743_v44 = vpop.eup %5742  ;;  %v5729_v3 = vld [vmem:[#allocation8 + $0xa0] sm:$0xff]   ;;  %v5731_v4 = vld [vmem:[#allocation8 + $0x98] sm:$0xff]  }
 0x239   :  { %3901 = vmatprep.subr.bf16.mxu1 %v5699_v7  ;;  %v5745_v12 = vpop.eup %5744  ;;  %v3944_v50 = vadd.f32 1.0, %v5743_v44  ;;  %v5732_v7 = vld [vmem:[#allocation8 + $0xd0] sm:$0xff]  }
 0x23a   :  { %v3940_v31 = vadd.f32 1.0, %v5745_v12 }
 0x23b   :  { %3859 = vmatpush2.bf16.msra.mxu0 %v5694_v10  ;;  %v3952_v47 = vmul.f32 %v3944_v50, %v3920_v56  ;;  %v5736_v10 = vld [vmem:[#allocation8 + $0xc0] sm:$0xff]  }
 0x23c   :  { %3902 = vmatpush2.bf16.msra.mxu1 %v5697_v11  ;;  %3860 = vmatprep.subr.bf16.mxu0 %v5702_v40  ;;  %v3948_v60 = vmul.f32 %v3940_v31, %v3916_v52  ;;  %v5737_v11 = vld [vmem:[#allocation8 + $0x80] sm:$0xff]  }
 0x23d   :  { %3903 = vmatprep.subr.bf16.mxu1 %v5705_v5 }
 0x23e   :  { %v3956_v61 = vpack.c.bf16 %v3952_v47, %v3948_v60 }
 0x23f   :  { %3861 = vmatpush2.bf16.msra.mxu0 %v5700_v28 }
 0x240   :  { %3904 = vmatpush2.bf16.msra.mxu1 %v5703_v23  ;;  %4881 = vmatprep.subr.bf16.mxu0 %v5706_v6 }
 0x241   :  { %4903 = vmatprep.subr.bf16.mxu1 %v5722_v54 }
 0x242   :  { %3863 = vmatmul.mubr.bf16.vlgmr.msra.gmra.mxu0 %v5987_v18  ;;  %v5715_v18 = vld [vmem:[#allocation8 + $0x18] sm:$0xff]   ;;  %v3606_v49 = vpop.f32.mrf.mxu0 }
 0x243   :  { %3906 = vmatmul.mubr.bf16.vlgmr.msra.gmra.mxu1 %v5989_v19  ;;  %4882 = vmatpush3.bf16.msra.mxu0 %v5707_v1  ;;  %v5716_v19 = vld [vmem:[#allocation8 + $0x50] sm:$0xff]   ;;  %v3649_v14 = vpop.f32.mrf.mxu1  ;;  %v663_v1 = vrot.slane %v6044_v58, %v662_v15  ;;  %v3607_v33 = vadd.f32 %v3606_v49, %v659_v27 }
 0x244   :  { %4255 = vmatprep.mubr.bf16.mxu0 %v3957_v30  ;;  %4883 = vmatprep.subr.bf16.mxu0 %v5708_v35  ;;  %v3608_v40 = vpop.f32.mrf.mxu0 }
 0x245   :  { %4904 = vmatpush3.bf16.msra.mxu1 %v5723_v62  ;;  %v3651_v5 = vpop.f32.mrf.mxu1  ;;  %v3609_v59 = vadd.f32 %v3608_v40, %v663_v1 }
 0x246   :  { %4905 = vmatprep.subr.bf16.mxu1 %v5724_v37  ;;  %v3610_v17 = vpop.f32.mrf.mxu0 }
 0x247   :  { %4884 = vmatpush3.bf16.msra.mxu0 %v5709_v46  ;;  %v3653_v20 = vpop.f32.mrf.mxu1  ;;  %v3611_v36 = vadd.f32 %v3610_v17, %v659_v27 }
 0x248   :  { %4885 = vmatprep.subr.bf16.mxu0 %v5710_v39  ;;  %v3612_v21 = vpop.f32.mrf.mxu0  ;;  %v3650_v39 = vadd.f32 %v3649_v14, %v3607_v33 }
 0x249   :  { %4906 = vmatpush3.bf16.msra.mxu1 %v5725_v63  ;;  %v3655_v22 = vpop.f32.mrf.mxu1  ;;  %v3654_v9 = vadd.f32 %v3653_v20, %v3611_v36 }
 0x24a   :  { %4907 = vmatprep.subr.bf16.mxu1 %v5726_v55 }
 0x24b   :  { %4886 = vmatpush3.bf16.msra.mxu0 %v5711_v38  ;;  %v3652_v38 = vadd.f32 %v3651_v5, %v3609_v59 }
 0x24c   :  { %4887 = vmatprep.subr.bf16.mxu0 %v5712_v16 }
 0x24d   :  { %4908 = vmatpush3.bf16.msra.mxu1 %v5727_v24 }
 0x24e   :  { %4909 = vmatprep.subr.bf16.mxu1 %v5728_v2 }
 0x24f   :  { %4888 = vmatpush3.bf16.msra.mxu0 %v5713_v41  ;;  %v3613_v41 = vadd.f32 %v3612_v21, %v663_v1 }
 0x250   :  { %4889 = vmatprep.subr.bf16.mxu0 %v5714_v29 }
 0x251   :  { %4910 = vmatpush3.bf16.msra.mxu1 %v5729_v3  ;;  %v3656_v44 = vadd.f32 %v3655_v22, %v3613_v41 }
 0x252   :  { %4911 = vmatprep.subr.bf16.mxu1 %v5730_v48 }
 0x253   :  { %4890 = vmatpush3.bf16.msra.mxu0 %v5715_v18 }
 0x254   :  { %4891 = vmatprep.subr.bf16.mxu0 %v5716_v19 }
 0x255   :  { %4912 = vmatpush3.bf16.msra.mxu1 %v5731_v4 }
 0x256   :  { %4913 = vmatprep.subr.bf16.mxu1 %v5732_v7 }
 0x257   :  { %4892 = vmatpush3.bf16.msra.mxu0 %v5717_v42 }
 0x258   :  { %4893 = vmatprep.subr.bf16.mxu0 %v5718_v43 }
 0x259   :  { %4914 = vmatpush3.bf16.msra.mxu1 %v5733_v8 }
 0x25a   :  { %4915 = vmatprep.subr.bf16.mxu1 %v5734_v34 }
 0x25b   :  { %4894 = vmatpush3.bf16.msra.mxu0 %v5719_v13 }
 0x25c   :  { %4895 = vmatprep.subr.bf16.mxu0 %v5720_v51 }
 0x25d   :  { %4916 = vmatpush3.bf16.msra.mxu1 %v5735_v57 }
 0x25e   :  { %4917 = vmatprep.subr.bf16.mxu1 %v5736_v10 }
 0x25f   :  { %4896 = vmatpush3.bf16.msra.mxu0 %v5721_v45 }
 0x261   :  { %4918 = vmatpush3.bf16.msra.mxu1 %v5737_v11 }
 0x262   :  { %4256 = vmatmul.mubr.bf16.vlgmr.msra.gmra.mxu0 %v3956_v61 }
 0x282   :  { %v3692_v28 = vpop.f32.mrf.mxu0 }
 0x283   :  { %v3735_v23 = vpop.f32.mrf.mxu1  ;;  %v3693_v16 = vadd.f32 %v3692_v28, %v3650_v39 }
 0x284   :  { %v3694_v26 = vpop.f32.mrf.mxu0 }
 0x285   :  { %v3737_v6 = vpop.f32.mrf.mxu1  ;;  %v3695_v19 = vadd.f32 %v3694_v26, %v3652_v38  ;;  %v3736_v42 = vadd.f32 %v3735_v23, %v3693_v16 }
 0x286   :  { %v3696_v0 = vpop.f32.mrf.mxu0 }
 0x287   :  { %v3739_v53 = vpop.f32.mrf.mxu1  ;;  %v3697_v43 = vadd.f32 %v3696_v0, %v3654_v9  ;;  %v3738_v13 = vadd.f32 %v3737_v6, %v3695_v19 }
 0x288   :  { %v3698_v35 = vpop.f32.mrf.mxu0 }
 0x289   :  { %v3741_v30 = vpop.f32.mrf.mxu1  ;;  %v3699_v51 = vadd.f32 %v3698_v35, %v3656_v44  ;;  %v3740_v31 = vadd.f32 %v3739_v53, %v3697_v43 }
 0x28b   :  { %v3742_v61 = vadd.f32 %v3741_v30, %v3699_v51 }
 0x2c2   :  { %v3778_v46 = vpop.f32.mrf.mxu0 }
 0x2c3   :  { %v3821_v32 = vpop.f32.mrf.mxu1  ;;  %v3779_v50 = vadd.f32 %v3778_v46, %v3736_v42 }
 0x2c4   :  { %v3780_v29 = vpop.f32.mrf.mxu0 }
 0x2c5   :  { %v3823_v18 = vpop.f32.mrf.mxu1  ;;  %v3781_v56 = vadd.f32 %v3780_v29, %v3738_v13  ;;  %v3822_v47 = vadd.f32 %v3821_v32, %v3779_v50 }
 0x2c6   :  { %v3782_v12 = vpop.f32.mrf.mxu0 }
 0x2c7   :  { %v3825_v58 = vpop.f32.mrf.mxu1  ;;  %v3783_v60 = vadd.f32 %v3782_v12, %v3740_v31  ;;  %v3824_v37 = vadd.f32 %v3823_v18, %v3781_v56  ;;  %v4848_v18 = vld [vmem:[#allocation10] ss:$0 sm:$0xff] }
 0x2c8   :  { %v3784_v45 = vpop.f32.mrf.mxu0 }
 0x2c9   :  { %v3827_v52 = vpop.f32.mrf.mxu1  ;;  %v3785_v55 = vadd.f32 %v3784_v45, %v3742_v61  ;;  %v3826_v3 = vadd.f32 %v3825_v58, %v3783_v60 }
 0x2cb   :  { %v3828_v11 = vadd.f32 %v3827_v52, %v3785_v55 }
 0x302   :  { %v3864_v54 = vpop.f32.mrf.mxu0 }
 0x303   :  { %v3907_v62 = vpop.f32.mrf.mxu1  ;;  %v3865_v63 = vadd.f32 %v3864_v54, %v3822_v47 }
 0x304   :  { %v3866_v24 = vpop.f32.mrf.mxu0 }
 0x305   :  { %v3909_v2 = vpop.f32.mrf.mxu1  ;;  %v3908_v48 = vadd.f32 %v3907_v62, %v3865_v63  ;;  %v3867_v4 = vadd.f32 %v3866_v24, %v3824_v37 }
 0x306   :  { %v3868_v7 = vpop.f32.mrf.mxu0 }
 0x307   :  { %v3926_v8 = vmul.f32 0.70710677, %v3908_v48  ;;  %v3910_v34 = vadd.f32 %v3909_v2, %v3867_v4  ;;  %v3869_v57 = vadd.f32 %v3868_v7, %v3826_v3  ;;  %v3911_v10 = vpop.f32.mrf.mxu1  ;;  %v3918_v35 = vmul.f32 0.5, %v3908_v48 }
 0x308   :  { %v3870_v49 = vpop.f32.mrf.mxu0 }
 0x309   :  { %v3927_v14 = vmul.f32 0.70710677, %v3910_v34  ;;  %v3912_v40 = vadd.f32 %v3911_v10, %v3869_v57  ;;  %v3871_v5 = vadd.f32 %v3870_v49, %v3828_v11  ;;  %5746 = verf.f32 %v3926_v8  ;;  %v3913_v20 = vpop.f32.mrf.mxu1 }
 0x30a   :  { %v3919_v53 = vmul.f32 0.5, %v3910_v34 }
 0x30b   :  { %v3930_v17 = vmul.f32 0.70710677, %v3912_v40  ;;  %5748 = verf.f32 %v3927_v14  ;;  %v3914_v21 = vadd.f32 %v3913_v20, %v3871_v5  ;;  %v3922_v0 = vmul.f32 0.5, %v3912_v40 }
 0x30d   :  { %5750 = verf.f32 %v3930_v17  ;;  %v3931_v22 = vmul.f32 0.70710677, %v3914_v21  ;;  %v3923_v1 = vmul.f32 0.5, %v3914_v21 }
 0x30f   :  { %5752 = verf.f32 %v3931_v22 }
 0x316   :  { %v5747_v28 = vpop.eup %5746 }
 0x317   :  { %v3942_v27 = vadd.f32 1.0, %v5747_v28 }
 0x318   :  { %v5749_v23 = vpop.eup %5748 }
 0x319   :  { %v3943_v6 = vadd.f32 1.0, %v5749_v23  ;;  %v3950_v32 = vmul.f32 %v3942_v27, %v3918_v35 }
 0x31a   :  { %v5751_v25 = vpop.eup %5750 }
 0x31b   :  { %v3946_v26 = vadd.f32 1.0, %v5751_v25  ;;  %v3951_v59 = vmul.f32 %v3943_v6, %v3919_v53 }
 0x31c   :  { %v5753_v15 = vpop.eup %5752 }
 0x31d   :  { %v3947_v33 = vadd.f32 1.0, %v5753_v15  ;;  %v3954_v30 = vmul.f32 %v3946_v26, %v3922_v0 }
 0x31f   :  { %v3955_v46 = vmul.f32 %v3947_v33, %v3923_v1  ;;  %v3958_v36 = vpack.c.bf16 %v3954_v30, %v3950_v32 }
 0x321   :  { %v3959_v39 = vpack.c.bf16 %v3955_v46, %v3951_v59 }
 0x322   :  { %v4897_v38 = vpop.f32.mrf.mxu0 }
 0x323   :  { %4296 = vmatprep.mubr.bf16.mxu1 %v3959_v39 }
 0x324   :  { %4297 = vmatmul.mubr.bf16.vlgmr.msra.gmra.mxu1 %v3958_v36  ;;  %v4898_v16 = vpop.f32.mrf.mxu0 }
 0x325   :  { %v4899_v29 = vadd.f32 %v4898_v16, %v4897_v38 }
 0x326   :  { %v4900_v41 = vpop.f32.mrf.mxu0 }
 0x327   :  { %v4258_v43 = vadd.f32 %v4899_v29, %v4848_v18 }
 0x328   :  { %v4901_v9 = vpop.f32.mrf.mxu0 }
 0x329   :  { %v4902_v44 = vadd.f32 %v4901_v9, %v4900_v41 }
 0x32b   :  { %v4261_v51 = vadd.f32 %v4902_v44, %v4848_v18 }
 0x3e4   :  { %v4919_v19 = vpop.f32.mrf.mxu1 }
 0x3e6   :  { %v4920_v42 = vpop.f32.mrf.mxu1 }
 0x3e7   :  { %v4921_v12 = vadd.f32 %v4920_v42, %v4919_v19 }
 0x3e8   :  { %v4922_v58 = vpop.f32.mrf.mxu1 }
 0x3e9   :  { %v4299_v13 = vadd.f32 %v4921_v12, %v4258_v43 }
 0x3ea   :  { %v4923_v50 = vpop.f32.mrf.mxu1 }
 0x3eb   :  { %v4307_v31 = vmul.f32 0.70710677, %v4299_v13  ;;  %v4924_v56 = vadd.f32 %v4923_v50, %v4922_v58  ;;  %v4305_v60 = vmul.f32 0.5, %v4299_v13 }
 0x3ed   :  { %5754 = verf.f32 %v4307_v31  ;;  %v4302_v45 = vadd.f32 %v4924_v56, %v4261_v51 }
 0x3ef   :  { %v4308_v52 = vmul.f32 0.70710677, %v4302_v45  ;;  %v4306_v37 = vmul.f32 0.5, %v4302_v45 }
 0x3f1   :  { %5756 = verf.f32 %v4308_v52 }
 0x3fa   :  { %v5755_v47 = vpop.eup %5754 }
 0x3fb   :  { %v4311_v61 = vadd.f32 1.0, %v5755_v47 }
 0x3fd   :  { %v4313_v54 = vmul.f32 %v4311_v61, %v4305_v60 }
 0x3fe   :  { %v5757_v62 = vpop.eup %5756 }
 0x3ff   :  { %4315 = vst [vmem:[#allocation11] sm:$0xff] %v4313_v54  ;;  %v4312_v63 = vadd.f32 1.0, %v5757_v62 }
 0x401   :  { %v4314_v55 = vmul.f32 %v4312_v63, %v4306_v37 }
 0x403   :  { %4316 = vst [vmem:[#allocation11 + $0x8] sm:$0xff] %v4314_v55 }
 0x404   :  { %5869 = shalt.err (!%p5866_p1)
}
 0x405   :  { %s5898_s23 = smov 8  }
 0x406   :  { %4328 = dma.vmem_to_hbm [thread:$0]  %s4323_s4, 256, %s6111_s5, [#allocation4], %s5894_s10, %s5894_s10, %s5898_s23  }
 0x407   :  { %5884 = dma.done.wait [#allocation4], 256  }
 0x408   :  { %5885 = vsyncadd [#allocation4], 4294967040 }
 0x409   :  { %4332 = vsyncpa [#allocation3], 1 }
 0x40a   :  { %4333 = vsyncpa [#allocation6], 1 }
 0x40b   :  { %4334 = vsyncpa [#allocation9], 1 }
 0x40c   :  { %4335 = vsyncpa [#allocation4], 1 }

</bundles_post_ra>
